<compile_context>
chip_gen: v7x
topology: tpu7x:2x2x1
jax: 0.10.0
libtpu: 0.0.40
codegen_flags: <defaults>
</compile_context>

<pallas_src>
import functools

import jax
import jax.numpy as jnp
from jax.experimental import pallas as pl
from jax.experimental.pallas import tpu as pltpu


def _fused_cnn_kernel(x_ref, mask_ref, *refs, layer_defs, wc, use_bf16):
    """Runs the whole conv stack for one batch tile (images folded into lanes).

    x_ref    : (1, Cin0, L)   L = b_tile * per-image 128-aligned canvas length
    mask_ref : (1, L)         1.0 on interior pixels, 0.0 on pad ring / dead lanes
    refs     : w1, b1, ..., wN, bN, o_ref
      w_i : (k*k, Cout, Cin)  per-tap matrices for MXU layers
            (k*k, Cin, 1)     when Cout == 1  (VPU + single sublane reduce)
            (k*k, Cout, 1)    when Cin  == 1  (VPU broadcast)
      b_i : (Cout, 1)
      o_ref: (1, Cout_last, L)
    """
    o_ref = refs[-1]
    wb_refs = refs[:-1]
    mask = mask_ref[...]                               # (1, L), hoisted

    a = x_ref[0]                                       # (Cin0, L)
    total_lanes = a.shape[1]
    n_layers = len(layer_defs)
    for li, (k, cin, cout, act) in enumerate(layer_defs):
        w_ref = wb_refs[2 * li]
        b_ref = wb_refs[2 * li + 1]
        p = k // 2
        use_mxu = cin > 1 and cout > 1
        # Per-tap accumulation: acc stays a small (C, L) f32 tensor.
        acc_rows = cin if cout == 1 else cout
        acc = jnp.zeros((acc_rows, total_lanes), jnp.float32)
        a_mm = a.astype(jnp.bfloat16) if (use_mxu and use_bf16) else a
        tap_idx = 0
        for i in range(k):
            for j in range(k):
                off = (i - p) * wc + (j - p)
                # Spatial tap = lane rotation (XLU slot), interleaved with the
                # MXU/VPU consumption so the scheduler can overlap the units.
                tap = a_mm if off == 0 else pltpu.roll(
                    a_mm, (-off) % total_lanes, 1)
                w_tap = w_ref[tap_idx]                 # static leading-axis index
                if use_mxu:
                    w_mm = w_tap.astype(jnp.bfloat16) if use_bf16 else w_tap
                    acc = acc + jnp.dot(w_mm, tap,
                                        preferred_element_type=jnp.float32)
                else:
                    # Cin==1 / Cout==1 layers: pure VPU multiply-add,
                    # no tiny (1,K)x(K,L) MXU fills.
                    acc = acc + w_tap * tap
                tap_idx += 1
        if cout == 1 and cin > 1:
            acc = jnp.sum(acc, axis=0, keepdims=True)  # one XLU reduce
        out = acc + b_ref[...]                         # (Cout, 1) broadcast
        if act == "relu":
            out = jnp.maximum(out, 0.0)
        else:                                          # "sigmoid"
            out = jax.nn.sigmoid(out)
        if li < n_layers - 1:
            out = out * mask                           # in-kernel re-padding
        a = out
    o_ref[0] = a.astype(o_ref.dtype)


def _round_up(x, m):
    return ((x + m - 1) // m) * m


def _pick_batch_tile(n, min_grid_steps=2):
    """Largest batch fold that still leaves >= min_grid_steps parallel grid
    steps (so both v7x TensorCores have work).  On v5e/v6e (single TC) the
    extra steps only cost ~0.35us each; fold the whole batch by passing
    min_grid_steps=1 there if desired."""
    if n <= 1:
        return 1
    best = 1
    for d in range(1, n + 1):
        if n % d == 0 and n // d >= min_grid_steps:
            best = d
    return best


def fused_cnn_forward(x_nchw, params, *, use_bf16_matmul=False):
    """params: list of (w[kh,kw,cin,cout], b[cout], pad, act); stride-1 'same'
    convolutions only."""
    n, cin0, h, w = x_nchw.shape
    margin = max(p for (_, _, p, _) in params)
    for (wgt, _, pad, _) in params:
        kh, kw, _, _ = wgt.shape
        assert kh == kw and pad == kh // 2, "only stride-1 'same' convs supported"
    hc, wc = h + 2 * margin, w + 2 * margin
    lanes = _round_up(hc * wc, 128)       # per-image 128-aligned canvas length
    b_tile = _pick_batch_tile(n)
    n_tiles = n // b_tile
    total_lanes = b_tile * lanes          # lane axis per grid step

    # Host-side glue: pad the raw input once into per-image canvases, then
    # fold b_tile images into the lane axis (each canvas stays 128-aligned so
    # roll wrap-around never reaches another image's interior).
    xp = jnp.pad(x_nchw, ((0, 0), (0, 0), (margin, margin), (margin, margin)))
    xf = xp.reshape(n, cin0, hc * wc)
    xf = jnp.pad(xf, ((0, 0), (0, 0), (0, lanes - hc * wc)))
    xf = (xf.reshape(n_tiles, b_tile, cin0, lanes)
            .transpose(0, 2, 1, 3)
            .reshape(n_tiles, cin0, total_lanes))

    mask2d = jnp.zeros((hc, wc), jnp.float32)
    mask2d = mask2d.at[margin:margin + h, margin:margin + w].set(1.0)
    mask = jnp.pad(mask2d.reshape(1, hc * wc), ((0, 0), (0, lanes - hc * wc)))
    mask = jnp.tile(mask, (1, b_tile))                  # (1, total_lanes)

    layer_defs = []
    flat_wb = []
    wb_specs = []
    resident = pl.Buffered(1)   # constant-index blocks: single-buffer in VMEM
    for (wgt, b, _pad, act) in params:
        kh, kw, cin, cout = wgt.shape
        layer_defs.append((kh, cin, cout, act))
        if cout == 1:
            w_arr = wgt.reshape(kh * kw, cin, 1)                       # VPU layer
        else:
            w_arr = jnp.transpose(wgt, (0, 1, 3, 2)).reshape(kh * kw, cout, cin)
        b_col = b.reshape(cout, 1)
        flat_wb += [w_arr, b_col]
        wb_specs += [
            pl.BlockSpec(w_arr.shape, lambda i: (0, 0, 0), pipeline_mode=resident),
            pl.BlockSpec(b_col.shape, lambda i: (0, 0), pipeline_mode=resident),
        ]
    cout_last = layer_defs[-1][2]

    flops = 2 * n * h * w * sum(k * k * cin * cout
                                for (k, cin, cout, _) in layer_defs)
    transcendentals = n * h * w * sum(cout for (_, _, cout, act) in layer_defs
                                      if act == "sigmoid")
    bytes_accessed = 4 * (int(xf.size) + n_tiles * cout_last * total_lanes
                          + int(mask.size) + sum(int(a.size) for a in flat_wb))

    kernel = functools.partial(_fused_cnn_kernel,
                               layer_defs=tuple(layer_defs),
                               wc=wc, use_bf16=use_bf16_matmul)
    out = pl.pallas_call(
        kernel,
        out_shape=jax.ShapeDtypeStruct((n_tiles, cout_last, total_lanes),
                                       x_nchw.dtype),
        grid=(n_tiles,),
        in_specs=[
            pl.BlockSpec((1, cin0, total_lanes), lambda i: (i, 0, 0)),
            pl.BlockSpec((1, total_lanes), lambda i: (0, 0),
                         pipeline_mode=resident),
        ] + wb_specs,
        out_specs=pl.BlockSpec((1, cout_last, total_lanes),
                               lambda i: (i, 0, 0)),
        compiler_params=pltpu.CompilerParams(
            dimension_semantics=("parallel",)),
        cost_estimate=pl.CostEstimate(flops=flops,
                                      transcendentals=transcendentals,
                                      bytes_accessed=bytes_accessed),
    )(xf, mask, *flat_wb)

    # Unfold lanes -> per-image canvases -> crop interior back to NCHW (glue).
    out = (out.reshape(n_tiles, cout_last, b_tile, lanes)
              .transpose(0, 2, 1, 3)
              .reshape(n, cout_last, lanes))
    out = out[:, :, :hc * wc].reshape(n, cout_last, hc, wc)
    return out[:, :, margin:margin + h, margin:margin + w]


class SimplificationModel:
    """Pallas port of the PyTorch SimplificationModel wrapper."""

    def __init__(self, params, mean, std):
        self.params = params
        # Stored for parity with the PyTorch module; forward() does not use
        # them (the reference forward is exactly self.model.forward(data)).
        self.image_mean = mean
        self.image_std = std

    def forward(self, data_nchw):
        return fused_cnn_forward(data_nchw, self.params)


def init_params(key):
    # TODO(synk): the real model comes from torch.load('.pth') of the GAN/MSE
    # sketch-simplification nets; a deterministic synthetic stand-in
    # Conv-ReLU, Conv-ReLU, Conv-Sigmoid stack of stride-1 'same' convs is
    # used here instead.
    layer_defs = [
        # (cin, cout, ksize, padding, activation)
        (1, 8, 5, 2, "relu"),
        (8, 16, 3, 1, "relu"),
        (16, 1, 3, 1, "sigmoid"),
    ]
    params = []
    for (cin, cout, k, pad, act) in layer_defs:
        key, k1, k2 = jax.random.split(key, 3)
        bound = 1.0 / (cin * k * k) ** 0.5        # PyTorch default-init bound
        w = jax.random.uniform(k1, (k, k, cin, cout), jnp.float32,
                               minval=-bound, maxval=bound)
        b = jax.random.uniform(k2, (cout,), jnp.float32,
                               minval=-bound, maxval=bound)
        params.append((w, b, pad, act))
    return params


def reference_forward(params, data_nchw):
    """Pure-JAX (XLA conv) reference for numerical verification."""
    x = jnp.transpose(data_nchw, (0, 2, 3, 1))
    for (w, b, pad, act) in params:
        x = jax.lax.conv_general_dilated(
            x, w, window_strides=(1, 1),
            padding=[(pad, pad), (pad, pad)],
            dimension_numbers=("NHWC", "HWIO", "NHWC"),
            precision=jax.lax.Precision.HIGHEST)
        x = x + b
        x = jnp.maximum(x, 0.0) if act == "relu" else jax.nn.sigmoid(x)
    return jnp.transpose(x, (0, 3, 1, 2))


if __name__ == "__main__":
    key = jax.random.PRNGKey(0)
    key, pkey, xkey = jax.random.split(key, 3)

    params = init_params(pkey)
    model = SimplificationModel(params, mean=0.9664, std=0.0858)

    # Grayscale sketch input, PyTorch NCHW convention: (N=4, C=1, H=16, W=16).
    # N=4 exercises batch-into-lanes folding (b_tile=2) with 2 parallel steps.
    data = jax.random.normal(xkey, (4, 1, 16, 16), jnp.float32)

    out = jax.block_until_ready(model.forward(data))
    ref = jax.block_until_ready(reference_forward(params, data))

    assert out.shape == (4, 1, 16, 16), out.shape
    err = float(jnp.max(jnp.abs(out - ref)))
    assert err < 5e-4, err

    print("KERNEL_OK")
</pallas_src>

<mosaic_0001>
module attributes {stable_mosaic.version = 11 : i64} {
  func.func @_fused_cnn_kernel(%arg0: i32, %arg1: memref<1x1x1024xf32, #tpu.memory_space<vmem>>, %arg2: memref<1x1024xf32, #tpu.memory_space<vmem>>, %arg3: memref<25x8x1xf32, #tpu.memory_space<vmem>>, %arg4: memref<8x1xf32, #tpu.memory_space<vmem>>, %arg5: memref<9x16x8xf32, #tpu.memory_space<vmem>>, %arg6: memref<16x1xf32, #tpu.memory_space<vmem>>, %arg7: memref<9x16x1xf32, #tpu.memory_space<vmem>>, %arg8: memref<1x1xf32, #tpu.memory_space<vmem>>, %arg9: memref<1x1x1024xf32, #tpu.memory_space<vmem>>) attributes {dimension_semantics = [#tpu.dimension_semantics<parallel>], iteration_bounds = array<i64: 2>, scalar_prefetch = 0 : i64, scratch_operands = 0 : i64, tpu.core_type = #tpu.core_type<tc>, window_params = [{transform_indices = @transform_0, window_bounds = array<i64: 1, 1, 1024>}, {pipeline_mode = #tpu.pipeline_mode<synchronous>, transform_indices = @transform_1, window_bounds = array<i64: 1, 1024>}, {pipeline_mode = #tpu.pipeline_mode<synchronous>, transform_indices = @transform_2, window_bounds = array<i64: 25, 8, 1>}, {pipeline_mode = #tpu.pipeline_mode<synchronous>, transform_indices = @transform_3, window_bounds = array<i64: 8, 1>}, {pipeline_mode = #tpu.pipeline_mode<synchronous>, transform_indices = @transform_4, window_bounds = array<i64: 9, 16, 8>}, {pipeline_mode = #tpu.pipeline_mode<synchronous>, transform_indices = @transform_5, window_bounds = array<i64: 16, 1>}, {pipeline_mode = #tpu.pipeline_mode<synchronous>, transform_indices = @transform_6, window_bounds = array<i64: 9, 16, 1>}, {pipeline_mode = #tpu.pipeline_mode<synchronous>, transform_indices = @transform_7, window_bounds = array<i64: 1, 1>}, {transform_indices = @transform_8, window_bounds = array<i64: 1, 1, 1024>}]} {
    %c0 = arith.constant 0 : index
    %c0_0 = arith.constant 0 : index
    %0 = vector.load %arg2[%c0, %c0_0] : memref<1x1024xf32, #tpu.memory_space<vmem>>, vector<1x1024xf32>
    %c0_1 = arith.constant 0 : index
    %c0_2 = arith.constant 0 : index
    %c0_3 = arith.constant 0 : index
    %1 = vector.load %arg1[%c0_1, %c0_2, %c0_3] : memref<1x1x1024xf32, #tpu.memory_space<vmem>>, vector<1x1x1024xf32>
    %2 = vector.shape_cast %1 : vector<1x1x1024xf32> to vector<1x1024xf32>
    %cst = arith.constant 0.000000e+00 : f32
    %3 = vector.broadcast %cst : f32 to vector<8x1024xf32>
    %c42_i32 = arith.constant 42 : i32
    %4 = tpu.dynamic_rotate %2 by %c42_i32 dim 1 : vector<1x1024xf32>, i32 -> vector<1x1024xf32>
    %c0_4 = arith.constant 0 : index
    %c0_5 = arith.constant 0 : index
    %c0_6 = arith.constant 0 : index
    %5 = vector.load %arg3[%c0_4, %c0_5, %c0_6] : memref<25x8x1xf32, #tpu.memory_space<vmem>>, vector<1x8x1xf32>
    %6 = vector.shape_cast %5 : vector<1x8x1xf32> to vector<8x1xf32>
    %7 = vector.broadcast %6 : vector<8x1xf32> to vector<8x1024xf32>
    %8 = vector.broadcast %4 : vector<1x1024xf32> to vector<8x1024xf32>
    %9 = arith.mulf %7, %8 : vector<8x1024xf32>
    %10 = arith.addf %3, %9 : vector<8x1024xf32>
    %c41_i32 = arith.constant 41 : i32
    %11 = tpu.dynamic_rotate %2 by %c41_i32 dim 1 : vector<1x1024xf32>, i32 -> vector<1x1024xf32>
    %c1 = arith.constant 1 : index
    %c0_7 = arith.constant 0 : index
    %c0_8 = arith.constant 0 : index
    %12 = vector.load %arg3[%c1, %c0_7, %c0_8] : memref<25x8x1xf32, #tpu.memory_space<vmem>>, vector<1x8x1xf32>
    %13 = vector.shape_cast %12 : vector<1x8x1xf32> to vector<8x1xf32>
    %14 = vector.broadcast %13 : vector<8x1xf32> to vector<8x1024xf32>
    %15 = vector.broadcast %11 : vector<1x1024xf32> to vector<8x1024xf32>
    %16 = arith.mulf %14, %15 : vector<8x1024xf32>
    %17 = arith.addf %10, %16 : vector<8x1024xf32>
    %c40_i32 = arith.constant 40 : i32
    %18 = tpu.dynamic_rotate %2 by %c40_i32 dim 1 : vector<1x1024xf32>, i32 -> vector<1x1024xf32>
    %c2 = arith.constant 2 : index
    %c0_9 = arith.constant 0 : index
    %c0_10 = arith.constant 0 : index
    %19 = vector.load %arg3[%c2, %c0_9, %c0_10] : memref<25x8x1xf32, #tpu.memory_space<vmem>>, vector<1x8x1xf32>
    %20 = vector.shape_cast %19 : vector<1x8x1xf32> to vector<8x1xf32>
    %21 = vector.broadcast %20 : vector<8x1xf32> to vector<8x1024xf32>
    %22 = vector.broadcast %18 : vector<1x1024xf32> to vector<8x1024xf32>
    %23 = arith.mulf %21, %22 : vector<8x1024xf32>
    %24 = arith.addf %17, %23 : vector<8x1024xf32>
    %c39_i32 = arith.constant 39 : i32
    %25 = tpu.dynamic_rotate %2 by %c39_i32 dim 1 : vector<1x1024xf32>, i32 -> vector<1x1024xf32>
    %c3 = arith.constant 3 : index
    %c0_11 = arith.constant 0 : index
    %c0_12 = arith.constant 0 : index
    %26 = vector.load %arg3[%c3, %c0_11, %c0_12] : memref<25x8x1xf32, #tpu.memory_space<vmem>>, vector<1x8x1xf32>
    %27 = vector.shape_cast %26 : vector<1x8x1xf32> to vector<8x1xf32>
    %28 = vector.broadcast %27 : vector<8x1xf32> to vector<8x1024xf32>
    %29 = vector.broadcast %25 : vector<1x1024xf32> to vector<8x1024xf32>
    %30 = arith.mulf %28, %29 : vector<8x1024xf32>
    %31 = arith.addf %24, %30 : vector<8x1024xf32>
    %c38_i32 = arith.constant 38 : i32
    %32 = tpu.dynamic_rotate %2 by %c38_i32 dim 1 : vector<1x1024xf32>, i32 -> vector<1x1024xf32>
    %c4 = arith.constant 4 : index
    %c0_13 = arith.constant 0 : index
    %c0_14 = arith.constant 0 : index
    %33 = vector.load %arg3[%c4, %c0_13, %c0_14] : memref<25x8x1xf32, #tpu.memory_space<vmem>>, vector<1x8x1xf32>
    %34 = vector.shape_cast %33 : vector<1x8x1xf32> to vector<8x1xf32>
    %35 = vector.broadcast %34 : vector<8x1xf32> to vector<8x1024xf32>
    %36 = vector.broadcast %32 : vector<1x1024xf32> to vector<8x1024xf32>
    %37 = arith.mulf %35, %36 : vector<8x1024xf32>
    %38 = arith.addf %31, %37 : vector<8x1024xf32>
    %c22_i32 = arith.constant 22 : i32
    %39 = tpu.dynamic_rotate %2 by %c22_i32 dim 1 : vector<1x1024xf32>, i32 -> vector<1x1024xf32>
    %c5 = arith.constant 5 : index
    %c0_15 = arith.constant 0 : index
    %c0_16 = arith.constant 0 : index
    %40 = vector.load %arg3[%c5, %c0_15, %c0_16] : memref<25x8x1xf32, #tpu.memory_space<vmem>>, vector<1x8x1xf32>
    %41 = vector.shape_cast %40 : vector<1x8x1xf32> to vector<8x1xf32>
    %42 = vector.broadcast %41 : vector<8x1xf32> to vector<8x1024xf32>
    %43 = vector.broadcast %39 : vector<1x1024xf32> to vector<8x1024xf32>
    %44 = arith.mulf %42, %43 : vector<8x1024xf32>
    %45 = arith.addf %38, %44 : vector<8x1024xf32>
    %c21_i32 = arith.constant 21 : i32
    %46 = tpu.dynamic_rotate %2 by %c21_i32 dim 1 : vector<1x1024xf32>, i32 -> vector<1x1024xf32>
    %c6 = arith.constant 6 : index
    %c0_17 = arith.constant 0 : index
    %c0_18 = arith.constant 0 : index
    %47 = vector.load %arg3[%c6, %c0_17, %c0_18] : memref<25x8x1xf32, #tpu.memory_space<vmem>>, vector<1x8x1xf32>
    %48 = vector.shape_cast %47 : vector<1x8x1xf32> to vector<8x1xf32>
    %49 = vector.broadcast %48 : vector<8x1xf32> to vector<8x1024xf32>
    %50 = vector.broadcast %46 : vector<1x1024xf32> to vector<8x1024xf32>
    %51 = arith.mulf %49, %50 : vector<8x1024xf32>
    %52 = arith.addf %45, %51 : vector<8x1024xf32>
    %c20_i32 = arith.constant 20 : i32
    %53 = tpu.dynamic_rotate %2 by %c20_i32 dim 1 : vector<1x1024xf32>, i32 -> vector<1x1024xf32>
    %c7 = arith.constant 7 : index
    %c0_19 = arith.constant 0 : index
    %c0_20 = arith.constant 0 : index
    %54 = vector.load %arg3[%c7, %c0_19, %c0_20] : memref<25x8x1xf32, #tpu.memory_space<vmem>>, vector<1x8x1xf32>
    %55 = vector.shape_cast %54 : vector<1x8x1xf32> to vector<8x1xf32>
    %56 = vector.broadcast %55 : vector<8x1xf32> to vector<8x1024xf32>
    %57 = vector.broadcast %53 : vector<1x1024xf32> to vector<8x1024xf32>
    %58 = arith.mulf %56, %57 : vector<8x1024xf32>
    %59 = arith.addf %52, %58 : vector<8x1024xf32>
    %c19_i32 = arith.constant 19 : i32
    %60 = tpu.dynamic_rotate %2 by %c19_i32 dim 1 : vector<1x1024xf32>, i32 -> vector<1x1024xf32>
    %c8 = arith.constant 8 : index
    %c0_21 = arith.constant 0 : index
    %c0_22 = arith.constant 0 : index
    %61 = vector.load %arg3[%c8, %c0_21, %c0_22] : memref<25x8x1xf32, #tpu.memory_space<vmem>>, vector<1x8x1xf32>
    %62 = vector.shape_cast %61 : vector<1x8x1xf32> to vector<8x1xf32>
    %63 = vector.broadcast %62 : vector<8x1xf32> to vector<8x1024xf32>
    %64 = vector.broadcast %60 : vector<1x1024xf32> to vector<8x1024xf32>
    %65 = arith.mulf %63, %64 : vector<8x1024xf32>
    %66 = arith.addf %59, %65 : vector<8x1024xf32>
    %c18_i32 = arith.constant 18 : i32
    %67 = tpu.dynamic_rotate %2 by %c18_i32 dim 1 : vector<1x1024xf32>, i32 -> vector<1x1024xf32>
    %c9 = arith.constant 9 : index
    %c0_23 = arith.constant 0 : index
    %c0_24 = arith.constant 0 : index
    %68 = vector.load %arg3[%c9, %c0_23, %c0_24] : memref<25x8x1xf32, #tpu.memory_space<vmem>>, vector<1x8x1xf32>
    %69 = vector.shape_cast %68 : vector<1x8x1xf32> to vector<8x1xf32>
    %70 = vector.broadcast %69 : vector<8x1xf32> to vector<8x1024xf32>
    %71 = vector.broadcast %67 : vector<1x1024xf32> to vector<8x1024xf32>
    %72 = arith.mulf %70, %71 : vector<8x1024xf32>
    %73 = arith.addf %66, %72 : vector<8x1024xf32>
    %c2_i32 = arith.constant 2 : i32
    %74 = tpu.dynamic_rotate %2 by %c2_i32 dim 1 : vector<1x1024xf32>, i32 -> vector<1x1024xf32>
    %c10 = arith.constant 10 : index
    %c0_25 = arith.constant 0 : index
    %c0_26 = arith.constant 0 : index
    %75 = vector.load %arg3[%c10, %c0_25, %c0_26] : memref<25x8x1xf32, #tpu.memory_space<vmem>>, vector<1x8x1xf32>
    %76 = vector.shape_cast %75 : vector<1x8x1xf32> to vector<8x1xf32>
    %77 = vector.broadcast %76 : vector<8x1xf32> to vector<8x1024xf32>
    %78 = vector.broadcast %74 : vector<1x1024xf32> to vector<8x1024xf32>
    %79 = arith.mulf %77, %78 : vector<8x1024xf32>
    %80 = arith.addf %73, %79 : vector<8x1024xf32>
    %c1_i32 = arith.constant 1 : i32
    %81 = tpu.dynamic_rotate %2 by %c1_i32 dim 1 : vector<1x1024xf32>, i32 -> vector<1x1024xf32>
    %c11 = arith.constant 11 : index
    %c0_27 = arith.constant 0 : index
    %c0_28 = arith.constant 0 : index
    %82 = vector.load %arg3[%c11, %c0_27, %c0_28] : memref<25x8x1xf32, #tpu.memory_space<vmem>>, vector<1x8x1xf32>
    %83 = vector.shape_cast %82 : vector<1x8x1xf32> to vector<8x1xf32>
    %84 = vector.broadcast %83 : vector<8x1xf32> to vector<8x1024xf32>
    %85 = vector.broadcast %81 : vector<1x1024xf32> to vector<8x1024xf32>
    %86 = arith.mulf %84, %85 : vector<8x1024xf32>
    %87 = arith.addf %80, %86 : vector<8x1024xf32>
    %c12 = arith.constant 12 : index
    %c0_29 = arith.constant 0 : index
    %c0_30 = arith.constant 0 : index
    %88 = vector.load %arg3[%c12, %c0_29, %c0_30] : memref<25x8x1xf32, #tpu.memory_space<vmem>>, vector<1x8x1xf32>
    %89 = vector.shape_cast %88 : vector<1x8x1xf32> to vector<8x1xf32>
    %90 = vector.broadcast %89 : vector<8x1xf32> to vector<8x1024xf32>
    %91 = vector.broadcast %2 : vector<1x1024xf32> to vector<8x1024xf32>
    %92 = arith.mulf %90, %91 : vector<8x1024xf32>
    %93 = arith.addf %87, %92 : vector<8x1024xf32>
    %c1023_i32 = arith.constant 1023 : i32
    %94 = tpu.dynamic_rotate %2 by %c1023_i32 dim 1 : vector<1x1024xf32>, i32 -> vector<1x1024xf32>
    %c13 = arith.constant 13 : index
    %c0_31 = arith.constant 0 : index
    %c0_32 = arith.constant 0 : index
    %95 = vector.load %arg3[%c13, %c0_31, %c0_32] : memref<25x8x1xf32, #tpu.memory_space<vmem>>, vector<1x8x1xf32>
    %96 = vector.shape_cast %95 : vector<1x8x1xf32> to vector<8x1xf32>
    %97 = vector.broadcast %96 : vector<8x1xf32> to vector<8x1024xf32>
    %98 = vector.broadcast %94 : vector<1x1024xf32> to vector<8x1024xf32>
    %99 = arith.mulf %97, %98 : vector<8x1024xf32>
    %100 = arith.addf %93, %99 : vector<8x1024xf32>
    %c1022_i32 = arith.constant 1022 : i32
    %101 = tpu.dynamic_rotate %2 by %c1022_i32 dim 1 : vector<1x1024xf32>, i32 -> vector<1x1024xf32>
    %c14 = arith.constant 14 : index
    %c0_33 = arith.constant 0 : index
    %c0_34 = arith.constant 0 : index
    %102 = vector.load %arg3[%c14, %c0_33, %c0_34] : memref<25x8x1xf32, #tpu.memory_space<vmem>>, vector<1x8x1xf32>
    %103 = vector.shape_cast %102 : vector<1x8x1xf32> to vector<8x1xf32>
    %104 = vector.broadcast %103 : vector<8x1xf32> to vector<8x1024xf32>
    %105 = vector.broadcast %101 : vector<1x1024xf32> to vector<8x1024xf32>
    %106 = arith.mulf %104, %105 : vector<8x1024xf32>
    %107 = arith.addf %100, %106 : vector<8x1024xf32>
    %c1006_i32 = arith.constant 1006 : i32
    %108 = tpu.dynamic_rotate %2 by %c1006_i32 dim 1 : vector<1x1024xf32>, i32 -> vector<1x1024xf32>
    %c15 = arith.constant 15 : index
    %c0_35 = arith.constant 0 : index
    %c0_36 = arith.constant 0 : index
    %109 = vector.load %arg3[%c15, %c0_35, %c0_36] : memref<25x8x1xf32, #tpu.memory_space<vmem>>, vector<1x8x1xf32>
    %110 = vector.shape_cast %109 : vector<1x8x1xf32> to vector<8x1xf32>
    %111 = vector.broadcast %110 : vector<8x1xf32> to vector<8x1024xf32>
    %112 = vector.broadcast %108 : vector<1x1024xf32> to vector<8x1024xf32>
    %113 = arith.mulf %111, %112 : vector<8x1024xf32>
    %114 = arith.addf %107, %113 : vector<8x1024xf32>
    %c1005_i32 = arith.constant 1005 : i32
    %115 = tpu.dynamic_rotate %2 by %c1005_i32 dim 1 : vector<1x1024xf32>, i32 -> vector<1x1024xf32>
    %c16 = arith.constant 16 : index
    %c0_37 = arith.constant 0 : index
    %c0_38 = arith.constant 0 : index
    %116 = vector.load %arg3[%c16, %c0_37, %c0_38] : memref<25x8x1xf32, #tpu.memory_space<vmem>>, vector<1x8x1xf32>
    %117 = vector.shape_cast %116 : vector<1x8x1xf32> to vector<8x1xf32>
    %118 = vector.broadcast %117 : vector<8x1xf32> to vector<8x1024xf32>
    %119 = vector.broadcast %115 : vector<1x1024xf32> to vector<8x1024xf32>
    %120 = arith.mulf %118, %119 : vector<8x1024xf32>
    %121 = arith.addf %114, %120 : vector<8x1024xf32>
    %c1004_i32 = arith.constant 1004 : i32
    %122 = tpu.dynamic_rotate %2 by %c1004_i32 dim 1 : vector<1x1024xf32>, i32 -> vector<1x1024xf32>
    %c17 = arith.constant 17 : index
    %c0_39 = arith.constant 0 : index
    %c0_40 = arith.constant 0 : index
    %123 = vector.load %arg3[%c17, %c0_39, %c0_40] : memref<25x8x1xf32, #tpu.memory_space<vmem>>, vector<1x8x1xf32>
    %124 = vector.shape_cast %123 : vector<1x8x1xf32> to vector<8x1xf32>
    %125 = vector.broadcast %124 : vector<8x1xf32> to vector<8x1024xf32>
    %126 = vector.broadcast %122 : vector<1x1024xf32> to vector<8x1024xf32>
    %127 = arith.mulf %125, %126 : vector<8x1024xf32>
    %128 = arith.addf %121, %127 : vector<8x1024xf32>
    %c1003_i32 = arith.constant 1003 : i32
    %129 = tpu.dynamic_rotate %2 by %c1003_i32 dim 1 : vector<1x1024xf32>, i32 -> vector<1x1024xf32>
    %c18 = arith.constant 18 : index
    %c0_41 = arith.constant 0 : index
    %c0_42 = arith.constant 0 : index
    %130 = vector.load %arg3[%c18, %c0_41, %c0_42] : memref<25x8x1xf32, #tpu.memory_space<vmem>>, vector<1x8x1xf32>
    %131 = vector.shape_cast %130 : vector<1x8x1xf32> to vector<8x1xf32>
    %132 = vector.broadcast %131 : vector<8x1xf32> to vector<8x1024xf32>
    %133 = vector.broadcast %129 : vector<1x1024xf32> to vector<8x1024xf32>
    %134 = arith.mulf %132, %133 : vector<8x1024xf32>
    %135 = arith.addf %128, %134 : vector<8x1024xf32>
    %c1002_i32 = arith.constant 1002 : i32
    %136 = tpu.dynamic_rotate %2 by %c1002_i32 dim 1 : vector<1x1024xf32>, i32 -> vector<1x1024xf32>
    %c19 = arith.constant 19 : index
    %c0_43 = arith.constant 0 : index
    %c0_44 = arith.constant 0 : index
    %137 = vector.load %arg3[%c19, %c0_43, %c0_44] : memref<25x8x1xf32, #tpu.memory_space<vmem>>, vector<1x8x1xf32>
    %138 = vector.shape_cast %137 : vector<1x8x1xf32> to vector<8x1xf32>
    %139 = vector.broadcast %138 : vector<8x1xf32> to vector<8x1024xf32>
    %140 = vector.broadcast %136 : vector<1x1024xf32> to vector<8x1024xf32>
    %141 = arith.mulf %139, %140 : vector<8x1024xf32>
    %142 = arith.addf %135, %141 : vector<8x1024xf32>
    %c986_i32 = arith.constant 986 : i32
    %143 = tpu.dynamic_rotate %2 by %c986_i32 dim 1 : vector<1x1024xf32>, i32 -> vector<1x1024xf32>
    %c20 = arith.constant 20 : index
    %c0_45 = arith.constant 0 : index
    %c0_46 = arith.constant 0 : index
    %144 = vector.load %arg3[%c20, %c0_45, %c0_46] : memref<25x8x1xf32, #tpu.memory_space<vmem>>, vector<1x8x1xf32>
    %145 = vector.shape_cast %144 : vector<1x8x1xf32> to vector<8x1xf32>
    %146 = vector.broadcast %145 : vector<8x1xf32> to vector<8x1024xf32>
    %147 = vector.broadcast %143 : vector<1x1024xf32> to vector<8x1024xf32>
    %148 = arith.mulf %146, %147 : vector<8x1024xf32>
    %149 = arith.addf %142, %148 : vector<8x1024xf32>
    %c985_i32 = arith.constant 985 : i32
    %150 = tpu.dynamic_rotate %2 by %c985_i32 dim 1 : vector<1x1024xf32>, i32 -> vector<1x1024xf32>
    %c21 = arith.constant 21 : index
    %c0_47 = arith.constant 0 : index
    %c0_48 = arith.constant 0 : index
    %151 = vector.load %arg3[%c21, %c0_47, %c0_48] : memref<25x8x1xf32, #tpu.memory_space<vmem>>, vector<1x8x1xf32>
    %152 = vector.shape_cast %151 : vector<1x8x1xf32> to vector<8x1xf32>
    %153 = vector.broadcast %152 : vector<8x1xf32> to vector<8x1024xf32>
    %154 = vector.broadcast %150 : vector<1x1024xf32> to vector<8x1024xf32>
    %155 = arith.mulf %153, %154 : vector<8x1024xf32>
    %156 = arith.addf %149, %155 : vector<8x1024xf32>
    %c984_i32 = arith.constant 984 : i32
    %157 = tpu.dynamic_rotate %2 by %c984_i32 dim 1 : vector<1x1024xf32>, i32 -> vector<1x1024xf32>
    %c22 = arith.constant 22 : index
    %c0_49 = arith.constant 0 : index
    %c0_50 = arith.constant 0 : index
    %158 = vector.load %arg3[%c22, %c0_49, %c0_50] : memref<25x8x1xf32, #tpu.memory_space<vmem>>, vector<1x8x1xf32>
    %159 = vector.shape_cast %158 : vector<1x8x1xf32> to vector<8x1xf32>
    %160 = vector.broadcast %159 : vector<8x1xf32> to vector<8x1024xf32>
    %161 = vector.broadcast %157 : vector<1x1024xf32> to vector<8x1024xf32>
    %162 = arith.mulf %160, %161 : vector<8x1024xf32>
    %163 = arith.addf %156, %162 : vector<8x1024xf32>
    %c983_i32 = arith.constant 983 : i32
    %164 = tpu.dynamic_rotate %2 by %c983_i32 dim 1 : vector<1x1024xf32>, i32 -> vector<1x1024xf32>
    %c23 = arith.constant 23 : index
    %c0_51 = arith.constant 0 : index
    %c0_52 = arith.constant 0 : index
    %165 = vector.load %arg3[%c23, %c0_51, %c0_52] : memref<25x8x1xf32, #tpu.memory_space<vmem>>, vector<1x8x1xf32>
    %166 = vector.shape_cast %165 : vector<1x8x1xf32> to vector<8x1xf32>
    %167 = vector.broadcast %166 : vector<8x1xf32> to vector<8x1024xf32>
    %168 = vector.broadcast %164 : vector<1x1024xf32> to vector<8x1024xf32>
    %169 = arith.mulf %167, %168 : vector<8x1024xf32>
    %170 = arith.addf %163, %169 : vector<8x1024xf32>
    %c982_i32 = arith.constant 982 : i32
    %171 = tpu.dynamic_rotate %2 by %c982_i32 dim 1 : vector<1x1024xf32>, i32 -> vector<1x1024xf32>
    %c24 = arith.constant 24 : index
    %c0_53 = arith.constant 0 : index
    %c0_54 = arith.constant 0 : index
    %172 = vector.load %arg3[%c24, %c0_53, %c0_54] : memref<25x8x1xf32, #tpu.memory_space<vmem>>, vector<1x8x1xf32>
    %173 = vector.shape_cast %172 : vector<1x8x1xf32> to vector<8x1xf32>
    %174 = vector.broadcast %173 : vector<8x1xf32> to vector<8x1024xf32>
    %175 = vector.broadcast %171 : vector<1x1024xf32> to vector<8x1024xf32>
    %176 = arith.mulf %174, %175 : vector<8x1024xf32>
    %177 = arith.addf %170, %176 : vector<8x1024xf32>
    %c0_55 = arith.constant 0 : index
    %c0_56 = arith.constant 0 : index
    %178 = vector.load %arg4[%c0_55, %c0_56] : memref<8x1xf32, #tpu.memory_space<vmem>>, vector<8x1xf32>
    %179 = vector.broadcast %178 : vector<8x1xf32> to vector<8x1024xf32>
    %180 = arith.addf %177, %179 : vector<8x1024xf32>
    %cst_57 = arith.constant 0.000000e+00 : f32
    %181 = vector.broadcast %cst_57 : f32 to vector<8x1024xf32>
    %182 = arith.maximumf %180, %181 : vector<8x1024xf32>
    %183 = vector.broadcast %0 : vector<1x1024xf32> to vector<8x1024xf32>
    %184 = arith.mulf %182, %183 : vector<8x1024xf32>
    %cst_58 = arith.constant 0.000000e+00 : f32
    %185 = vector.broadcast %cst_58 : f32 to vector<16x1024xf32>
    %c21_i32_59 = arith.constant 21 : i32
    %186 = tpu.dynamic_rotate %184 by %c21_i32_59 dim 1 : vector<8x1024xf32>, i32 -> vector<8x1024xf32>
    %c0_60 = arith.constant 0 : index
    %c0_61 = arith.constant 0 : index
    %c0_62 = arith.constant 0 : index
    %187 = vector.load %arg5[%c0_60, %c0_61, %c0_62] : memref<9x16x8xf32, #tpu.memory_space<vmem>>, vector<1x16x8xf32>
    %188 = vector.shape_cast %187 : vector<1x16x8xf32> to vector<16x8xf32>
    %cst_63 = arith.constant dense<0.000000e+00> : vector<16x1024xf32>
    %189 = tpu.matmul %188, %186, %cst_63 {dimension_numbers = #tpu.dot_dimension_numbers<[1], [0], [0], [1], [0, 0, 1, 1], [], []>} : vector<16x8xf32>, vector<8x1024xf32>, vector<16x1024xf32> -> vector<16x1024xf32>
    %190 = arith.addf %185, %189 : vector<16x1024xf32>
    %c20_i32_64 = arith.constant 20 : i32
    %191 = tpu.dynamic_rotate %184 by %c20_i32_64 dim 1 : vector<8x1024xf32>, i32 -> vector<8x1024xf32>
    %c1_65 = arith.constant 1 : index
    %c0_66 = arith.constant 0 : index
    %c0_67 = arith.constant 0 : index
    %192 = vector.load %arg5[%c1_65, %c0_66, %c0_67] : memref<9x16x8xf32, #tpu.memory_space<vmem>>, vector<1x16x8xf32>
    %193 = vector.shape_cast %192 : vector<1x16x8xf32> to vector<16x8xf32>
    %cst_68 = arith.constant dense<0.000000e+00> : vector<16x1024xf32>
    %194 = tpu.matmul %193, %191, %cst_68 {dimension_numbers = #tpu.dot_dimension_numbers<[1], [0], [0], [1], [0, 0, 1, 1], [], []>} : vector<16x8xf32>, vector<8x1024xf32>, vector<16x1024xf32> -> vector<16x1024xf32>
    %195 = arith.addf %190, %194 : vector<16x1024xf32>
    %c19_i32_69 = arith.constant 19 : i32
    %196 = tpu.dynamic_rotate %184 by %c19_i32_69 dim 1 : vector<8x1024xf32>, i32 -> vector<8x1024xf32>
    %c2_70 = arith.constant 2 : index
    %c0_71 = arith.constant 0 : index
    %c0_72 = arith.constant 0 : index
    %197 = vector.load %arg5[%c2_70, %c0_71, %c0_72] : memref<9x16x8xf32, #tpu.memory_space<vmem>>, vector<1x16x8xf32>
    %198 = vector.shape_cast %197 : vector<1x16x8xf32> to vector<16x8xf32>
    %cst_73 = arith.constant dense<0.000000e+00> : vector<16x1024xf32>
    %199 = tpu.matmul %198, %196, %cst_73 {dimension_numbers = #tpu.dot_dimension_numbers<[1], [0], [0], [1], [0, 0, 1, 1], [], []>} : vector<16x8xf32>, vector<8x1024xf32>, vector<16x1024xf32> -> vector<16x1024xf32>
    %200 = arith.addf %195, %199 : vector<16x1024xf32>
    %c1_i32_74 = arith.constant 1 : i32
    %201 = tpu.dynamic_rotate %184 by %c1_i32_74 dim 1 : vector<8x1024xf32>, i32 -> vector<8x1024xf32>
    %c3_75 = arith.constant 3 : index
    %c0_76 = arith.constant 0 : index
    %c0_77 = arith.constant 0 : index
    %202 = vector.load %arg5[%c3_75, %c0_76, %c0_77] : memref<9x16x8xf32, #tpu.memory_space<vmem>>, vector<1x16x8xf32>
    %203 = vector.shape_cast %202 : vector<1x16x8xf32> to vector<16x8xf32>
    %cst_78 = arith.constant dense<0.000000e+00> : vector<16x1024xf32>
    %204 = tpu.matmul %203, %201, %cst_78 {dimension_numbers = #tpu.dot_dimension_numbers<[1], [0], [0], [1], [0, 0, 1, 1], [], []>} : vector<16x8xf32>, vector<8x1024xf32>, vector<16x1024xf32> -> vector<16x1024xf32>
    %205 = arith.addf %200, %204 : vector<16x1024xf32>
    %c4_79 = arith.constant 4 : index
    %c0_80 = arith.constant 0 : index
    %c0_81 = arith.constant 0 : index
    %206 = vector.load %arg5[%c4_79, %c0_80, %c0_81] : memref<9x16x8xf32, #tpu.memory_space<vmem>>, vector<1x16x8xf32>
    %207 = vector.shape_cast %206 : vector<1x16x8xf32> to vector<16x8xf32>
    %cst_82 = arith.constant dense<0.000000e+00> : vector<16x1024xf32>
    %208 = tpu.matmul %207, %184, %cst_82 {dimension_numbers = #tpu.dot_dimension_numbers<[1], [0], [0], [1], [0, 0, 1, 1], [], []>} : vector<16x8xf32>, vector<8x1024xf32>, vector<16x1024xf32> -> vector<16x1024xf32>
    %209 = arith.addf %205, %208 : vector<16x1024xf32>
    %c1023_i32_83 = arith.constant 1023 : i32
    %210 = tpu.dynamic_rotate %184 by %c1023_i32_83 dim 1 : vector<8x1024xf32>, i32 -> vector<8x1024xf32>
    %c5_84 = arith.constant 5 : index
    %c0_85 = arith.constant 0 : index
    %c0_86 = arith.constant 0 : index
    %211 = vector.load %arg5[%c5_84, %c0_85, %c0_86] : memref<9x16x8xf32, #tpu.memory_space<vmem>>, vector<1x16x8xf32>
    %212 = vector.shape_cast %211 : vector<1x16x8xf32> to vector<16x8xf32>
    %cst_87 = arith.constant dense<0.000000e+00> : vector<16x1024xf32>
    %213 = tpu.matmul %212, %210, %cst_87 {dimension_numbers = #tpu.dot_dimension_numbers<[1], [0], [0], [1], [0, 0, 1, 1], [], []>} : vector<16x8xf32>, vector<8x1024xf32>, vector<16x1024xf32> -> vector<16x1024xf32>
    %214 = arith.addf %209, %213 : vector<16x1024xf32>
    %c1005_i32_88 = arith.constant 1005 : i32
    %215 = tpu.dynamic_rotate %184 by %c1005_i32_88 dim 1 : vector<8x1024xf32>, i32 -> vector<8x1024xf32>
    %c6_89 = arith.constant 6 : index
    %c0_90 = arith.constant 0 : index
    %c0_91 = arith.constant 0 : index
    %216 = vector.load %arg5[%c6_89, %c0_90, %c0_91] : memref<9x16x8xf32, #tpu.memory_space<vmem>>, vector<1x16x8xf32>
    %217 = vector.shape_cast %216 : vector<1x16x8xf32> to vector<16x8xf32>
    %cst_92 = arith.constant dense<0.000000e+00> : vector<16x1024xf32>
    %218 = tpu.matmul %217, %215, %cst_92 {dimension_numbers = #tpu.dot_dimension_numbers<[1], [0], [0], [1], [0, 0, 1, 1], [], []>} : vector<16x8xf32>, vector<8x1024xf32>, vector<16x1024xf32> -> vector<16x1024xf32>
    %219 = arith.addf %214, %218 : vector<16x1024xf32>
    %c1004_i32_93 = arith.constant 1004 : i32
    %220 = tpu.dynamic_rotate %184 by %c1004_i32_93 dim 1 : vector<8x1024xf32>, i32 -> vector<8x1024xf32>
    %c7_94 = arith.constant 7 : index
    %c0_95 = arith.constant 0 : index
    %c0_96 = arith.constant 0 : index
    %221 = vector.load %arg5[%c7_94, %c0_95, %c0_96] : memref<9x16x8xf32, #tpu.memory_space<vmem>>, vector<1x16x8xf32>
    %222 = vector.shape_cast %221 : vector<1x16x8xf32> to vector<16x8xf32>
    %cst_97 = arith.constant dense<0.000000e+00> : vector<16x1024xf32>
    %223 = tpu.matmul %222, %220, %cst_97 {dimension_numbers = #tpu.dot_dimension_numbers<[1], [0], [0], [1], [0, 0, 1, 1], [], []>} : vector<16x8xf32>, vector<8x1024xf32>, vector<16x1024xf32> -> vector<16x1024xf32>
    %224 = arith.addf %219, %223 : vector<16x1024xf32>
    %c1003_i32_98 = arith.constant 1003 : i32
    %225 = tpu.dynamic_rotate %184 by %c1003_i32_98 dim 1 : vector<8x1024xf32>, i32 -> vector<8x1024xf32>
    %c8_99 = arith.constant 8 : index
    %c0_100 = arith.constant 0 : index
    %c0_101 = arith.constant 0 : index
    %226 = vector.load %arg5[%c8_99, %c0_100, %c0_101] : memref<9x16x8xf32, #tpu.memory_space<vmem>>, vector<1x16x8xf32>
    %227 = vector.shape_cast %226 : vector<1x16x8xf32> to vector<16x8xf32>
    %cst_102 = arith.constant dense<0.000000e+00> : vector<16x1024xf32>
    %228 = tpu.matmul %227, %225, %cst_102 {dimension_numbers = #tpu.dot_dimension_numbers<[1], [0], [0], [1], [0, 0, 1, 1], [], []>} : vector<16x8xf32>, vector<8x1024xf32>, vector<16x1024xf32> -> vector<16x1024xf32>
    %229 = arith.addf %224, %228 : vector<16x1024xf32>
    %c0_103 = arith.constant 0 : index
    %c0_104 = arith.constant 0 : index
    %230 = vector.load %arg6[%c0_103, %c0_104] : memref<16x1xf32, #tpu.memory_space<vmem>>, vector<16x1xf32>
    %231 = vector.broadcast %230 : vector<16x1xf32> to vector<16x1024xf32>
    %232 = arith.addf %229, %231 : vector<16x1024xf32>
    %cst_105 = arith.constant 0.000000e+00 : f32
    %233 = vector.broadcast %cst_105 : f32 to vector<16x1024xf32>
    %234 = arith.maximumf %232, %233 : vector<16x1024xf32>
    %235 = vector.broadcast %0 : vector<1x1024xf32> to vector<16x1024xf32>
    %236 = arith.mulf %234, %235 : vector<16x1024xf32>
    %cst_106 = arith.constant 0.000000e+00 : f32
    %237 = vector.broadcast %cst_106 : f32 to vector<16x1024xf32>
    %c21_i32_107 = arith.constant 21 : i32
    %238 = tpu.dynamic_rotate %236 by %c21_i32_107 dim 1 : vector<16x1024xf32>, i32 -> vector<16x1024xf32>
    %c0_108 = arith.constant 0 : index
    %c0_109 = arith.constant 0 : index
    %c0_110 = arith.constant 0 : index
    %239 = vector.load %arg7[%c0_108, %c0_109, %c0_110] : memref<9x16x1xf32, #tpu.memory_space<vmem>>, vector<1x16x1xf32>
    %240 = vector.shape_cast %239 : vector<1x16x1xf32> to vector<16x1xf32>
    %241 = vector.broadcast %240 : vector<16x1xf32> to vector<16x1024xf32>
    %242 = arith.mulf %241, %238 : vector<16x1024xf32>
    %243 = arith.addf %237, %242 : vector<16x1024xf32>
    %c20_i32_111 = arith.constant 20 : i32
    %244 = tpu.dynamic_rotate %236 by %c20_i32_111 dim 1 : vector<16x1024xf32>, i32 -> vector<16x1024xf32>
    %c1_112 = arith.constant 1 : index
    %c0_113 = arith.constant 0 : index
    %c0_114 = arith.constant 0 : index
    %245 = vector.load %arg7[%c1_112, %c0_113, %c0_114] : memref<9x16x1xf32, #tpu.memory_space<vmem>>, vector<1x16x1xf32>
    %246 = vector.shape_cast %245 : vector<1x16x1xf32> to vector<16x1xf32>
    %247 = vector.broadcast %246 : vector<16x1xf32> to vector<16x1024xf32>
    %248 = arith.mulf %247, %244 : vector<16x1024xf32>
    %249 = arith.addf %243, %248 : vector<16x1024xf32>
    %c19_i32_115 = arith.constant 19 : i32
    %250 = tpu.dynamic_rotate %236 by %c19_i32_115 dim 1 : vector<16x1024xf32>, i32 -> vector<16x1024xf32>
    %c2_116 = arith.constant 2 : index
    %c0_117 = arith.constant 0 : index
    %c0_118 = arith.constant 0 : index
    %251 = vector.load %arg7[%c2_116, %c0_117, %c0_118] : memref<9x16x1xf32, #tpu.memory_space<vmem>>, vector<1x16x1xf32>
    %252 = vector.shape_cast %251 : vector<1x16x1xf32> to vector<16x1xf32>
    %253 = vector.broadcast %252 : vector<16x1xf32> to vector<16x1024xf32>
    %254 = arith.mulf %253, %250 : vector<16x1024xf32>
    %255 = arith.addf %249, %254 : vector<16x1024xf32>
    %c1_i32_119 = arith.constant 1 : i32
    %256 = tpu.dynamic_rotate %236 by %c1_i32_119 dim 1 : vector<16x1024xf32>, i32 -> vector<16x1024xf32>
    %c3_120 = arith.constant 3 : index
    %c0_121 = arith.constant 0 : index
    %c0_122 = arith.constant 0 : index
    %257 = vector.load %arg7[%c3_120, %c0_121, %c0_122] : memref<9x16x1xf32, #tpu.memory_space<vmem>>, vector<1x16x1xf32>
    %258 = vector.shape_cast %257 : vector<1x16x1xf32> to vector<16x1xf32>
    %259 = vector.broadcast %258 : vector<16x1xf32> to vector<16x1024xf32>
    %260 = arith.mulf %259, %256 : vector<16x1024xf32>
    %261 = arith.addf %255, %260 : vector<16x1024xf32>
    %c4_123 = arith.constant 4 : index
    %c0_124 = arith.constant 0 : index
    %c0_125 = arith.constant 0 : index
    %262 = vector.load %arg7[%c4_123, %c0_124, %c0_125] : memref<9x16x1xf32, #tpu.memory_space<vmem>>, vector<1x16x1xf32>
    %263 = vector.shape_cast %262 : vector<1x16x1xf32> to vector<16x1xf32>
    %264 = vector.broadcast %263 : vector<16x1xf32> to vector<16x1024xf32>
    %265 = arith.mulf %264, %236 : vector<16x1024xf32>
    %266 = arith.addf %261, %265 : vector<16x1024xf32>
    %c1023_i32_126 = arith.constant 1023 : i32
    %267 = tpu.dynamic_rotate %236 by %c1023_i32_126 dim 1 : vector<16x1024xf32>, i32 -> vector<16x1024xf32>
    %c5_127 = arith.constant 5 : index
    %c0_128 = arith.constant 0 : index
    %c0_129 = arith.constant 0 : index
    %268 = vector.load %arg7[%c5_127, %c0_128, %c0_129] : memref<9x16x1xf32, #tpu.memory_space<vmem>>, vector<1x16x1xf32>
    %269 = vector.shape_cast %268 : vector<1x16x1xf32> to vector<16x1xf32>
    %270 = vector.broadcast %269 : vector<16x1xf32> to vector<16x1024xf32>
    %271 = arith.mulf %270, %267 : vector<16x1024xf32>
    %272 = arith.addf %266, %271 : vector<16x1024xf32>
    %c1005_i32_130 = arith.constant 1005 : i32
    %273 = tpu.dynamic_rotate %236 by %c1005_i32_130 dim 1 : vector<16x1024xf32>, i32 -> vector<16x1024xf32>
    %c6_131 = arith.constant 6 : index
    %c0_132 = arith.constant 0 : index
    %c0_133 = arith.constant 0 : index
    %274 = vector.load %arg7[%c6_131, %c0_132, %c0_133] : memref<9x16x1xf32, #tpu.memory_space<vmem>>, vector<1x16x1xf32>
    %275 = vector.shape_cast %274 : vector<1x16x1xf32> to vector<16x1xf32>
    %276 = vector.broadcast %275 : vector<16x1xf32> to vector<16x1024xf32>
    %277 = arith.mulf %276, %273 : vector<16x1024xf32>
    %278 = arith.addf %272, %277 : vector<16x1024xf32>
    %c1004_i32_134 = arith.constant 1004 : i32
    %279 = tpu.dynamic_rotate %236 by %c1004_i32_134 dim 1 : vector<16x1024xf32>, i32 -> vector<16x1024xf32>
    %c7_135 = arith.constant 7 : index
    %c0_136 = arith.constant 0 : index
    %c0_137 = arith.constant 0 : index
    %280 = vector.load %arg7[%c7_135, %c0_136, %c0_137] : memref<9x16x1xf32, #tpu.memory_space<vmem>>, vector<1x16x1xf32>
    %281 = vector.shape_cast %280 : vector<1x16x1xf32> to vector<16x1xf32>
    %282 = vector.broadcast %281 : vector<16x1xf32> to vector<16x1024xf32>
    %283 = arith.mulf %282, %279 : vector<16x1024xf32>
    %284 = arith.addf %278, %283 : vector<16x1024xf32>
    %c1003_i32_138 = arith.constant 1003 : i32
    %285 = tpu.dynamic_rotate %236 by %c1003_i32_138 dim 1 : vector<16x1024xf32>, i32 -> vector<16x1024xf32>
    %c8_139 = arith.constant 8 : index
    %c0_140 = arith.constant 0 : index
    %c0_141 = arith.constant 0 : index
    %286 = vector.load %arg7[%c8_139, %c0_140, %c0_141] : memref<9x16x1xf32, #tpu.memory_space<vmem>>, vector<1x16x1xf32>
    %287 = vector.shape_cast %286 : vector<1x16x1xf32> to vector<16x1xf32>
    %288 = vector.broadcast %287 : vector<16x1xf32> to vector<16x1024xf32>
    %289 = arith.mulf %288, %285 : vector<16x1024xf32>
    %290 = arith.addf %284, %289 : vector<16x1024xf32>
    %cst_142 = arith.constant dense<0.000000e+00> : vector<1024xf32>
    %291 = vector.multi_reduction <add>, %290, %cst_142 [0] : vector<16x1024xf32> to vector<1024xf32>
    %292 = vector.shape_cast %291 : vector<1024xf32> to vector<1x1024xf32>
    %c0_143 = arith.constant 0 : index
    %c0_144 = arith.constant 0 : index
    %293 = vector.load %arg8[%c0_143, %c0_144] : memref<1x1xf32, #tpu.memory_space<vmem>>, vector<1x1xf32>
    %294 = vector.broadcast %293 : vector<1x1xf32> to vector<1x1024xf32>
    %295 = arith.addf %292, %294 : vector<1x1024xf32>
    %296 = arith.negf %295 : vector<1x1024xf32>
    %297 = math.exp %296 : vector<1x1024xf32>
    %cst_145 = arith.constant 1.000000e+00 : f32
    %298 = vector.broadcast %cst_145 : f32 to vector<1x1024xf32>
    %299 = arith.addf %298, %297 : vector<1x1024xf32>
    %300 = arith.divf %298, %299 : vector<1x1024xf32>
    %c0_146 = arith.constant 0 : index
    %c0_147 = arith.constant 0 : index
    %c0_148 = arith.constant 0 : index
    %301 = vector.load %arg9[%c0_146, %c0_147, %c0_148] : memref<1x1x1024xf32, #tpu.memory_space<vmem>>, vector<1x1x1024xf32>
    %302 = vector.shape_cast %301 : vector<1x1x1024xf32> to vector<1x1024xf32>
    %303 = vector.shape_cast %300 : vector<1x1024xf32> to vector<1x1x1024xf32>
    tpu.vector_store %arg9[%c0_146, %c0_147, %c0_148], %303 {strides = array<i32>} : memref<1x1x1024xf32, #tpu.memory_space<vmem>>, vector<1x1x1024xf32>,
    return
  }
  func.func @transform_0(%arg0: i32) -> (i32, i32, i32) {
    %c0_i32 = arith.constant 0 : i32
    %c0_i32_0 = arith.constant 0 : i32
    %c0_i32_1 = arith.constant 0 : i32
    return %arg0, %c0_i32, %c0_i32_0 : i32, i32, i32
  }
  func.func @transform_1(%arg0: i32) -> (i32, i32) {
    %c0_i32 = arith.constant 0 : i32
    %c0_i32_0 = arith.constant 0 : i32
    %c0_i32_1 = arith.constant 0 : i32
    return %c0_i32, %c0_i32_0 : i32, i32
  }
  func.func @transform_2(%arg0: i32) -> (i32, i32, i32) {
    %c0_i32 = arith.constant 0 : i32
    %c0_i32_0 = arith.constant 0 : i32
    %c0_i32_1 = arith.constant 0 : i32
    %c0_i32_2 = arith.constant 0 : i32
    return %c0_i32, %c0_i32_0, %c0_i32_1 : i32, i32, i32
  }
  func.func @transform_3(%arg0: i32) -> (i32, i32) {
    %c0_i32 = arith.constant 0 : i32
    %c0_i32_0 = arith.constant 0 : i32
    %c0_i32_1 = arith.constant 0 : i32
    return %c0_i32, %c0_i32_0 : i32, i32
  }
  func.func @transform_4(%arg0: i32) -> (i32, i32, i32) {
    %c0_i32 = arith.constant 0 : i32
    %c0_i32_0 = arith.constant 0 : i32
    %c0_i32_1 = arith.constant 0 : i32
    %c0_i32_2 = arith.constant 0 : i32
    return %c0_i32, %c0_i32_0, %c0_i32_1 : i32, i32, i32
  }
  func.func @transform_5(%arg0: i32) -> (i32, i32) {
    %c0_i32 = arith.constant 0 : i32
    %c0_i32_0 = arith.constant 0 : i32
    %c0_i32_1 = arith.constant 0 : i32
    return %c0_i32, %c0_i32_0 : i32, i32
  }
  func.func @transform_6(%arg0: i32) -> (i32, i32, i32) {
    %c0_i32 = arith.constant 0 : i32
    %c0_i32_0 = arith.constant 0 : i32
    %c0_i32_1 = arith.constant 0 : i32
    %c0_i32_2 = arith.constant 0 : i32
    return %c0_i32, %c0_i32_0, %c0_i32_1 : i32, i32, i32
  }
  func.func @transform_7(%arg0: i32) -> (i32, i32) {
    %c0_i32 = arith.constant 0 : i32
    %c0_i32_0 = arith.constant 0 : i32
    %c0_i32_1 = arith.constant 0 : i32
    return %c0_i32, %c0_i32_0 : i32, i32
  }
  func.func @transform_8(%arg0: i32) -> (i32, i32, i32) {
    %c0_i32 = arith.constant 0 : i32
    %c0_i32_0 = arith.constant 0 : i32
    %c0_i32_1 = arith.constant 0 : i32
    return %arg0, %c0_i32, %c0_i32_0 : i32, i32, i32
  }
}

</mosaic_0001>

<bundles_post_ra>
// kernel: tpu_custom_call.1
= control target key start
LH: loop header
LB: loop body
LE: loop exit
PB: predicated region body
PF: predicated region fallthrough
CT: control target
= control target key end

     0   :  { %s11062_s0 = inlined_call_operand.vmem [shape: f32[2,1,1024], index: 0, kind: input, shape index: {}]   ;;  %s11063_s1 = inlined_call_operand.vmem [shape: f32[1,1024], index: 1, kind: input, shape index: {}]   ;;  %s11064_s2 = inlined_call_operand.vmem [shape: f32[25,8,1], index: 2, kind: input, shape index: {}]   ;;  %s11065_s3 = inlined_call_operand.vmem [shape: f32[8,1], index: 3, kind: input, shape index: {}]   ;;  %s11066_s4 = inlined_call_operand.vmem [shape: f32[9,16,8], index: 4, kind: input, shape index: {}]   ;;  %s11067_s5 = inlined_call_operand.vmem [shape: f32[16,1], index: 5, kind: input, shape index: {}]   ;;  %s11068_s6 = inlined_call_operand.vmem [shape: f32[9,16,1], index: 6, kind: input, shape index: {}]   ;;  %s11069_s7 = inlined_call_operand.<no memory space> [shape: f32[1,1], index: 7, kind: input, shape index: {}]   ;;  %s11070_s8 = inlined_call_operand.hbm [shape: f32[2,1,1024], index: 8, kind: output, shape index: {}]  }
   0x1   :  { %v13_v0 = vstv %s11069_s7 }
   0x2   :  { %14 = vst [vmem:[#allocation2] sm:$0x1] %v13_v0 }
   0x3   :  { %15 = vsyncpa [#allocation4], 0 }
   0x4   :  { %17 = vsyncpa [#allocation4 + $0x1], 0  ;;  %s7137_s29 = smov 0   ;;  %s7139_s30 = smov 0  }
   0x5   :  { %s7141_s9 = smov 0   ;;  %s7143_s10 = smov 0  }
   0x6 LB: > { %s7158_s7 = sadd.s32 4294967295, %s7059_s10   ;;  %s6621_s11 = sadd.s32 4294967294, %s7059_s10   ;;  %s7059_s10 = sphi %s7143_s10, %s11549_s10   ;;  %s7055_s9 = sphi %s7141_s9, %s11548_s9   ;;  %s7051_s30 = sphi %s7139_s30, %s11547_s30   ;;  %s7047_s29 = sphi %s7137_s29, %s11546_s29  }
   0x7   : > { %s7162_s12 = sadd.s32 1, %s7059_s10   ;;  %s203_s13 = sadd.s32 1, %s7055_s9 }
   0x8   : > { %s200_s14 = ssub.s32 %s7059_s10, %s7162_s12  ;;  %p213_p0 = scmp.ne.s32.totalorder %s7055_s9, %s7051_s30 }
   0x9   : > { %p201_p1 = scmp.eq.s32.totalorder %s200_s14, 0  ;;  %p214_p2 = scmp.eq.s32.totalorder %s7158_s7, 1 }
   0xa   : > { %p219_p3 = scmp.ne.s32.totalorder %s7051_s30, %s7047_s29  ;;  %p220_p4 = scmp.eq.s32.totalorder %s6621_s11, 1 }
   0xb   : > { %s7173_s15 = scalar_select %p201_p1, %s7055_s9, %s203_s13  }
   0xc   : > { %p7175_p5 = por %p214_p2, %p213_p0  ;;  %p7179_p6 = por %p220_p4, %p219_p3 }
   0xd   : > { %p6624_p7 = scmp.ge.s32.totalorder %s7059_s10, 1  ;;  %p266_p8 = scmp.lt.s32.totalorder %s7059_s10, 3 }
   0xf   : > { %p267_p9 = pnand %p6624_p7, %p266_p8 }
  0x11   : > { %270 = sbr.rel (%p267_p9) target bundleno = 1553 (0x611), region = 52 }
  0x18   : > { %p299_p10 = scmp.lt.s32.totalorder %s7158_s7, 1  ;;  %v11078_v1 = vlaneseq  ;;  %v7061_v2 = vmov 0   ;;  %s7062_s23 = smov 42   ;;  %v373_v21 = vld [vmem:[%s11064_s2] sm:$0xff]  ;;  %v6627_v22 = vld [vmem:[%s11064_s2 + $0x8] sm:$0xff]  ;;  %v6628_v23 = vld [vmem:[%s11064_s2 + $0x10] sm:$0xff] }
  0x19   : > { %6963 = vset.pattern.permute.xlu0 %v7061_v2  ;;  %6964 = vset.pattern.permute.xlu1 %v7061_v2  ;;  %s7063_s26 = smov 41   ;;  %s7064_s11 = smov 40   ;;  %v6629_v24 = vld [vmem:[%s11064_s2 + $0x18] sm:$0xff]  ;;  %v6630_v25 = vld [vmem:[%s11064_s2 + $0x20] sm:$0xff]  ;;  %v6631_v26 = vld [vmem:[%s11064_s2 + $0x28] sm:$0xff] }
  0x1a   : > { %s300_s18 = scalar_select %p299_p10, %s7158_s7, 1  ;;  %v7188_v3 = vshrl.u32 %v11078_v1, 7  ;;  %v6632_v30 = vld [vmem:[%s11064_s2 + $0x30] sm:$0xff]  ;;  %v6633_v37 = vld [vmem:[%s11064_s2 + $0x38] sm:$0xff]  ;;  %v6634_v47 = vld [vmem:[%s11064_s2 + $0x40] sm:$0xff] }
  0x1b   : > { %s7066_s21 = smov 38   ;;  %s7067_s24 = smov 22   ;;  %v6635_v54 = vld [vmem:[%s11064_s2 + $0x48] sm:$0xff]  ;;  %v6636_v2 = vld [vmem:[%s11064_s2 + $0x50] sm:$0xff] }
  0x1c   : > { %11237 = vst [vmem:[#allocation6_spill] sm:$0xff] %v7188_v3  ;;  %s6626_s19 = sshll.u32 %s300_s18, 3  ;;  %v7191_v4 = vsub.s32 0, %v7188_v3  ;;  %v11076_v5 = vsub.s32 2, %v7188_v3  ;;  %v11075_v6 = vsub.s32 3, %v7188_v3  ;;  %v11077_v7 = vsub.s32 1, %v7188_v3 }
  0x1d   : > { %s302_s22 = scalar_lea.vmem %s11062_s0, %s6626_s19  ;;  %v11072_v13 = vsub.s32 5, %v7188_v3  ;;  %v11073_v14 = vsub.s32 4, %v7188_v3  ;;  %v11074_v17 = vsub.s32 7, %v7188_v3  ;;  %v11071_v18 = vsub.s32 6, %v7188_v3  ;;  %s7065_s18 = smov 39  }
  0x1e   : > { %11238 = vst [vmem:[#allocation7_spill] sm:$0xff] %v7191_v4  ;;  %v304_v8 = vld [vmem:[%s302_s22] sm:$0xff]  ;;  %s7068_s27 = smov 21   ;;  %s7069_s13 = smov 20  }
  0x1f   : > { %v7201_v9 = vrot.slane %v304_v8, %v11076_v5  ;;  %v7204_v10 = vrot.slane %v304_v8, %v7191_v4  ;;  %v7210_v11 = vrot.slane %v304_v8, %v11075_v6  ;;  %v7214_v12 = vrot.slane %v304_v8, %v11077_v7  ;;  %s7070_s19 = smov 19   ;;  %s7071_s22 = smov 18   ;;  %v6639_v7 = vld [vmem:[%s11064_s2 + $0x68] sm:$0xff] }
  0x20   : > { %v7222_v15 = vrot.slane %v304_v8, %v11072_v13  ;;  %v7226_v16 = vrot.slane %v304_v8, %v11073_v14  ;;  %v7234_v19 = vrot.slane %v304_v8, %v11074_v17  ;;  %v7238_v20 = vrot.slane %v304_v8, %v11071_v18  ;;  %s7072_s25 = smov 2   ;;  %s7076_s14 = smov 110  }
  0x21   : > { %350 = vrot.lane.b32.xlu1 %v7201_v9, %s7062_s23  ;;  %346 = vrot.lane.b32.xlu0 %v7204_v10, %s7062_s23  ;;  %s7080_s28 = smov 106   ;;  %s7084_s20 = smov 87  }
  0x25   : > { %352 = vrot.lane.b32.xlu1 %v7210_v11, %s7062_s23  ;;  %348 = vrot.lane.b32.xlu0 %v7214_v12, %s7062_s23 }
  0x29   : > { %356 = vrot.lane.b32.xlu1 %v7222_v15, %s7062_s23  ;;  %354 = vrot.lane.b32.xlu0 %v7226_v16, %s7062_s23 }
  0x2d   : > { %360 = vrot.lane.b32.xlu1 %v7234_v19, %s7062_s23  ;;  %358 = vrot.lane.b32.xlu0 %v7238_v20, %s7062_s23  ;;  %s7081_s23 = smov 90  }
  0x31   : > { %427 = vrot.lane.b32.xlu1 %v7204_v10, %s7063_s26  ;;  %376 = vperm.xlu0 %6963, %v373_v21  }
  0x35   : > { %429 = vrot.lane.b32.xlu1 %v7214_v12, %s7063_s26  ;;  %431 = vrot.lane.b32.xlu0 %v7201_v9, %s7063_s26 }
  0x39   : > { %433 = vrot.lane.b32.xlu1 %v7210_v11, %s7063_s26  ;;  %435 = vrot.lane.b32.xlu0 %v7226_v16, %s7063_s26 }
  0x3d   : > { %437 = vrot.lane.b32.xlu1 %v7222_v15, %s7063_s26  ;;  %439 = vrot.lane.b32.xlu0 %v7238_v20, %s7063_s26 }
  0x41   : > { %441 = vrot.lane.b32.xlu1 %v7234_v19, %s7063_s26  ;;  %456 = vperm.xlu0 %6963, %v6627_v22   ;;  %s7083_s26 = smov 88  }
  0x45   : > { %507 = vrot.lane.b32.xlu1 %v7204_v10, %s7064_s11  ;;  %509 = vrot.lane.b32.xlu0 %v7214_v12, %s7064_s11 }
  0x49   : > { %511 = vrot.lane.b32.xlu1 %v7201_v9, %s7064_s11  ;;  %513 = vrot.lane.b32.xlu0 %v7210_v11, %s7064_s11 }
  0x4d   : > { %515 = vrot.lane.b32.xlu1 %v7226_v16, %s7064_s11  ;;  %517 = vrot.lane.b32.xlu0 %v7222_v15, %s7064_s11 }
  0x51   : > { %519 = vrot.lane.b32.xlu1 %v7238_v20, %s7064_s11  ;;  %521 = vrot.lane.b32.xlu0 %v7234_v19, %s7064_s11  ;;  %s7073_s11 = smov 1  }
  0x55   : > { %536 = vperm.xlu1 %6964, %v6628_v23   ;;  %587 = vrot.lane.b32.xlu0 %v7204_v10, %s7065_s18 }
  0x59   : > { %589 = vrot.lane.b32.xlu1 %v7214_v12, %s7065_s18  ;;  %591 = vrot.lane.b32.xlu0 %v7201_v9, %s7065_s18 }
  0x5d   : > { %593 = vrot.lane.b32.xlu1 %v7210_v11, %s7065_s18  ;;  %595 = vrot.lane.b32.xlu0 %v7226_v16, %s7065_s18 }
  0x61   : > { %597 = vrot.lane.b32.xlu1 %v7222_v15, %s7065_s18  ;;  %599 = vrot.lane.b32.xlu0 %v7238_v20, %s7065_s18 }
  0x65   : > { %601 = vrot.lane.b32.xlu1 %v7234_v19, %s7065_s18  ;;  %616 = vperm.xlu0 %6963, %v6629_v24   ;;  %s7078_s18 = smov 108  }
  0x69   : > { %667 = vrot.lane.b32.xlu1 %v7204_v10, %s7066_s21  ;;  %669 = vrot.lane.b32.xlu0 %v7214_v12, %s7066_s21 }
  0x6d   : > { %671 = vrot.lane.b32.xlu1 %v7201_v9, %s7066_s21  ;;  %673 = vrot.lane.b32.xlu0 %v7210_v11, %s7066_s21 }
  0x71   : > { %675 = vrot.lane.b32.xlu1 %v7226_v16, %s7066_s21  ;;  %677 = vrot.lane.b32.xlu0 %v7222_v15, %s7066_s21 }
  0x75   : > { %679 = vrot.lane.b32.xlu1 %v7238_v20, %s7066_s21  ;;  %681 = vrot.lane.b32.xlu0 %v7234_v19, %s7066_s21  ;;  %s7077_s21 = smov 109  }
  0x79   : > { %696 = vperm.xlu1 %6964, %v6630_v25   ;;  %747 = vrot.lane.b32.xlu0 %v7204_v10, %s7067_s24 }
  0x7d   : > { %749 = vrot.lane.b32.xlu1 %v7214_v12, %s7067_s24  ;;  %751 = vrot.lane.b32.xlu0 %v7201_v9, %s7067_s24 }
  0x81   : > { %753 = vrot.lane.b32.xlu1 %v7210_v11, %s7067_s24  ;;  %755 = vrot.lane.b32.xlu0 %v7226_v16, %s7067_s24 }
  0x85   : > { %757 = vrot.lane.b32.xlu1 %v7222_v15, %s7067_s24  ;;  %759 = vrot.lane.b32.xlu0 %v7238_v20, %s7067_s24 }
  0x89   : > { %761 = vrot.lane.b32.xlu1 %v7234_v19, %s7067_s24  ;;  %776 = vperm.xlu0 %6963, %v6631_v26   ;;  %s7079_s24 = smov 107  }
  0x8d   : > { %827 = vrot.lane.b32.xlu1 %v7204_v10, %s7068_s27  ;;  %829 = vrot.lane.b32.xlu0 %v7214_v12, %s7068_s27 }
  0x91   : > { %831 = vrot.lane.b32.xlu1 %v7201_v9, %s7068_s27  ;;  %833 = vrot.lane.b32.xlu0 %v7210_v11, %s7068_s27 }
  0x93   : > { %v7308_v27 = vpop.permute.xlu1 %350  ;;  %v7320_v29 = vpop.permute.xlu0 %346 }
  0x95   : > { %835 = vrot.lane.b32.xlu1 %v7226_v16, %s7068_s27  ;;  %837 = vrot.lane.b32.xlu0 %v7222_v15, %s7068_s27 }
  0x97   : > { %v7314_v28 = vpop.permute.xlu1 %352  ;;  %v7331_v33 = vpop.permute.xlu0 %348 }
  0x99   : > { %839 = vrot.lane.b32.xlu1 %v7238_v20, %s7068_s27  ;;  %841 = vrot.lane.b32.xlu0 %v7234_v19, %s7068_s27 }
  0x9b   : > { %v7325_v31 = vpop.permute.xlu1 %356  ;;  %v7343_v35 = vpop.permute.xlu0 %354 }
  0x9d   : > { %856 = vperm.xlu1 %6964, %v6632_v30   ;;  %907 = vrot.lane.b32.xlu0 %v7204_v10, %s7069_s13 }
  0x9f   : > { %v7329_v32 = vpop.permute.xlu1 %360  ;;  %v7354_v38 = vpop.permute.xlu0 %358 }
  0xa1   : > { %909 = vrot.lane.b32.xlu1 %v7214_v12, %s7069_s13  ;;  %911 = vrot.lane.b32.xlu0 %v7201_v9, %s7069_s13 }
  0xa3   : > { %v7337_v34 = vpop.permute.xlu1 %427 }
  0xa5   : > { %913 = vrot.lane.b32.xlu1 %v7210_v11, %s7069_s13  ;;  %915 = vrot.lane.b32.xlu0 %v7226_v16, %s7069_s13 }
  0xa7   : > { %v7345_v36 = vpop.permute.xlu1 %429 }
  0xa9   : > { %917 = vrot.lane.b32.xlu1 %v7222_v15, %s7069_s13  ;;  %919 = vrot.lane.b32.xlu0 %v7238_v20, %s7069_s13 }
  0xab   : > { %v7356_v39 = vpop.permute.xlu1 %433 }
  0xad   : > { %921 = vrot.lane.b32.xlu1 %v7234_v19, %s7069_s13  ;;  %936 = vperm.xlu0 %6963, %v6633_v37   ;;  %v6637_v37 = vld [vmem:[%s11064_s2 + $0x58] sm:$0xff] }
  0xaf   : > { %v7364_v41 = vpop.permute.xlu1 %437 }
  0xb0   : > { %v7360_v40 = vpop.permute.xlu0 %376 }
  0xb1   : > { %987 = vrot.lane.b32.xlu1 %v7204_v10, %s7070_s19  ;;  %989 = vrot.lane.b32.xlu0 %v7214_v12, %s7070_s19 }
  0xb3   : > { %v7374_v43 = vpop.permute.xlu1 %441 }
  0xb4   : > { %v7368_v42 = vpop.permute.xlu0 %431 }
  0xb5   : > { %991 = vrot.lane.b32.xlu1 %v7201_v9, %s7070_s19  ;;  %993 = vrot.lane.b32.xlu0 %v7210_v11, %s7070_s19 }
  0xb7   : > { %v7386_v46 = vpop.permute.xlu1 %507 }
  0xb8   : > { %v7376_v44 = vpop.permute.xlu0 %435 }
  0xb9   : > { %995 = vrot.lane.b32.xlu1 %v7226_v16, %s7070_s19  ;;  %997 = vrot.lane.b32.xlu0 %v7222_v15, %s7070_s19 }
  0xbb   : > { %v7396_v49 = vpop.permute.xlu1 %511 }
  0xbc   : > { %v7382_v45 = vpop.permute.xlu0 %439 }
  0xbd   : > { %999 = vrot.lane.b32.xlu1 %v7238_v20, %s7070_s19  ;;  %1001 = vrot.lane.b32.xlu0 %v7234_v19, %s7070_s19 }
  0xbf   : > { %v7405_v52 = vpop.permute.xlu1 %515 }
  0xc0   : > { %v7393_v48 = vpop.permute.xlu0 %456 }
  0xc1   : > { %1016 = vperm.xlu1 %6964, %v6634_v47   ;;  %1067 = vrot.lane.b32.xlu0 %v7204_v10, %s7071_s22 }
  0xc3   : > { %v7415_v55 = vpop.permute.xlu1 %519 }
  0xc4   : > { %v7398_v50 = vpop.permute.xlu0 %509 }
  0xc5   : > { %1069 = vrot.lane.b32.xlu1 %v7214_v12, %s7071_s22  ;;  %1071 = vrot.lane.b32.xlu0 %v7201_v9, %s7071_s22 }
  0xc8   : > { %v7402_v51 = vpop.permute.xlu0 %513 }
  0xc9   : > { %1073 = vrot.lane.b32.xlu1 %v7210_v11, %s7071_s22  ;;  %1075 = vrot.lane.b32.xlu0 %v7226_v16, %s7071_s22 }
  0xcc   : > { %v7408_v53 = vpop.permute.xlu0 %517 }
  0xcd   : > { %1077 = vrot.lane.b32.xlu1 %v7222_v15, %s7071_s22  ;;  %1079 = vrot.lane.b32.xlu0 %v7238_v20, %s7071_s22 }
  0xd0   : > { %v7417_v56 = vpop.permute.xlu0 %521 }
  0xd1   : > { %1081 = vrot.lane.b32.xlu1 %v7234_v19, %s7071_s22  ;;  %1096 = vperm.xlu0 %6963, %v6635_v54   ;;  %s7074_s22 = smov 127  }
  0xd4   : > { %v7420_v57 = vpop.permute.xlu1 %536  ;;  %v7422_v58 = vpop.permute.xlu0 %587 }
  0xd5   : > { %1147 = vrot.lane.b32.xlu1 %v7204_v10, %s7072_s25  ;;  %1149 = vrot.lane.b32.xlu0 %v7214_v12, %s7072_s25 }
  0xd8   : > { %v7426_v59 = vpop.permute.xlu1 %589  ;;  %v7428_v60 = vpop.permute.xlu0 %591 }
  0xd9   : > { %1151 = vrot.lane.b32.xlu1 %v7201_v9, %s7072_s25  ;;  %1153 = vrot.lane.b32.xlu0 %v7210_v11, %s7072_s25 }
  0xdc   : > { %v7432_v61 = vpop.permute.xlu1 %593  ;;  %v7434_v62 = vpop.permute.xlu0 %595 }
  0xdd   : > { %1155 = vrot.lane.b32.xlu1 %v7226_v16, %s7072_s25  ;;  %1157 = vrot.lane.b32.xlu0 %v7222_v15, %s7072_s25 }
  0xe0   : > { %v7438_v63 = vpop.permute.xlu1 %597  ;;  %v7440_v0 = vpop.permute.xlu0 %599 }
  0xe1   : > { %1159 = vrot.lane.b32.xlu1 %v7238_v20, %s7072_s25  ;;  %1161 = vrot.lane.b32.xlu0 %v7234_v19, %s7072_s25  ;;  %s7075_s25 = smov 126  }
  0xe4   : > { %v7447_v8 = vpop.permute.xlu1 %601  ;;  %v7449_v21 = vpop.permute.xlu0 %616 }
  0xe5   : > { %1176 = vperm.xlu1 %6964, %v6636_v2   ;;  %1227 = vrot.lane.b32.xlu0 %v7204_v10, %s7073_s11  ;;  %v6638_v2 = vld [vmem:[%s11064_s2 + $0x60] sm:$0xff] }
  0xe8   : > { %v7453_v22 = vpop.permute.xlu1 %667  ;;  %v7455_v23 = vpop.permute.xlu0 %669 }
  0xe9   : > { %1229 = vrot.lane.b32.xlu1 %v7214_v12, %s7073_s11  ;;  %1231 = vrot.lane.b32.xlu0 %v7201_v9, %s7073_s11 }
  0xec   : > { %v7461_v24 = vpop.permute.xlu1 %671  ;;  %v7463_v25 = vpop.permute.xlu0 %673 }
  0xed   : > { %1233 = vrot.lane.b32.xlu1 %v7210_v11, %s7073_s11  ;;  %1235 = vrot.lane.b32.xlu0 %v7226_v16, %s7073_s11 }
  0xf0   : > { %v7469_v26 = vpop.permute.xlu1 %675  ;;  %v7471_v30 = vpop.permute.xlu0 %677 }
  0xf1   : > { %1237 = vrot.lane.b32.xlu1 %v7222_v15, %s7073_s11  ;;  %1239 = vrot.lane.b32.xlu0 %v7238_v20, %s7073_s11 }
  0xf4   : > { %v7480_v47 = vpop.permute.xlu1 %679  ;;  %v7482_v54 = vpop.permute.xlu0 %681 }
  0xf5   : > { %1241 = vrot.lane.b32.xlu1 %v7234_v19, %s7073_s11  ;;  %1256 = vperm.xlu0 %6963, %v6637_v37  }
  0xf8   : > { %v7489_v18 = vpop.permute.xlu1 %696  ;;  %v7491_v13 = vpop.permute.xlu0 %747 }
  0xf9   : > { %11239 = vst [vmem:[#allocation8_spill] sm:$0xff] %v7489_v18  ;;  %11240 = vst [vmem:[#allocation9_spill] sm:$0xff] %v7491_v13  ;;  %1311 = vperm.xlu1 %6964, %v6638_v2   ;;  %1330 = vrot.lane.b32.xlu0 %v7204_v10, %s7074_s22 }
  0xfc   : > { %v7495_v14 = vpop.permute.xlu1 %749  ;;  %v7497_v17 = vpop.permute.xlu0 %751 }
  0xfd   : > { %11241 = vst [vmem:[#allocation10_spill] sm:$0xff] %v7495_v14  ;;  %11242 = vst [vmem:[#allocation11_spill] sm:$0xff] %v7497_v17  ;;  %1332 = vrot.lane.b32.xlu1 %v7214_v12, %s7074_s22  ;;  %1334 = vrot.lane.b32.xlu0 %v7201_v9, %s7074_s22 }
 0x100   : > { %v7503_v37 = vpop.permute.xlu1 %753  ;;  %v7505_v6 = vpop.permute.xlu0 %755 }
 0x101   : > { %11243 = vst [vmem:[#allocation12_spill] sm:$0xff] %v7503_v37  ;;  %11244 = vst [vmem:[#allocation13_spill] sm:$0xff] %v7505_v6  ;;  %1336 = vrot.lane.b32.xlu1 %v7210_v11, %s7074_s22  ;;  %1338 = vrot.lane.b32.xlu0 %v7226_v16, %s7074_s22 }
 0x104   : > { %v7511_v2 = vpop.permute.xlu1 %757  ;;  %v7513_v5 = vpop.permute.xlu0 %759 }
 0x105   : > { %11245 = vst [vmem:[#allocation14_spill] sm:$0xff] %v7511_v2  ;;  %11246 = vst [vmem:[#allocation15_spill] sm:$0xff] %v7513_v5  ;;  %1340 = vrot.lane.b32.xlu1 %v7222_v15, %s7074_s22  ;;  %1342 = vrot.lane.b32.xlu0 %v7238_v20, %s7074_s22 }
 0x108   : > { %v7522_v1 = vpop.permute.xlu1 %761  ;;  %v7524_v3 = vpop.permute.xlu0 %776 }
 0x109   : > { %11247 = vst [vmem:[#allocation16_spill] sm:$0xff] %v7522_v1  ;;  %11248 = vst [vmem:[#allocation17_spill] sm:$0xff] %v7524_v3  ;;  %1344 = vrot.lane.b32.xlu1 %v7234_v19, %s7074_s22  ;;  %1359 = vperm.xlu0 %6963, %v6639_v7  }
 0x10c   : > { %v7528_v2 = vpop.permute.xlu1 %827  ;;  %v7530_v5 = vpop.permute.xlu0 %829 }
 0x10d   : > { %11249 = vst [vmem:[#allocation18_spill] sm:$0xff] %v7528_v2  ;;  %11250 = vst [vmem:[#allocation19_spill] sm:$0xff] %v7530_v5  ;;  %1410 = vrot.lane.b32.xlu1 %v7204_v10, %s7075_s25  ;;  %1412 = vrot.lane.b32.xlu0 %v7214_v12, %s7075_s25 }
 0x110   : > { %v7534_v6 = vpop.permute.xlu1 %831  ;;  %v7536_v37 = vpop.permute.xlu0 %833 }
 0x111   : > { %11251 = vst [vmem:[#allocation20_spill] sm:$0xff] %v7534_v6  ;;  %11252 = vst [vmem:[#allocation21_spill] sm:$0xff] %v7536_v37  ;;  %1414 = vrot.lane.b32.xlu1 %v7201_v9, %s7075_s25  ;;  %1416 = vrot.lane.b32.xlu0 %v7210_v11, %s7075_s25  ;;  %v6640_v37 = vld [vmem:[%s11064_s2 + $0x70] sm:$0xff] }
 0x114   : > { %v7540_v3 = vpop.permute.xlu1 %835  ;;  %v7542_v7 = vpop.permute.xlu0 %837 }
 0x115   : > { %11253 = vst [vmem:[#allocation22_spill] sm:$0xff] %v7540_v3  ;;  %11254 = vst [vmem:[#allocation23_spill] sm:$0xff] %v7542_v7  ;;  %1418 = vrot.lane.b32.xlu1 %v7226_v16, %s7075_s25  ;;  %1420 = vrot.lane.b32.xlu0 %v7222_v15, %s7075_s25 }
 0x118   : > { %v7546_v5 = vpop.permute.xlu1 %839  ;;  %v7548_v2 = vpop.permute.xlu0 %841 }
 0x119   : > { %11255 = vst [vmem:[#allocation24_spill] sm:$0xff] %v7546_v5  ;;  %11256 = vst [vmem:[#allocation25_spill] sm:$0xff] %v7548_v2  ;;  %1422 = vrot.lane.b32.xlu1 %v7238_v20, %s7075_s25  ;;  %1424 = vrot.lane.b32.xlu0 %v7234_v19, %s7075_s25 }
 0x11c   : > { %v7555_v6 = vpop.permute.xlu1 %856  ;;  %v7557_v3 = vpop.permute.xlu0 %907 }
 0x11d   : > { %11257 = vst [vmem:[#allocation26_spill] sm:$0xff] %v7555_v6  ;;  %11258 = vst [vmem:[#allocation27_spill] sm:$0xff] %v7557_v3  ;;  %1439 = vperm.xlu1 %6964, %v6640_v37   ;;  %1490 = vrot.lane.b32.xlu0 %v7204_v10, %s7076_s14 }
 0x120   : > { %v7560_v7 = vpop.permute.xlu1 %909  ;;  %v7562_v5 = vpop.permute.xlu0 %911 }
 0x121   : > { %11259 = vst [vmem:[#allocation28_spill] sm:$0xff] %v7560_v7  ;;  %11260 = vst [vmem:[#allocation29_spill] sm:$0xff] %v7562_v5  ;;  %1492 = vrot.lane.b32.xlu1 %v7214_v12, %s7076_s14  ;;  %1494 = vrot.lane.b32.xlu0 %v7201_v9, %s7076_s14  ;;  %v6641_v5 = vld [vmem:[%s11064_s2 + $0x78] sm:$0xff] }
 0x124   : > { %v7566_v2 = vpop.permute.xlu1 %913  ;;  %v7568_v1 = vpop.permute.xlu0 %915 }
 0x125   : > { %11261 = vst [vmem:[#allocation30_spill] sm:$0xff] %v7566_v2  ;;  %11262 = vst [vmem:[#allocation31_spill] sm:$0xff] %v7568_v1  ;;  %1496 = vrot.lane.b32.xlu1 %v7210_v11, %s7076_s14  ;;  %1498 = vrot.lane.b32.xlu0 %v7226_v16, %s7076_s14 }
 0x128   : > { %v7572_v37 = vpop.permute.xlu1 %917  ;;  %v7574_v3 = vpop.permute.xlu0 %919 }
 0x129   : > { %11263 = vst [vmem:[#allocation32_spill] sm:$0xff] %v7572_v37  ;;  %11264 = vst [vmem:[#allocation33_spill] sm:$0xff] %v7574_v3  ;;  %1500 = vrot.lane.b32.xlu1 %v7222_v15, %s7076_s14  ;;  %1502 = vrot.lane.b32.xlu0 %v7238_v20, %s7076_s14 }
 0x12c   : > { %v7581_v7 = vpop.permute.xlu1 %921  ;;  %v7583_v2 = vpop.permute.xlu0 %936 }
 0x12d   : > { %11265 = vst [vmem:[#allocation34_spill] sm:$0xff] %v7581_v7  ;;  %11266 = vst [vmem:[#allocation35_spill] sm:$0xff] %v7583_v2  ;;  %1504 = vrot.lane.b32.xlu1 %v7234_v19, %s7076_s14  ;;  %1519 = vperm.xlu0 %6963, %v6641_v5   ;;  %s7082_s14 = smov 89  }
 0x130   : > { %v7586_v1 = vpop.permute.xlu1 %987  ;;  %v7588_v37 = vpop.permute.xlu0 %989 }
 0x131   : > { %11267 = vst [vmem:[#allocation36_spill] sm:$0xff] %v7586_v1  ;;  %11268 = vst [vmem:[#allocation37_spill] sm:$0xff] %v7588_v37  ;;  %1570 = vrot.lane.b32.xlu1 %v7204_v10, %s7077_s21  ;;  %1572 = vrot.lane.b32.xlu0 %v7214_v12, %s7077_s21 }
 0x134   : > { %v7594_v3 = vpop.permute.xlu1 %991  ;;  %v7596_v6 = vpop.permute.xlu0 %993 }
 0x135   : > { %11269 = vst [vmem:[#allocation38_spill] sm:$0xff] %v7594_v3  ;;  %11270 = vst [vmem:[#allocation39_spill] sm:$0xff] %v7596_v6  ;;  %1574 = vrot.lane.b32.xlu1 %v7201_v9, %s7077_s21  ;;  %1576 = vrot.lane.b32.xlu0 %v7210_v11, %s7077_s21  ;;  %v6642_v6 = vld [vmem:[%s11064_s2 + $0x80] sm:$0xff]  ;;  %v6643_v3 = vld [vmem:[%s11064_s2 + $0x88] sm:$0xff] }
 0x138   : > { %v7602_v5 = vpop.permute.xlu1 %995  ;;  %v7604_v37 = vpop.permute.xlu0 %997 }
 0x139   : > { %11271 = vst [vmem:[#allocation40_spill] sm:$0xff] %v7602_v5  ;;  %11272 = vst [vmem:[#allocation41_spill] sm:$0xff] %v7604_v37  ;;  %1578 = vrot.lane.b32.xlu1 %v7226_v16, %s7077_s21  ;;  %1580 = vrot.lane.b32.xlu0 %v7222_v15, %s7077_s21  ;;  %v6644_v37 = vld [vmem:[%s11064_s2 + $0x90] sm:$0xff] }
 0x13c   : > { %v7616_v1 = vpop.permute.xlu1 %999  ;;  %v7618_v2 = vpop.permute.xlu0 %1001 }
 0x13d   : > { %11273 = vst [vmem:[#allocation42_spill] sm:$0xff] %v7616_v1  ;;  %11274 = vst [vmem:[#allocation43_spill] sm:$0xff] %v7618_v2  ;;  %1599 = vperm.xlu1 %6964, %v6642_v6   ;;  %1679 = vperm.xlu0 %6963, %v6643_v3  }
 0x140   : > { %v7623_v5 = vpop.permute.xlu1 %1016  ;;  %v7625_v7 = vpop.permute.xlu0 %1067 }
 0x141   : > { %11275 = vst [vmem:[#allocation44_spill] sm:$0xff] %v7623_v5  ;;  %11276 = vst [vmem:[#allocation45_spill] sm:$0xff] %v7625_v7  ;;  %1759 = vperm.xlu1 %6964, %v6644_v37   ;;  %1584 = vrot.lane.b32.xlu0 %v7234_v19, %s7077_s21  ;;  %v6645_v37 = vld [vmem:[%s11064_s2 + $0x98] sm:$0xff] }
 0x144   : > { %v7629_v17 = vpop.permute.xlu1 %1069  ;;  %v7631_v13 = vpop.permute.xlu0 %1071 }
 0x145   : > { %11277 = vst [vmem:[#allocation46_spill] sm:$0xff] %v7629_v17  ;;  %11278 = vst [vmem:[#allocation47_spill] sm:$0xff] %v7631_v13  ;;  %1650 = vrot.lane.b32.xlu1 %v7204_v10, %s7078_s18  ;;  %1652 = vrot.lane.b32.xlu0 %v7214_v12, %s7078_s18 }
 0x148   : > { %v7637_v3 = vpop.permute.xlu1 %1073  ;;  %v7639_v6 = vpop.permute.xlu0 %1075 }
 0x149   : > { %11279 = vst [vmem:[#allocation48_spill] sm:$0xff] %v7637_v3  ;;  %11280 = vst [vmem:[#allocation49_spill] sm:$0xff] %v7639_v6  ;;  %1654 = vrot.lane.b32.xlu1 %v7201_v9, %s7078_s18  ;;  %1656 = vrot.lane.b32.xlu0 %v7210_v11, %s7078_s18 }
 0x14c   : > { %v7648_v13 = vpop.permute.xlu1 %1077  ;;  %v7650_v7 = vpop.permute.xlu0 %1079 }
 0x14d   : > { %11281 = vst [vmem:[#allocation50_spill] sm:$0xff] %v7648_v13  ;;  %11282 = vst [vmem:[#allocation51_spill] sm:$0xff] %v7650_v7  ;;  %1658 = vrot.lane.b32.xlu1 %v7226_v16, %s7078_s18  ;;  %1839 = vperm.xlu0 %6963, %v6645_v37  }
 0x150   : > { %v7654_v3 = vpop.permute.xlu1 %1081  ;;  %v7656_v6 = vpop.permute.xlu0 %1096 }
 0x151   : > { %11283 = vst [vmem:[#allocation52_spill] sm:$0xff] %v7654_v3  ;;  %11284 = vst [vmem:[#allocation53_spill] sm:$0xff] %v7656_v6  ;;  %1664 = vrot.lane.b32.xlu1 %v7234_v19, %s7078_s18  ;;  %1730 = vrot.lane.b32.xlu0 %v7204_v10, %s7079_s24 }
 0x154   : > { %v7662_v17 = vpop.permute.xlu1 %1147  ;;  %v7664_v13 = vpop.permute.xlu0 %1149 }
 0x155   : > { %11285 = vst [vmem:[#allocation54_spill] sm:$0xff] %v7662_v17  ;;  %11286 = vst [vmem:[#allocation55_spill] sm:$0xff] %v7664_v13  ;;  %1732 = vrot.lane.b32.xlu1 %v7214_v12, %s7079_s24  ;;  %1734 = vrot.lane.b32.xlu0 %v7201_v9, %s7079_s24  ;;  %v6646_v13 = vld [vmem:[%s11064_s2 + $0xa0] sm:$0xff] }
 0x158   : > { %v7670_v37 = vpop.permute.xlu1 %1151  ;;  %v7672_v6 = vpop.permute.xlu0 %1153 }
 0x159   : > { %11287 = vst [vmem:[#allocation56_spill] sm:$0xff] %v7670_v37  ;;  %11288 = vst [vmem:[#allocation57_spill] sm:$0xff] %v7672_v6  ;;  %1736 = vrot.lane.b32.xlu1 %v7210_v11, %s7079_s24  ;;  %1738 = vrot.lane.b32.xlu0 %v7226_v16, %s7079_s24 }
 0x15c   : > { %v7681_v17 = vpop.permute.xlu1 %1155  ;;  %v7683_v3 = vpop.permute.xlu0 %1157 }
 0x15d   : > { %11289 = vst [vmem:[#allocation58_spill] sm:$0xff] %v7681_v17  ;;  %11290 = vst [vmem:[#allocation59_spill] sm:$0xff] %v7683_v3  ;;  %1919 = vperm.xlu1 %6964, %v6646_v13   ;;  %1744 = vrot.lane.b32.xlu0 %v7234_v19, %s7079_s24  ;;  %v6647_v13 = vld [vmem:[%s11064_s2 + $0xa8] sm:$0xff] }
 0x160   : > { %v7687_v37 = vpop.permute.xlu1 %1159  ;;  %v7689_v6 = vpop.permute.xlu0 %1161 }
 0x161   : > { %11291 = vst [vmem:[#allocation60_spill] sm:$0xff] %v7687_v37  ;;  %11292 = vst [vmem:[#allocation61_spill] sm:$0xff] %v7689_v6  ;;  %1810 = vrot.lane.b32.xlu1 %v7204_v10, %s7080_s28  ;;  %1812 = vrot.lane.b32.xlu0 %v7214_v12, %s7080_s28 }
 0x164   : > { %v7695_v7 = vpop.permute.xlu1 %1176  ;;  %v7697_v17 = vpop.permute.xlu0 %1227 }
 0x165   : > { %11293 = vst [vmem:[#allocation62_spill] sm:$0xff] %v7695_v7  ;;  %11294 = vst [vmem:[#allocation63_spill] sm:$0xff] %v7697_v17  ;;  %1814 = vrot.lane.b32.xlu1 %v7201_v9, %s7080_s28  ;;  %1816 = vrot.lane.b32.xlu0 %v7210_v11, %s7080_s28 }
 0x168   : > { %v7706_v3 = vpop.permute.xlu1 %1229  ;;  %v7708_v37 = vpop.permute.xlu0 %1231 }
 0x169   : > { %11295 = vst [vmem:[#allocation64_spill] sm:$0xff] %v7706_v3  ;;  %11296 = vst [vmem:[#allocation65_spill] sm:$0xff] %v7708_v37  ;;  %1818 = vrot.lane.b32.xlu1 %v7226_v16, %s7080_s28  ;;  %1999 = vperm.xlu0 %6963, %v6647_v13  }
 0x16c   : > { %v7712_v7 = vpop.permute.xlu1 %1233  ;;  %v7714_v17 = vpop.permute.xlu0 %1235 }
 0x16d   : > { %11297 = vst [vmem:[#allocation66_spill] sm:$0xff] %v7712_v7  ;;  %11298 = vst [vmem:[#allocation67_spill] sm:$0xff] %v7714_v17  ;;  %1824 = vrot.lane.b32.xlu1 %v7234_v19, %s7080_s28  ;;  %1582 = vrot.lane.b32.xlu0 %v7238_v20, %s7077_s21  ;;  %v6648_v17 = vld [vmem:[%s11064_s2 + $0xb0] sm:$0xff] }
 0x170   : > { %v7720_v6 = vpop.permute.xlu1 %1237  ;;  %v7722_v5 = vpop.permute.xlu0 %1239 }
 0x171   : > { %11299 = vst [vmem:[#allocation68_spill] sm:$0xff] %v7720_v6  ;;  %11300 = vst [vmem:[#allocation69_spill] sm:$0xff] %v7722_v5  ;;  %1890 = vrot.lane.b32.xlu1 %v7204_v10, %s7081_s23  ;;  %1892 = vrot.lane.b32.xlu0 %v7214_v12, %s7081_s23 }
 0x174   : > { %v7728_v13 = vpop.permute.xlu1 %1241  ;;  %v7730_v7 = vpop.permute.xlu0 %1256 }
 0x175   : > { %11301 = vst [vmem:[#allocation70_spill] sm:$0xff] %v7728_v13  ;;  %11302 = vst [vmem:[#allocation71_spill] sm:$0xff] %v7730_v7  ;;  %1894 = vrot.lane.b32.xlu1 %v7201_v9, %s7081_s23  ;;  %1896 = vrot.lane.b32.xlu0 %v7210_v11, %s7081_s23 }
 0x178   : > { %v7739_v6 = vpop.permute.xlu1 %1311  ;;  %v7741_v37 = vpop.permute.xlu0 %1330 }
 0x179   : > { %11303 = vst [vmem:[#allocation72_spill] sm:$0xff] %v7739_v6  ;;  %11304 = vst [vmem:[#allocation73_spill] sm:$0xff] %v7741_v37  ;;  %1898 = vrot.lane.b32.xlu1 %v7226_v16, %s7081_s23  ;;  %2079 = vperm.xlu0 %6963, %v6648_v17   ;;  %v11311_v37 = vlaneseq }
 0x17c   : > { %v7745_v3 = vpop.permute.xlu1 %1332  ;;  %v7747_v7 = vpop.permute.xlu0 %1334 }
 0x17d   : > { %11305 = vst [vmem:[#allocation74_spill] sm:$0xff] %v7745_v3  ;;  %11306 = vst [vmem:[#allocation75_spill] sm:$0xff] %v7747_v7  ;;  %1904 = vrot.lane.b32.xlu1 %v7234_v19, %s7081_s23  ;;  %1660 = vrot.lane.b32.xlu0 %v7222_v15, %s7078_s18  ;;  %v7768_v3 = vand.u32 127, %v11311_v37  ;;  %v6649_v37 = vld [vmem:[%s11064_s2 + $0xb8] sm:$0xff] }
 0x17f   : > { %vm364_vm0 = vcmp.lt.s32.totalorder %v7768_v3, 42  ;;  %vm443_vm1 = vcmp.lt.s32.totalorder %v7768_v3, 41  ;;  %vm523_vm2 = vcmp.lt.s32.totalorder %v7768_v3, 40  ;;  %vm603_vm3 = vcmp.lt.s32.totalorder %v7768_v3, 39 }
 0x180   : > { %v7753_v5 = vpop.permute.xlu1 %1336  ;;  %v7755_v13 = vpop.permute.xlu0 %1338  ;;  %v371_v6 = vsel %vm364_vm0, %v7320_v29, %v7331_v33  ;;  %vm683_vm4 = vcmp.lt.s32.totalorder %v7768_v3, 38  ;;  %vm763_vm5 = vcmp.lt.s32.totalorder %v7768_v3, 22  ;;  %vm843_vm6 = vcmp.lt.s32.totalorder %v7768_v3, 21 }
 0x181   : > { %11307 = vst [vmem:[#allocation76_spill] sm:$0xff] %v7753_v5  ;;  %11308 = vst [vmem:[#allocation77_spill] sm:$0xff] %v7755_v13  ;;  %1662 = vrot.lane.b32.xlu1 %v7238_v20, %s7078_s18  ;;  %1970 = vrot.lane.b32.xlu0 %v7204_v10, %s7082_s14  ;;  %vm923_vm7 = vcmp.lt.s32.totalorder %v7768_v3, 20  ;;  %vm1003_vm8 = vcmp.lt.s32.totalorder %v7768_v3, 19  ;;  %vm1083_vm9 = vcmp.lt.s32.totalorder %v7768_v3, 18  ;;  %vm1163_vm10 = vcmp.lt.s32.totalorder %v7768_v3, 2 }
 0x182   : > { %vm1243_vm11 = vcmp.lt.s32.totalorder %v7768_v3, 1  ;;  %vm1346_vm12 = vcmp.lt.s32.totalorder %v7768_v3, 127  ;;  %vm1426_vm13 = vcmp.lt.s32.totalorder %v7768_v3, 126  ;;  %vm1506_vm14 = vcmp.lt.s32.totalorder %v7768_v3, 110 }
 0x183   : > { %vm1586_vm15 = vcmp.lt.s32.totalorder %v7768_v3, 109 }
 0x184   : > { %v7761_v17 = vpop.permute.xlu1 %1340  ;;  %v7763_v7 = vpop.permute.xlu0 %1342 }
 0x185   : > { %11309 = vst [vmem:[#allocation78_spill] sm:$0xff] %v7761_v17  ;;  %11310 = vst [vmem:[#allocation79_spill] sm:$0xff] %v7763_v7  ;;  %1972 = vrot.lane.b32.xlu1 %v7214_v12, %s7082_s14  ;;  %1974 = vrot.lane.b32.xlu0 %v7201_v9, %s7082_s14  ;;  %v370_v17 = vsel %vm364_vm0, %v7331_v33, %v7308_v27  ;;  %v367_v33 = vsel %vm364_vm0, %v7343_v35, %v7325_v31 }
 0x186   : > { %v390_v2 = vrot.slane %v370_v17, %v7191_v4  ;;  %v402_v17 = vrot.slane %v367_v33, %v7191_v4 }
 0x188   : > { %v7772_v5 = vpop.permute.xlu1 %1344  ;;  %v7774_v13 = vpop.permute.xlu0 %1359 }
 0x189   : > { %11312 = vst [vmem:[#allocation80_spill] sm:$0xff] %v7772_v5  ;;  %11313 = vst [vmem:[#allocation81_spill] sm:$0xff] %v7774_v13  ;;  %1976 = vrot.lane.b32.xlu1 %v7210_v11, %s7082_s14  ;;  %1978 = vrot.lane.b32.xlu0 %v7226_v16, %s7082_s14  ;;  %v369_v5 = vsel %vm364_vm0, %v7308_v27, %v7314_v28  ;;  %v372_v27 = vsel %vm364_vm0, %v7329_v32, %v7320_v29 }
 0x18a   : > { %v365_v29 = vsel %vm364_vm0, %v7354_v38, %v7329_v32  ;;  %v451_v32 = vsel %vm443_vm1, %v7374_v43, %v7337_v34 }
 0x18c   : > { %v7784_v7 = vpop.permute.xlu1 %1410  ;;  %v7790_v13 = vpop.permute.xlu0 %1412 }
 0x18d   : > { %11314 = vst [vmem:[#allocation82_spill] sm:$0xff] %v7784_v7  ;;  %11315 = vst [vmem:[#allocation83_spill] sm:$0xff] %v7790_v13  ;;  %2159 = vperm.xlu1 %6964, %v6649_v37   ;;  %1984 = vrot.lane.b32.xlu0 %v7234_v19, %s7082_s14  ;;  %v368_v37 = vsel %vm364_vm0, %v7314_v28, %v7343_v35  ;;  %v394_v13 = vrot.slane %v369_v5, %v7191_v4 }
 0x18e   : > { %v366_v7 = vsel %vm364_vm0, %v7325_v31, %v7354_v38  ;;  %v386_v28 = vrot.slane %v371_v6, %v7191_v4  ;;  %v450_v35 = vsel %vm443_vm1, %v7337_v34, %v7345_v36  ;;  %v398_v31 = vrot.slane %v368_v37, %v7191_v4 }
 0x18f   : > { %v382_v6 = vrot.slane %v372_v27, %v7191_v4  ;;  %v449_v38 = vsel %vm443_vm1, %v7345_v36, %v7368_v42  ;;  %v448_v37 = vsel %vm443_vm1, %v7368_v42, %v7356_v39  ;;  %v445_v34 = vsel %vm443_vm1, %v7364_v41, %v7382_v45 }
 0x190   : > { %v7820_v1 = vpop.permute.xlu1 %1414  ;;  %v7833_v5 = vpop.permute.xlu0 %1416  ;;  %v410_v27 = vrot.slane %v365_v29, %v7191_v4  ;;  %v466_v36 = vrot.slane %v450_v35, %v7191_v4  ;;  %v462_v42 = vrot.slane %v451_v32, %v7191_v4  ;;  %v470_v14 = vrot.slane %v449_v38, %v7191_v4 }
 0x191   : > { %11316 = vst [vmem:[#allocation84_spill] sm:$0xff] %v7820_v1  ;;  %11317 = vst [vmem:[#allocation85_spill] sm:$0xff] %v7833_v5  ;;  %1740 = vrot.lane.b32.xlu1 %v7222_v15, %s7079_s24  ;;  %1742 = vrot.lane.b32.xlu0 %v7238_v20, %s7079_s24  ;;  %v406_v5 = vrot.slane %v366_v7, %v7191_v4  ;;  %v411_v1 = vmul.f32 %v382_v6, %v7360_v40  ;;  %vm1666_vm0 = vcmp.lt.s32.totalorder %v7768_v3, 108 }
 0x192   : > { %v444_v7 = vsel %vm443_vm1, %v7382_v45, %v7374_v43  ;;  %v446_v29 = vsel %vm443_vm1, %v7376_v44, %v7364_v41  ;;  %v447_v35 = vsel %vm443_vm1, %v7356_v39, %v7376_v44  ;;  %v412_v43 = vmul.f32 %v386_v28, %v7360_v40 }
 0x193   : > { %v413_v45 = vmul.f32 %v390_v2, %v7360_v40  ;;  %v474_v32 = vrot.slane %v448_v37, %v7191_v4  ;;  %v486_v38 = vrot.slane %v445_v34, %v7191_v4  ;;  %v490_v41 = vrot.slane %v444_v7, %v7191_v4 }
 0x194   : > { %v7866_v33 = vpop.permute.xlu1 %1418  ;;  %v7878_v6 = vpop.permute.xlu0 %1420  ;;  %v491_v39 = vmul.f32 %v462_v42, %v7393_v48  ;;  %v492_v44 = vmul.f32 %v466_v36, %v7393_v48  ;;  %v414_v28 = vmul.f32 %v394_v13, %v7360_v40  ;;  %v415_v2 = vmul.f32 %v398_v31, %v7360_v40 }
 0x195   : > { %11318 = vst [vmem:[#allocation86_spill] sm:$0xff] %v7866_v33  ;;  %11319 = vst [vmem:[#allocation87_spill] sm:$0xff] %v7878_v6  ;;  %2050 = vrot.lane.b32.xlu1 %v7204_v10, %s7083_s26  ;;  %2052 = vrot.lane.b32.xlu0 %v7214_v12, %s7083_s26  ;;  %v493_v33 = vmul.f32 %v470_v14, %v7393_v48  ;;  %v478_v37 = vrot.slane %v447_v35, %v7191_v4  ;;  %vm1746_vm1 = vcmp.lt.s32.totalorder %v7768_v3, 107 }
 0x196   : > { %v482_v34 = vrot.slane %v446_v29, %v7191_v4  ;;  %v416_v7 = vmul.f32 %v402_v17, %v7360_v40  ;;  %v417_v42 = vmul.f32 %v406_v5, %v7360_v40  ;;  %v418_v36 = vmul.f32 %v410_v27, %v7360_v40 }
 0x197   : > { %v494_v14 = vmul.f32 %v474_v32, %v7393_v48  ;;  %v495_v13 = vmul.f32 %v478_v37, %v7393_v48  ;;  %v497_v29 = vmul.f32 %v486_v38, %v7393_v48  ;;  %v531_v5 = vsel %vm523_vm2, %v7417_v56, %v7386_v46  ;;  %v6650_v32 = vld [vmem:[%s11064_s2 + $0xc0] sm:$0xff] }
 0x198   : > { %v7897_v6 = vpop.permute.xlu1 %1422  ;;  %v7903_v18 = vpop.permute.xlu0 %1424  ;;  %v496_v31 = vmul.f32 %v482_v34, %v7393_v48  ;;  %v498_v40 = vmul.f32 %v490_v41, %v7393_v48  ;;  %v499_v17 = vadd.f32 %v491_v39, %v411_v1  ;;  %v7917_v27 = vadd.f32 %v492_v44, %v412_v43 }
 0x199   : > { %2054 = vrot.lane.b32.xlu1 %v7201_v9, %s7083_s26  ;;  %2056 = vrot.lane.b32.xlu0 %v7210_v11, %s7083_s26  ;;  %v7919_v35 = vadd.f32 %v493_v33, %v413_v45  ;;  %v529_v38 = vsel %vm523_vm2, %v7398_v50, %v7396_v49  ;;  %v530_v37 = vsel %vm523_vm2, %v7386_v46, %v7398_v50 }
 0x19a   : > { %v527_v1 = vsel %vm523_vm2, %v7402_v51, %v7405_v52  ;;  %v528_v48 = vsel %vm523_vm2, %v7396_v49, %v7402_v51  ;;  %v525_v43 = vsel %vm523_vm2, %v7408_v53, %v7415_v55  ;;  %v526_v46 = vsel %vm523_vm2, %v7405_v52, %v7408_v53 }
 0x19b   : > { %v524_v50 = vsel %vm523_vm2, %v7415_v55, %v7417_v56  ;;  %v542_v45 = vrot.slane %v531_v5, %v7191_v4  ;;  %v502_v51 = vadd.f32 %v494_v14, %v414_v28  ;;  %v503_v41 = vadd.f32 %v495_v13, %v415_v2 }
 0x19c   : > { %v7940_v33 = vpop.permute.xlu1 %1439  ;;  %v7955_v49 = vpop.permute.xlu0 %1490  ;;  %v504_v39 = vadd.f32 %v496_v31, %v416_v7  ;;  %v505_v44 = vadd.f32 %v497_v29, %v417_v42  ;;  %v506_v34 = vadd.f32 %v498_v40, %v418_v36  ;;  %v546_v52 = vrot.slane %v530_v37, %v7191_v4 }
 0x19d   : > { %11320 = vst [vmem:[#allocation88_spill] sm:$0xff] %v7940_v33  ;;  %11321 = vst [vmem:[#allocation89_spill] sm:$0xff] %v7955_v49  ;;  %2058 = vrot.lane.b32.xlu1 %v7226_v16, %s7083_s26  ;;  %2239 = vperm.xlu0 %6963, %v6650_v32   ;;  %v550_v53 = vrot.slane %v529_v38, %v7191_v4  ;;  %v554_v33 = vrot.slane %v528_v48, %v7191_v4  ;;  %vm1826_vm2 = vcmp.lt.s32.totalorder %v7768_v3, 106 }
 0x19e   : > { %v558_v55 = vrot.slane %v527_v1, %v7191_v4  ;;  %v562_v56 = vrot.slane %v526_v46, %v7191_v4  ;;  %v566_v5 = vrot.slane %v525_v43, %v7191_v4  ;;  %v570_v49 = vrot.slane %v524_v50, %v7191_v4 }
 0x19f   : > { %v571_v2 = vmul.f32 %v542_v45, %v7420_v57  ;;  %v572_v7 = vmul.f32 %v546_v52, %v7420_v57  ;;  %v573_v42 = vmul.f32 %v550_v53, %v7420_v57  ;;  %v574_v36 = vmul.f32 %v554_v33, %v7420_v57 }
 0x1a0   : > { %v7966_v28 = vpop.permute.xlu1 %1492  ;;  %v7973_v14 = vpop.permute.xlu0 %1494  ;;  %v575_v13 = vmul.f32 %v558_v55, %v7420_v57  ;;  %v610_v31 = vsel %vm603_vm3, %v7422_v58, %v7426_v59  ;;  %v609_v29 = vsel %vm603_vm3, %v7426_v59, %v7428_v60  ;;  %v608_v40 = vsel %vm603_vm3, %v7428_v60, %v7432_v61 }
 0x1a1   : > { %2064 = vrot.lane.b32.xlu1 %v7234_v19, %s7083_s26  ;;  %1820 = vrot.lane.b32.xlu0 %v7222_v15, %s7080_s28  ;;  %v607_v32 = vsel %vm603_vm3, %v7432_v61, %v7434_v62  ;;  %v606_v38 = vsel %vm603_vm3, %v7434_v62, %v7438_v63  ;;  %v605_v59 = vsel %vm603_vm3, %v7438_v63, %v7440_v0 }
 0x1a2   : > { %v611_v60 = vsel %vm603_vm3, %v7447_v8, %v7422_v58  ;;  %v576_v37 = vmul.f32 %v562_v56, %v7420_v57  ;;  %v577_v1 = vmul.f32 %v566_v5, %v7420_v57  ;;  %v578_v61 = vmul.f32 %v570_v49, %v7420_v57 }
 0x1a3   : > { %v604_v62 = vsel %vm603_vm3, %v7440_v0, %v7447_v8  ;;  %v579_v33 = vadd.f32 %v571_v2, %v499_v17  ;;  %v626_v63 = vrot.slane %v610_v31, %v7191_v4  ;;  %v630_v43 = vrot.slane %v609_v29, %v7191_v4 }
 0x1a4   : > { %v8015_v48 = vpop.permute.xlu1 %1496  ;;  %v634_v58 = vrot.slane %v608_v40, %v7191_v4  ;;  %v8020_v46 = vpop.permute.xlu0 %1498  ;;  %v638_v57 = vrot.slane %v607_v32, %v7191_v4  ;;  %v642_v50 = vrot.slane %v606_v38, %v7191_v4  ;;  %v646_v0 = vrot.slane %v605_v59, %v7191_v4 }
 0x1a5   : > { %1822 = vrot.lane.b32.xlu1 %v7238_v20, %s7080_s28  ;;  %v622_v8 = vrot.slane %v611_v60, %v7191_v4  ;;  %2130 = vrot.lane.b32.xlu0 %v7204_v10, %s7084_s20  ;;  %v650_v17 = vrot.slane %v604_v62, %v7191_v4  ;;  %v652_v45 = vmul.f32 %v626_v63, %v7449_v21  ;;  %s7085_s28 = smov 86   ;;  %vm1906_vm3 = vcmp.lt.s32.totalorder %v7768_v3, 90 }
 0x1a6   : > { %v653_v49 = vmul.f32 %v630_v43, %v7449_v21  ;;  %v654_v52 = vmul.f32 %v634_v58, %v7449_v21  ;;  %v580_v53 = vadd.f32 %v572_v7, %v7917_v27  ;;  %v581_v55 = vadd.f32 %v573_v42, %v7919_v35 }
 0x1a7   : > { %v582_v56 = vadd.f32 %v574_v36, %v502_v51  ;;  %v583_v5 = vadd.f32 %v575_v13, %v503_v41  ;;  %v584_v31 = vadd.f32 %v576_v37, %v504_v39  ;;  %v585_v29 = vadd.f32 %v577_v1, %v505_v44 }
 0x1a8   : > { %v8037_v2 = vpop.permute.xlu1 %1500  ;;  %v586_v40 = vadd.f32 %v578_v61, %v506_v34  ;;  %v655_v32 = vmul.f32 %v638_v57, %v7449_v21  ;;  %v8040_v38 = vpop.permute.xlu0 %1502  ;;  %v651_v59 = vmul.f32 %v622_v8, %v7449_v21  ;;  %v656_v27 = vmul.f32 %v642_v50, %v7449_v21  ;;  %v11322_v50 = vld [vmem:[#allocation8_spill] sm:$0xff] }
 0x1a9   : > { %2132 = vrot.lane.b32.xlu1 %v7214_v12, %s7084_s20  ;;  %v657_v35 = vmul.f32 %v646_v0, %v7449_v21  ;;  %v691_v51 = vsel %vm683_vm4, %v7482_v54, %v7453_v22  ;;  %2134 = vrot.lane.b32.xlu0 %v7201_v9, %s7084_s20  ;;  %v658_v41 = vmul.f32 %v650_v17, %v7449_v21 }
 0x1aa   : > { %v8054_v39 = vadd.f32 %v652_v45, %v580_v53  ;;  %v8056_v44 = vadd.f32 %v653_v49, %v581_v55  ;;  %v8058_v34 = vadd.f32 %v654_v52, %v582_v56  ;;  %v690_v7 = vsel %vm683_vm4, %v7453_v22, %v7455_v23  ;;  %v11323_v53 = vld [vmem:[#allocation10_spill] sm:$0xff]  ;;  %v11324_v55 = vld [vmem:[#allocation9_spill] sm:$0xff] }
 0x1ab   : > { %v689_v42 = vsel %vm683_vm4, %v7455_v23, %v7461_v24  ;;  %v688_v21 = vsel %vm683_vm4, %v7461_v24, %v7463_v25  ;;  %v687_v36 = vsel %vm683_vm4, %v7463_v25, %v7469_v26  ;;  %v686_v22 = vsel %vm683_vm4, %v7469_v26, %v7471_v30 }
 0x1ac   : > { %v8076_v13 = vpop.permute.xlu1 %1504  ;;  %v685_v23 = vsel %vm683_vm4, %v7471_v30, %v7480_v47  ;;  %v684_v24 = vsel %vm683_vm4, %v7480_v47, %v7482_v54  ;;  %v702_v60 = vrot.slane %v691_v51, %v7191_v4  ;;  %v8091_v25 = vpop.permute.xlu0 %1519  ;;  %v659_v37 = vadd.f32 %v651_v59, %v579_v33  ;;  %v11329_v51 = vld [vmem:[#allocation15_spill] sm:$0xff] }
 0x1ad   : > { %2136 = vrot.lane.b32.xlu1 %v7210_v11, %s7084_s20  ;;  %v663_v1 = vadd.f32 %v655_v32, %v583_v5  ;;  %v664_v26 = vadd.f32 %v656_v27, %v584_v31  ;;  %v665_v61 = vadd.f32 %v657_v35, %v585_v29  ;;  %2138 = vrot.lane.b32.xlu0 %v7226_v16, %s7084_s20  ;;  %v11325_v5 = vld [vmem:[#allocation11_spill] sm:$0xff]  ;;  %v11326_v29 = vld [vmem:[#allocation12_spill] sm:$0xff]  ;;  %v11327_v32 = vld [vmem:[#allocation13_spill] sm:$0xff]  ;;  %vm1986_vm4 = vcmp.lt.s32.totalorder %v7768_v3, 89 }
 0x1ae   : > { %v666_v30 = vadd.f32 %v658_v41, %v586_v40  ;;  %v706_v62 = vrot.slane %v690_v7, %v7191_v4  ;;  %v710_v63 = vrot.slane %v689_v42, %v7191_v4  ;;  %v714_v47 = vrot.slane %v688_v21, %v7191_v4  ;;  %v11328_v27 = vld [vmem:[#allocation14_spill] sm:$0xff]  ;;  %v11330_v7 = vld [vmem:[#allocation16_spill] sm:$0xff] }
 0x1af   : > { %v718_v54 = vrot.slane %v687_v36, %v7191_v4  ;;  %v722_v43 = vrot.slane %v686_v22, %v7191_v4  ;;  %v726_v58 = vrot.slane %v685_v23, %v7191_v4  ;;  %v730_v33 = vrot.slane %v684_v24, %v7191_v4 }
 0x1b0   : > { %v8104_v57 = vpop.permute.xlu1 %1570  ;;  %v731_v0 = vmul.f32 %v702_v60, %v11322_v50  ;;  %v732_v8 = vmul.f32 %v706_v62, %v11322_v50  ;;  %v733_v17 = vmul.f32 %v710_v63, %v11322_v50  ;;  %v734_v45 = vmul.f32 %v714_v47, %v11322_v50  ;;  %v8111_v49 = vpop.permute.xlu0 %1572 }
 0x1b1   : > { %2144 = vrot.lane.b32.xlu1 %v7234_v19, %s7084_s20  ;;  %v735_v52 = vmul.f32 %v718_v54, %v11322_v50  ;;  %v770_v56 = vsel %vm763_vm5, %v11324_v55, %v11323_v53  ;;  %v769_v31 = vsel %vm763_vm5, %v11323_v53, %v11325_v5  ;;  %v768_v40 = vsel %vm763_vm5, %v11325_v5, %v11326_v29 }
 0x1b2   : > { %1900 = vrot.lane.b32.xlu0 %v7222_v15, %s7081_s23  ;;  %v767_v59 = vsel %vm763_vm5, %v11326_v29, %v11327_v32  ;;  %v766_v35 = vsel %vm763_vm5, %v11327_v32, %v11328_v27  ;;  %v765_v41 = vsel %vm763_vm5, %v11328_v27, %v11329_v51  ;;  %v771_v42 = vsel %vm763_vm5, %v11330_v7, %v11324_v55 }
 0x1b3   : > { %v736_v21 = vmul.f32 %v722_v43, %v11322_v50  ;;  %v737_v36 = vmul.f32 %v726_v58, %v11322_v50  ;;  %v738_v22 = vmul.f32 %v730_v33, %v11322_v50  ;;  %v764_v23 = vsel %vm763_vm5, %v11329_v51, %v11330_v7 }
 0x1b4   : > { %v8153_v24 = vpop.permute.xlu1 %1574  ;;  %v739_v60 = vadd.f32 %v731_v0, %v659_v37  ;;  %v786_v62 = vrot.slane %v770_v56, %v7191_v4  ;;  %v790_v63 = vrot.slane %v769_v31, %v7191_v4  ;;  %v794_v47 = vrot.slane %v768_v40, %v7191_v4  ;;  %v8158_v54 = vpop.permute.xlu0 %1576  ;;  %v11332_v0 = vld [vmem:[#allocation17_spill] sm:$0xff] }
 0x1b5   : > { %11331 = vst [vmem:[#allocation8_spill] sm:$0xff] %v8153_v24  ;;  %1902 = vrot.lane.b32.xlu1 %v7238_v20, %s7081_s23  ;;  %v798_v43 = vrot.slane %v767_v59, %v7191_v4  ;;  %v802_v58 = vrot.slane %v766_v35, %v7191_v4  ;;  %v806_v33 = vrot.slane %v765_v41, %v7191_v4  ;;  %vm2066_vm5 = vcmp.lt.s32.totalorder %v7768_v3, 88 }
 0x1b6   : > { %v782_v50 = vrot.slane %v771_v42, %v7191_v4  ;;  %2210 = vrot.lane.b32.xlu0 %v7204_v10, %s7085_s28  ;;  %v810_v37 = vrot.slane %v764_v23, %v7191_v4  ;;  %v812_v53 = vmul.f32 %v786_v62, %v11332_v0  ;;  %v813_v55 = vmul.f32 %v790_v63, %v11332_v0  ;;  %v11336_v42 = vld [vmem:[#allocation20_spill] sm:$0xff]  ;;  %v11338_v23 = vld [vmem:[#allocation22_spill] sm:$0xff] }
 0x1b7   : > { %v814_v56 = vmul.f32 %v794_v47, %v11332_v0  ;;  %v740_v5 = vadd.f32 %v732_v8, %v8054_v39  ;;  %v741_v31 = vadd.f32 %v733_v17, %v8056_v44  ;;  %v742_v29 = vadd.f32 %v734_v45, %v8058_v34  ;;  %v11333_v34 = vld [vmem:[#allocation18_spill] sm:$0xff]  ;;  %v11335_v45 = vld [vmem:[#allocation19_spill] sm:$0xff] }
 0x1b8   : > { %v743_v40 = vadd.f32 %v735_v52, %v663_v1  ;;  %v8176_v32 = vpop.permute.xlu1 %1578  ;;  %v744_v59 = vadd.f32 %v736_v21, %v664_v26  ;;  %v745_v27 = vadd.f32 %v737_v36, %v665_v61  ;;  %v746_v35 = vadd.f32 %v738_v22, %v666_v30  ;;  %v8179_v41 = vpop.permute.xlu0 %1580  ;;  %v11334_v1 = vld [vmem:[#allocation25_spill] sm:$0xff]  ;;  %v11340_v47 = vld [vmem:[#allocation23_spill] sm:$0xff] }
 0x1b9   : > { %v815_v51 = vmul.f32 %v798_v43, %v11332_v0  ;;  %2212 = vrot.lane.b32.xlu1 %v7214_v12, %s7085_s28  ;;  %v811_v7 = vmul.f32 %v782_v50, %v11332_v0  ;;  %v816_v39 = vmul.f32 %v802_v58, %v11332_v0  ;;  %v817_v44 = vmul.f32 %v806_v33, %v11332_v0  ;;  %v11337_v36 = vld [vmem:[#allocation21_spill] sm:$0xff]  ;;  %v11341_v58 = vld [vmem:[#allocation24_spill] sm:$0xff] }
 0x1ba   : > { %v851_v26 = vsel %vm843_vm6, %v11334_v1, %v11333_v34  ;;  %2214 = vrot.lane.b32.xlu0 %v7201_v9, %s7085_s28  ;;  %v818_v61 = vmul.f32 %v810_v37, %v11332_v0  ;;  %v8193_v30 = vadd.f32 %v812_v53, %v740_v5  ;;  %v8195_v8 = vadd.f32 %v813_v55, %v741_v31  ;;  %v2290_v31 = vld [vmem:[%s11065_s3] sm:$0xff] }
 0x1bb   : > { %v8197_v17 = vadd.f32 %v814_v56, %v742_v29  ;;  %v850_v52 = vsel %vm843_vm6, %v11333_v34, %v11335_v45  ;;  %v849_v21 = vsel %vm843_vm6, %v11335_v45, %v11336_v42  ;;  %v848_v22 = vsel %vm843_vm6, %v11336_v42, %v11337_v36  ;;  %v11346_v42 = vld [vmem:[#allocation28_spill] sm:$0xff] }
 0x1bc   : > { %v847_v62 = vsel %vm843_vm6, %v11337_v36, %v11338_v23  ;;  %v8215_v63 = vpop.permute.xlu1 %1599  ;;  %v846_v43 = vsel %vm843_vm6, %v11338_v23, %v11340_v47  ;;  %v845_v33 = vsel %vm843_vm6, %v11340_v47, %v11341_v58  ;;  %v844_v50 = vsel %vm843_vm6, %v11341_v58, %v11334_v1  ;;  %v8230_v0 = vpop.permute.xlu0 %1679 }
 0x1bd   : > { %11339 = vst [vmem:[#allocation10_spill] sm:$0xff] %v8215_v63  ;;  %v862_v37 = vrot.slane %v851_v26, %v7191_v4  ;;  %11342 = vst [vmem:[#allocation9_spill] sm:$0xff] %v8230_v0  ;;  %2216 = vrot.lane.b32.xlu1 %v7210_v11, %s7085_s28  ;;  %v819_v53 = vadd.f32 %v811_v7, %v739_v60  ;;  %v823_v55 = vadd.f32 %v815_v51, %v743_v40  ;;  %v11344_v51 = vld [vmem:[#allocation26_spill] sm:$0xff] }
 0x1be   : > { %v824_v56 = vadd.f32 %v816_v39, %v744_v59  ;;  %v825_v5 = vadd.f32 %v817_v44, %v745_v27  ;;  %2218 = vrot.lane.b32.xlu0 %v7226_v16, %s7085_s28  ;;  %v826_v29 = vadd.f32 %v818_v61, %v746_v35  ;;  %v866_v34 = vrot.slane %v850_v52, %v7191_v4 }
 0x1bf   : > { %v870_v1 = vrot.slane %v849_v21, %v7191_v4  ;;  %v874_v26 = vrot.slane %v848_v22, %v7191_v4  ;;  %v878_v45 = vrot.slane %v847_v62, %v7191_v4  ;;  %v882_v60 = vrot.slane %v846_v43, %v7191_v4  ;;  %v11347_v21 = vld [vmem:[#allocation27_spill] sm:$0xff]  ;;  %v11348_v22 = vld [vmem:[#allocation29_spill] sm:$0xff]  ;;  %v11349_v62 = vld [vmem:[#allocation30_spill] sm:$0xff] }
 0x1c0   : > { %v886_v40 = vrot.slane %v845_v33, %v7191_v4  ;;  %v890_v59 = vrot.slane %v844_v50, %v7191_v4  ;;  %v8246_v27 = vpop.permute.xlu1 %1759  ;;  %v891_v7 = vmul.f32 %v862_v37, %v11344_v51  ;;  %v892_v35 = vmul.f32 %v866_v34, %v11344_v51  ;;  %v8253_v61 = vpop.permute.xlu0 %1584  ;;  %v11350_v43 = vld [vmem:[#allocation31_spill] sm:$0xff]  ;;  %v11351_v33 = vld [vmem:[#allocation32_spill] sm:$0xff]  ;;  %v11352_v37 = vld [vmem:[#allocation33_spill] sm:$0xff] }
 0x1c1   : > { %11343 = vst [vmem:[#allocation11_spill] sm:$0xff] %v8246_v27  ;;  %v893_v39 = vmul.f32 %v870_v1, %v11344_v51  ;;  %v894_v44 = vmul.f32 %v874_v26, %v11344_v51  ;;  %11345 = vst [vmem:[#allocation12_spill] sm:$0xff] %v8253_v61  ;;  %2293 = vperm.xlu1 %6964, %v2290_v31   ;;  %v895_v52 = vmul.f32 %v878_v45, %v11344_v51  ;;  %v11353_v34 = vld [vmem:[#allocation34_spill] sm:$0xff] }
 0x1c2   : > { %v930_v36 = vsel %vm923_vm7, %v11347_v21, %v11346_v42  ;;  %v929_v23 = vsel %vm923_vm7, %v11346_v42, %v11348_v22  ;;  %v928_v47 = vsel %vm923_vm7, %v11348_v22, %v11349_v62  ;;  %2224 = vrot.lane.b32.xlu0 %v7234_v19, %s7085_s28  ;;  %v927_v58 = vsel %vm923_vm7, %v11349_v62, %v11350_v43 }
 0x1c3   : > { %v926_v50 = vsel %vm923_vm7, %v11350_v43, %v11351_v33  ;;  %v925_v31 = vsel %vm923_vm7, %v11351_v33, %v11352_v37  ;;  %v931_v1 = vsel %vm923_vm7, %v11353_v34, %v11347_v21  ;;  %v896_v26 = vmul.f32 %v882_v60, %v11344_v51 }
 0x1c4   : > { %v897_v45 = vmul.f32 %v886_v40, %v11344_v51  ;;  %v898_v42 = vmul.f32 %v890_v59, %v11344_v51  ;;  %v924_v22 = vsel %vm923_vm7, %v11352_v37, %v11353_v34  ;;  %v8293_v62 = vpop.permute.xlu1 %1650  ;;  %v899_v43 = vadd.f32 %v891_v7, %v819_v53  ;;  %v8298_v0 = vpop.permute.xlu0 %1652  ;;  %v11356_v7 = vld [vmem:[#allocation35_spill] sm:$0xff] }
 0x1c5   : > { %11354 = vst [vmem:[#allocation13_spill] sm:$0xff] %v8293_v62  ;;  %v946_v33 = vrot.slane %v930_v36, %v7191_v4  ;;  %v950_v27 = vrot.slane %v929_v23, %v7191_v4  ;;  %v954_v21 = vrot.slane %v928_v47, %v7191_v4  ;;  %11355 = vst [vmem:[#allocation14_spill] sm:$0xff] %v8298_v0  ;;  %1980 = vrot.lane.b32.xlu1 %v7222_v15, %s7082_s14 }
 0x1c6   : > { %v958_v60 = vrot.slane %v927_v58, %v7191_v4  ;;  %v962_v40 = vrot.slane %v926_v50, %v7191_v4  ;;  %v966_v59 = vrot.slane %v925_v31, %v7191_v4  ;;  %v942_v51 = vrot.slane %v931_v1, %v7191_v4  ;;  %1982 = vrot.lane.b32.xlu0 %v7238_v20, %s7082_s14 }
 0x1c7   : > { %v970_v53 = vrot.slane %v924_v22, %v7191_v4  ;;  %v972_v36 = vmul.f32 %v946_v33, %v11356_v7  ;;  %v973_v23 = vmul.f32 %v950_v27, %v11356_v7  ;;  %v974_v47 = vmul.f32 %v954_v21, %v11356_v7 }
 0x1c8   : > { %v900_v58 = vadd.f32 %v892_v35, %v8193_v30  ;;  %v901_v50 = vadd.f32 %v893_v39, %v8195_v8  ;;  %v902_v37 = vadd.f32 %v894_v44, %v8197_v17  ;;  %v903_v31 = vadd.f32 %v895_v52, %v823_v55  ;;  %v8316_v34 = vpop.permute.xlu1 %1654  ;;  %v8319_v0 = vpop.permute.xlu0 %1656  ;;  %v11359_v17 = vld [vmem:[#allocation36_spill] sm:$0xff]  ;;  %v11360_v55 = vld [vmem:[#allocation43_spill] sm:$0xff]  ;;  %v11361_v44 = vld [vmem:[#allocation37_spill] sm:$0xff] }
 0x1c9   : > { %11357 = vst [vmem:[#allocation15_spill] sm:$0xff] %v8316_v34  ;;  %v904_v1 = vadd.f32 %v896_v26, %v824_v56  ;;  %v905_v62 = vadd.f32 %v897_v45, %v825_v5  ;;  %v906_v22 = vadd.f32 %v898_v42, %v826_v29  ;;  %v975_v33 = vmul.f32 %v958_v60, %v11356_v7  ;;  %v11362_v26 = vld [vmem:[#allocation38_spill] sm:$0xff]  ;;  %v11363_v42 = vld [vmem:[#allocation39_spill] sm:$0xff]  ;;  %v11364_v60 = vld [vmem:[#allocation40_spill] sm:$0xff] }
 0x1ca   : > { %11358 = vst [vmem:[#allocation16_spill] sm:$0xff] %v8319_v0  ;;  %2060 = vrot.lane.b32.xlu1 %v7222_v15, %s7083_s26  ;;  %v971_v27 = vmul.f32 %v942_v51, %v11356_v7  ;;  %v976_v30 = vmul.f32 %v962_v40, %v11356_v7  ;;  %v977_v8 = vmul.f32 %v966_v59, %v11356_v7  ;;  %v11366_v51 = vld [vmem:[#allocation41_spill] sm:$0xff] }
 0x1cb   : > { %v1011_v56 = vsel %vm1003_vm8, %v11360_v55, %v11359_v17  ;;  %2062 = vrot.lane.b32.xlu0 %v7238_v20, %s7083_s26  ;;  %v978_v5 = vmul.f32 %v970_v53, %v11356_v7  ;;  %v980_v29 = vadd.f32 %v972_v36, %v900_v58  ;;  %v8333_v35 = vadd.f32 %v973_v23, %v901_v50  ;;  %v11367_v7 = vld [vmem:[#allocation42_spill] sm:$0xff] }
 0x1cc   : > { %v8335_v39 = vadd.f32 %v974_v47, %v902_v37  ;;  %v1010_v52 = vsel %vm1003_vm8, %v11359_v17, %v11361_v44  ;;  %v1009_v45 = vsel %vm1003_vm8, %v11361_v44, %v11362_v26  ;;  %v1008_v21 = vsel %vm1003_vm8, %v11362_v26, %v11363_v42  ;;  %v8353_v59 = vpop.permute.xlu1 %1658  ;;  %v8368_v58 = vpop.permute.xlu0 %1839 }
 0x1cd   : > { %v1007_v40 = vsel %vm1003_vm8, %v11363_v42, %v11364_v60  ;;  %11365 = vst [vmem:[#allocation17_spill] sm:$0xff] %v8353_v59  ;;  %v1006_v53 = vsel %vm1003_vm8, %v11364_v60, %v11366_v51  ;;  %v1005_v36 = vsel %vm1003_vm8, %v11366_v51, %v11367_v7  ;;  %v1004_v23 = vsel %vm1003_vm8, %v11367_v7, %v11360_v55 }
 0x1ce   : > { %v1022_v47 = vrot.slane %v1011_v56, %v7191_v4  ;;  %11368 = vst [vmem:[#allocation18_spill] sm:$0xff] %v8368_v58  ;;  %2140 = vrot.lane.b32.xlu1 %v7222_v15, %s7084_s20  ;;  %v979_v50 = vadd.f32 %v971_v27, %v899_v43  ;;  %v983_v37 = vadd.f32 %v975_v33, %v903_v31  ;;  %v11370_v33 = vld [vmem:[#allocation44_spill] sm:$0xff] }
 0x1cf   : > { %2142 = vrot.lane.b32.xlu0 %v7238_v20, %s7084_s20  ;;  %v984_v17 = vadd.f32 %v976_v30, %v904_v1  ;;  %v985_v44 = vadd.f32 %v977_v8, %v905_v62  ;;  %v1026_v26 = vrot.slane %v1010_v52, %v7191_v4  ;;  %v1030_v42 = vrot.slane %v1009_v45, %v7191_v4  ;;  %v11372_v52 = vld [vmem:[#allocation46_spill] sm:$0xff]  ;;  %v11373_v45 = vld [vmem:[#allocation45_spill] sm:$0xff] }
 0x1d0   : > { %v1034_v55 = vrot.slane %v1008_v21, %v7191_v4  ;;  %v986_v60 = vadd.f32 %v978_v5, %v906_v22  ;;  %v1038_v56 = vrot.slane %v1007_v40, %v7191_v4  ;;  %v1042_v51 = vrot.slane %v1006_v53, %v7191_v4  ;;  %v8381_v31 = vpop.permute.xlu1 %1664  ;;  %v8388_v22 = vpop.permute.xlu0 %1730  ;;  %v11374_v40 = vld [vmem:[#allocation47_spill] sm:$0xff] }
 0x1d1   : > { %v1046_v7 = vrot.slane %v1005_v36, %v7191_v4  ;;  %v1050_v43 = vrot.slane %v1004_v23, %v7191_v4  ;;  %11369 = vst [vmem:[#allocation25_spill] sm:$0xff] %v8381_v31  ;;  %v1051_v1 = vmul.f32 %v1022_v47, %v11370_v33  ;;  %v1052_v62 = vmul.f32 %v1026_v26, %v11370_v33  ;;  %v11375_v36 = vld [vmem:[#allocation48_spill] sm:$0xff]  ;;  %v11376_v47 = vld [vmem:[#allocation49_spill] sm:$0xff] }
 0x1d2   : > { %v1053_v27 = vmul.f32 %v1030_v42, %v11370_v33  ;;  %v1054_v30 = vmul.f32 %v1034_v55, %v11370_v33  ;;  %11371 = vst [vmem:[#allocation19_spill] sm:$0xff] %v8388_v22  ;;  %2220 = vrot.lane.b32.xlu1 %v7222_v15, %s7085_s28  ;;  %v1055_v8 = vmul.f32 %v1038_v56, %v11370_v33  ;;  %v11377_v42 = vld [vmem:[#allocation50_spill] sm:$0xff]  ;;  %v11378_v56 = vld [vmem:[#allocation51_spill] sm:$0xff] }
 0x1d3   : > { %v1056_v5 = vmul.f32 %v1042_v51, %v11370_v33  ;;  %v1090_v21 = vsel %vm1083_vm9, %v11373_v45, %v11372_v52  ;;  %v1089_v53 = vsel %vm1083_vm9, %v11372_v52, %v11374_v40  ;;  %2222 = vrot.lane.b32.xlu0 %v7238_v20, %s7085_s28  ;;  %v1088_v23 = vsel %vm1083_vm9, %v11374_v40, %v11375_v36  ;;  %v11379_v40 = vld [vmem:[#allocation52_spill] sm:$0xff] }
 0x1d4   : > { %v1087_v26 = vsel %vm1083_vm9, %v11375_v36, %v11376_v47  ;;  %v1086_v55 = vsel %vm1083_vm9, %v11376_v47, %v11377_v42  ;;  %v1085_v51 = vsel %vm1083_vm9, %v11377_v42, %v11378_v56  ;;  %v1057_v52 = vmul.f32 %v1046_v7, %v11370_v33  ;;  %v8430_v47 = vpop.permute.xlu1 %1732  ;;  %v8434_v0 = vpop.permute.xlu0 %1734 }
 0x1d5   : > { %v1058_v58 = vmul.f32 %v1050_v43, %v11370_v33  ;;  %v1084_v22 = vsel %vm1083_vm9, %v11378_v56, %v11379_v40  ;;  %v1091_v36 = vsel %vm1083_vm9, %v11379_v40, %v11373_v45  ;;  %11380 = vst [vmem:[#allocation20_spill] sm:$0xff] %v8430_v47  ;;  %v1106_v31 = vrot.slane %v1090_v21, %v7191_v4  ;;  %v11382_v40 = vld [vmem:[#allocation53_spill] sm:$0xff] }
 0x1d6   : > { %v1110_v42 = vrot.slane %v1089_v53, %v7191_v4  ;;  %v1059_v59 = vadd.f32 %v1051_v1, %v979_v50  ;;  %v1060_v7 = vadd.f32 %v1052_v62, %v980_v29  ;;  %11381 = vst [vmem:[#allocation21_spill] sm:$0xff] %v8434_v0  ;;  %v1114_v43 = vrot.slane %v1088_v23, %v7191_v4  ;;  %v11385_v47 = vld [vmem:[#allocation61_spill] sm:$0xff] }
 0x1d7   : > { %v1118_v33 = vrot.slane %v1087_v26, %v7191_v4  ;;  %v1122_v56 = vrot.slane %v1086_v55, %v7191_v4  ;;  %v1126_v34 = vrot.slane %v1085_v51, %v7191_v4  ;;  %v1102_v45 = vrot.slane %v1091_v36, %v7191_v4 }
 0x1d8   : > { %v1130_v21 = vrot.slane %v1084_v22, %v7191_v4  ;;  %v1132_v53 = vmul.f32 %v1106_v31, %v11382_v40  ;;  %v1133_v29 = vmul.f32 %v1110_v42, %v11382_v40  ;;  %v1134_v50 = vmul.f32 %v1114_v43, %v11382_v40  ;;  %v8448_v26 = vpop.permute.xlu1 %1736  ;;  %v8451_v51 = vpop.permute.xlu0 %1738  ;;  %v11386_v31 = vld [vmem:[#allocation60_spill] sm:$0xff]  ;;  %v11387_v43 = vld [vmem:[#allocation54_spill] sm:$0xff] }
 0x1d9   : > { %v1066_v1 = vadd.f32 %v1058_v58, %v986_v60  ;;  %v1061_v62 = vadd.f32 %v1053_v27, %v8333_v35  ;;  %v1062_v23 = vadd.f32 %v1054_v30, %v8335_v39  ;;  %11383 = vst [vmem:[#allocation22_spill] sm:$0xff] %v8448_v26  ;;  %v1135_v55 = vmul.f32 %v1118_v33, %v11382_v40  ;;  %v11388_v27 = vld [vmem:[#allocation55_spill] sm:$0xff] }
 0x1da   : > { %11384 = vst [vmem:[#allocation23_spill] sm:$0xff] %v8451_v51  ;;  %v1064_v36 = vadd.f32 %v1056_v5, %v984_v17  ;;  %v1065_v0 = vadd.f32 %v1057_v52, %v985_v44  ;;  %v1063_v22 = vadd.f32 %v1055_v8, %v983_v37  ;;  %v1164_v42 = vsel %vm1163_vm10, %v11386_v31, %v11385_v47  ;;  %v11389_v8 = vld [vmem:[#allocation56_spill] sm:$0xff]  ;;  %v11390_v52 = vld [vmem:[#allocation57_spill] sm:$0xff] }
 0x1db   : > { %v1171_v35 = vsel %vm1163_vm10, %v11385_v47, %v11387_v43  ;;  %v1136_v39 = vmul.f32 %v1122_v56, %v11382_v40  ;;  %v1137_v58 = vmul.f32 %v1126_v34, %v11382_v40  ;;  %v1131_v60 = vmul.f32 %v1102_v45, %v11382_v40  ;;  %v11393_v45 = vld [vmem:[#allocation59_spill] sm:$0xff] }
 0x1dc   : > { %v1138_v17 = vmul.f32 %v1130_v21, %v11382_v40  ;;  %v1140_v44 = vadd.f32 %v1132_v53, %v1060_v7  ;;  %v1141_v37 = vadd.f32 %v1133_v29, %v1061_v62  ;;  %v1170_v30 = vsel %vm1163_vm10, %v11387_v43, %v11388_v27  ;;  %v8477_v33 = vpop.permute.xlu1 %1919  ;;  %v11392_v7 = vld [vmem:[#allocation58_spill] sm:$0xff]  ;;  %v8489_v29 = vpop.permute.xlu0 %1744 }
 0x1dd   : > { %v1169_v5 = vsel %vm1163_vm10, %v11388_v27, %v11389_v8  ;;  %v1168_v34 = vsel %vm1163_vm10, %v11389_v8, %v11390_v52  ;;  %v1142_v47 = vadd.f32 %v1134_v50, %v1062_v23  ;;  %11391 = vst [vmem:[#allocation24_spill] sm:$0xff] %v8477_v33  ;;  %v1167_v56 = vsel %vm1163_vm10, %v11390_v52, %v11392_v7  ;;  %v11395_v8 = vld [vmem:[#allocation70_spill] sm:$0xff]  ;;  %v11396_v52 = vld [vmem:[#allocation69_spill] sm:$0xff] }
 0x1de   : > { %v1165_v21 = vsel %vm1163_vm10, %v11393_v45, %v11386_v31  ;;  %v1182_v40 = vrot.slane %v1171_v35, %v7191_v4  ;;  %v1210_v53 = vrot.slane %v1164_v42, %v7191_v4  ;;  %11394 = vst [vmem:[#allocation26_spill] sm:$0xff] %v8489_v29  ;;  %v1166_v50 = vsel %vm1163_vm10, %v11392_v7, %v11393_v45  ;;  %v11403_v45 = vld [vmem:[#allocation68_spill] sm:$0xff] }
 0x1df   : > { %v1144_v62 = vadd.f32 %v1136_v39, %v1064_v36  ;;  %v1145_v23 = vadd.f32 %v1137_v58, %v1065_v0  ;;  %v8495_v43 = vadd.f32 %v1135_v55, %v1063_v22  ;;  %v1186_v27 = vrot.slane %v1170_v30, %v7191_v4  ;;  %v11398_v22 = vld [vmem:[#allocation63_spill] sm:$0xff]  ;;  %v11399_v58 = vld [vmem:[#allocation62_spill] sm:$0xff] }
 0x1e0   : > { %v1244_v31 = vsel %vm1243_vm11, %v11396_v52, %v11395_v8  ;;  %v1146_v35 = vadd.f32 %v1138_v17, %v1066_v1  ;;  %v1139_v42 = vadd.f32 %v1131_v60, %v1059_v59  ;;  %v1190_v33 = vrot.slane %v1169_v5, %v7191_v4  ;;  %v8506_v0 = vpop.permute.xlu1 %1810  ;;  %v8515_v60 = vpop.permute.xlu0 %1812  ;;  %v11401_v17 = vld [vmem:[#allocation64_spill] sm:$0xff]  ;;  %v11402_v5 = vld [vmem:[#allocation65_spill] sm:$0xff] }
 0x1e1   : > { %v1194_v29 = vrot.slane %v1168_v34, %v7191_v4  ;;  %v1198_v51 = vrot.slane %v1167_v56, %v7191_v4  ;;  %v1206_v36 = vrot.slane %v1165_v21, %v7191_v4  ;;  %11397 = vst [vmem:[#allocation28_spill] sm:$0xff] %v8506_v0  ;;  %v1202_v55 = vrot.slane %v1166_v50, %v7191_v4  ;;  %v11404_v21 = vld [vmem:[#allocation67_spill] sm:$0xff] }
 0x1e2   : > { %v1251_v39 = vsel %vm1243_vm11, %v11395_v8, %v11398_v22  ;;  %v1218_v1 = vmul.f32 %v1210_v53, %v11399_v58  ;;  %v1211_v59 = vmul.f32 %v1182_v40, %v11399_v58  ;;  %11400 = vst [vmem:[#allocation27_spill] sm:$0xff] %v8515_v60  ;;  %v1250_v30 = vsel %vm1243_vm11, %v11398_v22, %v11401_v17  ;;  %v11405_v22 = vld [vmem:[#allocation66_spill] sm:$0xff] }
 0x1e3   : > { %v1249_v34 = vsel %vm1243_vm11, %v11401_v17, %v11402_v5  ;;  %v1290_v7 = vrot.slane %v1244_v31, %v7191_v4  ;;  %v1212_v56 = vmul.f32 %v1186_v27, %v11399_v58  ;;  %v1246_v40 = vsel %vm1243_vm11, %v11404_v21, %v11403_v45 }
 0x1e4   : > { %v1245_v53 = vsel %vm1243_vm11, %v11403_v45, %v11396_v52  ;;  %v1213_v50 = vmul.f32 %v1190_v33, %v11399_v58  ;;  %v1214_v8 = vmul.f32 %v1194_v29, %v11399_v58  ;;  %v1248_v27 = vsel %vm1243_vm11, %v11402_v5, %v11405_v22  ;;  %v8543_v17 = vpop.permute.xlu1 %1814  ;;  %v8549_v26 = vpop.permute.xlu0 %1816 }
 0x1e5   : > { %v1262_v31 = vrot.slane %v1251_v39, %v7191_v4  ;;  %11406 = vst [vmem:[#allocation29_spill] sm:$0xff] %v8543_v17  ;;  %v1216_v0 = vmul.f32 %v1202_v55, %v11399_v58  ;;  %v1217_v60 = vmul.f32 %v1206_v36, %v11399_v58  ;;  %v1266_v52 = vrot.slane %v1250_v30, %v7191_v4  ;;  %v11407_v39 = vld [vmem:[#allocation71_spill] sm:$0xff] }
 0x1e6   : > { %v1270_v45 = vrot.slane %v1249_v34, %v7191_v4  ;;  %v1226_v33 = vadd.f32 %v1218_v1, %v1146_v35  ;;  %v1215_v29 = vmul.f32 %v1198_v51, %v11399_v58  ;;  %v1282_v61 = vrot.slane %v1246_v40, %v7191_v4 }
 0x1e7   : > { %v1286_v5 = vrot.slane %v1245_v53, %v7191_v4  ;;  %v1298_v63 = vmul.f32 %v1290_v7, %v11407_v39  ;;  %v1219_v17 = vadd.f32 %v1211_v59, %v1139_v42  ;;  %v1274_v55 = vrot.slane %v1248_v27, %v7191_v4  ;;  %v11408_v42 = vld [vmem:[#allocation72_spill] sm:$0xff] }
 0x1e8   : > { %v1220_v24 = vadd.f32 %v1212_v56, %v1140_v44  ;;  %v1292_v36 = vmul.f32 %v1266_v52, %v11407_v39  ;;  %v1293_v30 = vmul.f32 %v1270_v45, %v11407_v39  ;;  %v1247_v35 = vsel %vm1243_vm11, %v11405_v22, %v11404_v21  ;;  %v8563_v34 = vpop.permute.xlu1 %1818  ;;  %v8570_v56 = vpop.permute.xlu0 %1999  ;;  %v11410_v45 = vld [vmem:[#allocation74_spill] sm:$0xff] }
 0x1e9   : > { %v1291_v51 = vmul.f32 %v1262_v31, %v11407_v39  ;;  %v1221_v58 = vadd.f32 %v1213_v50, %v1141_v37  ;;  %v1222_v1 = vadd.f32 %v1214_v8, %v1142_v47  ;;  %v1315_v59 = vmul.f32 %v11408_v42, %v7214_v12  ;;  %11409 = vst [vmem:[#allocation30_spill] sm:$0xff] %v8570_v56 }
 0x1ea   : > { %v1316_v44 = vmul.f32 %v11408_v42, %v7201_v9  ;;  %v1294_v7 = vmul.f32 %v1274_v55, %v11407_v39  ;;  %v1224_v40 = vadd.f32 %v1216_v0, %v1144_v62  ;;  %v1306_v53 = vadd.f32 %v1298_v63, %v1226_v33  ;;  %v11412_v33 = vld [vmem:[#allocation75_spill] sm:$0xff] }
 0x1eb   : > { %v1321_v21 = vmul.f32 %v11408_v42, %v7234_v19  ;;  %v1296_v37 = vmul.f32 %v1282_v61, %v11407_v39  ;;  %v1297_v47 = vmul.f32 %v1286_v5, %v11407_v39  ;;  %v1278_v50 = vrot.slane %v1247_v35, %v7191_v4  ;;  %v11414_v5 = vld [vmem:[#allocation77_spill] sm:$0xff]  ;;  %v11416_v35 = vld [vmem:[#allocation76_spill] sm:$0xff] }
 0x1ec   : > { %v1300_v12 = vadd.f32 %v1292_v36, %v1220_v24  ;;  %v1301_v8 = vadd.f32 %v1293_v30, %v1221_v58  ;;  %v1225_v9 = vadd.f32 %v1217_v60, %v1145_v23  ;;  %v1299_v22 = vadd.f32 %v1291_v51, %v1219_v17  ;;  %v8582_v62 = vpop.permute.xlu1 %1824  ;;  %v8585_v52 = vpop.permute.xlu0 %1582  ;;  %v11411_v23 = vld [vmem:[#allocation73_spill] sm:$0xff]  ;;  %v11417_v58 = vld [vmem:[#allocation80_spill] sm:$0xff] }
 0x1ed   : > { %v1314_v27 = vmul.f32 %v11408_v42, %v7204_v10  ;;  %v1317_v63 = vmul.f32 %v11408_v42, %v7210_v11  ;;  %v1223_v19 = vadd.f32 %v1215_v29, %v8495_v43  ;;  %v1302_v31 = vadd.f32 %v1294_v7, %v1222_v1  ;;  %v11413_v29 = vld [vmem:[#allocation78_spill] sm:$0xff]  ;;  %v11460_v56 = vld [vmem:[#allocation29_spill] sm:$0xff] }
 0x1ee   : > { %v1323_v61 = vadd.f32 %v1315_v59, %v1300_v12  ;;  %v1324_v0 = vadd.f32 %v1316_v44, %v1301_v8  ;;  %v1295_v24 = vmul.f32 %v1278_v50, %v11407_v39  ;;  %v1353_v60 = vsel %vm1346_vm12, %v11411_v23, %v11410_v45  ;;  %v11415_v39 = vld [vmem:[#allocation79_spill] sm:$0xff] }
 0x1ef   : > { %v8592_v10 = vadd.f32 %v1321_v21, %v1306_v53  ;;  %v1304_v17 = vadd.f32 %v1296_v37, %v1224_v40  ;;  %v1305_v11 = vadd.f32 %v1297_v47, %v1225_v9  ;;  %v1352_v43 = vsel %vm1346_vm12, %v11410_v45, %v11412_v33 }
 0x1f0   : > { %v1349_v55 = vsel %vm1346_vm12, %v11414_v5, %v11413_v29  ;;  %v1348_v36 = vsel %vm1346_vm12, %v11413_v29, %v11415_v39  ;;  %v1319_v30 = vmul.f32 %v11408_v42, %v7222_v15  ;;  %v1351_v51 = vsel %vm1346_vm12, %v11412_v33, %v11416_v35  ;;  %v8616_v7 = vpop.permute.xlu1 %1890  ;;  %v8625_v21 = vpop.permute.xlu0 %1892  ;;  %v11420_v29 = vld [vmem:[#allocation83_spill] sm:$0xff] }
 0x1f1   : > { %v1354_v1 = vsel %vm1346_vm12, %v11417_v58, %v11411_v23  ;;  %v1322_v59 = vadd.f32 %v1314_v27, %v1299_v22  ;;  %v1325_v44 = vadd.f32 %v1317_v63, %v1302_v31  ;;  %v1365_v40 = vrot.slane %v1353_v60, %v7191_v4  ;;  %v11419_v31 = vld [vmem:[#allocation81_spill] sm:$0xff] }
 0x1f2   : > { %v1350_v15 = vsel %vm1346_vm12, %v11416_v35, %v11414_v5  ;;  %v1320_v53 = vmul.f32 %v11408_v42, %v7238_v20  ;;  %v1318_v37 = vmul.f32 %v11408_v42, %v7226_v16  ;;  %v1369_v47 = vrot.slane %v1352_v43, %v7191_v4  ;;  %v11418_v16 = vld [vmem:[#allocation82_spill] sm:$0xff] }
 0x1f3   : > { %v1381_v50 = vrot.slane %v1349_v55, %v7191_v4  ;;  %v1385_v12 = vrot.slane %v1348_v36, %v7191_v4  ;;  %v1347_v8 = vsel %vm1346_vm12, %v11415_v39, %v11417_v58  ;;  %v1373_v9 = vrot.slane %v1351_v51, %v7191_v4 }
 0x1f4   : > { %v1393_v20 = vrot.slane %v1354_v1, %v7191_v4  ;;  %v1327_v22 = vadd.f32 %v1319_v30, %v1304_v17  ;;  %v1303_v27 = vadd.f32 %v1295_v24, %v1223_v19  ;;  %v1377_v63 = vrot.slane %v1350_v15, %v7191_v4  ;;  %v8646_v60 = vpop.permute.xlu1 %1894  ;;  %v8650_v24 = vpop.permute.xlu0 %1896  ;;  %v11421_v30 = vld [vmem:[#allocation87_spill] sm:$0xff]  ;;  %v11422_v1 = vld [vmem:[#allocation84_spill] sm:$0xff]  ;;  %v11423_v15 = vld [vmem:[#allocation85_spill] sm:$0xff] }
 0x1f5   : > { %v1434_v42 = vsel %vm1426_vm13, %v7903_v18, %v11418_v16  ;;  %v1394_v45 = vmul.f32 %v1365_v40, %v11419_v31  ;;  %v1395_v23 = vmul.f32 %v1369_v47, %v11419_v31  ;;  %v1389_v33 = vrot.slane %v1347_v8, %v7191_v4 }
 0x1f6   : > { %v1396_v17 = vmul.f32 %v1373_v9, %v11419_v31  ;;  %v1328_v19 = vadd.f32 %v1320_v53, %v1305_v11  ;;  %v1326_v43 = vadd.f32 %v1318_v37, %v1303_v27  ;;  %v1433_v5 = vsel %vm1426_vm13, %v11418_v16, %v11420_v29 }
 0x1f7   : > { %v1397_v55 = vmul.f32 %v1377_v63, %v11419_v31  ;;  %v1399_v39 = vmul.f32 %v1385_v12, %v11419_v31  ;;  %v1398_v36 = vmul.f32 %v1381_v50, %v11419_v31  ;;  %v1428_v35 = vsel %vm1426_vm13, %v11421_v30, %v7897_v6 }
 0x1f8   : > { %v1427_v11 = vsel %vm1426_vm13, %v7897_v6, %v7903_v18  ;;  %v1473_v51 = vrot.slane %v1434_v42, %v7191_v4  ;;  %v1401_v58 = vmul.f32 %v1393_v20, %v11419_v31  ;;  %v1432_v40 = vsel %vm1426_vm13, %v11420_v29, %v11422_v1  ;;  %v8677_v50 = vpop.permute.xlu1 %1898  ;;  %v11424_v6 = vld [vmem:[#allocation86_spill] sm:$0xff] }
 0x1f9   : > { %v1431_v53 = vsel %vm1426_vm13, %v11422_v1, %v11423_v15  ;;  %v1402_v37 = vadd.f32 %v1394_v45, %v1322_v59  ;;  %v1403_v47 = vadd.f32 %v1395_v23, %v1323_v61  ;;  %v1445_v18 = vrot.slane %v1433_v5, %v7191_v4  ;;  %v8690_v59 = vpop.permute.xlu0 %2079  ;;  %v11426_v45 = vld [vmem:[#allocation88_spill] sm:$0xff] }
 0x1fa   : > { %v1430_v12 = vsel %vm1426_vm13, %v11423_v15, %v11424_v6  ;;  %v1429_v8 = vsel %vm1426_vm13, %v11424_v6, %v11421_v30  ;;  %v1400_v9 = vmul.f32 %v1389_v33, %v11419_v31  ;;  %11425 = vst [vmem:[#allocation31_spill] sm:$0xff] %v8690_v59  ;;  %v1465_v61 = vrot.slane %v1428_v35, %v7191_v4 }
 0x1fb   : > { %v1469_v20 = vrot.slane %v1427_v11, %v7191_v4  ;;  %v1404_v27 = vadd.f32 %v1396_v17, %v1324_v0  ;;  %v1405_v63 = vadd.f32 %v1397_v55, %v1325_v44  ;;  %v1449_v16 = vrot.slane %v1432_v40, %v7191_v4 }
 0x1fc   : > { %v1453_v42 = vrot.slane %v1431_v53, %v7191_v4  ;;  %v1481_v23 = vmul.f32 %v1473_v51, %v11426_v45  ;;  %v1474_v29 = vmul.f32 %v1445_v18, %v11426_v45  ;;  %v1457_v5 = vrot.slane %v1430_v12, %v7191_v4  ;;  %v8700_v30 = vpop.permute.xlu1 %1904 }
 0x1fd   : > { %v1461_v31 = vrot.slane %v1429_v8, %v7191_v4  ;;  %v1407_v33 = vadd.f32 %v1399_v39, %v1327_v22  ;;  %v1406_v35 = vadd.f32 %v1398_v36, %v1326_v43  ;;  %v1409_v11 = vadd.f32 %v1401_v58, %v8592_v10  ;;  %v8705_v55 = vpop.permute.xlu0 %1660  ;;  %v11427_v39 = vld [vmem:[#allocation89_spill] sm:$0xff] }
 0x1fe   : > { %v1475_v0 = vmul.f32 %v1449_v16, %v11426_v45  ;;  %v1476_v44 = vmul.f32 %v1453_v42, %v11426_v45  ;;  %v1408_v17 = vadd.f32 %v1400_v9, %v1328_v19  ;;  %v1477_v51 = vmul.f32 %v1457_v5, %v11426_v45 }
 0x1ff   : > { %v1479_v1 = vmul.f32 %v1465_v61, %v11426_v45  ;;  %v1480_v40 = vmul.f32 %v1469_v20, %v11426_v45  ;;  %v1478_v22 = vmul.f32 %v1461_v31, %v11426_v45  ;;  %v1513_v10 = vsel %vm1506_vm14, %v11427_v39, %v7966_v28 }
 0x200   : > { %v1508_v19 = vsel %vm1506_vm14, %v8037_v2, %v8040_v38  ;;  %v8719_v43 = vadd.f32 %v1481_v23, %v1409_v11  ;;  %v1482_v36 = vadd.f32 %v1474_v29, %v1402_v37  ;;  %v1512_v58 = vsel %vm1506_vm14, %v7966_v28, %v7973_v14  ;;  %v8737_v18 = vpop.permute.xlu1 %1662 }
 0x201   : > { %v1511_v15 = vsel %vm1506_vm14, %v7973_v14, %v8015_v48  ;;  %v1510_v53 = vsel %vm1506_vm14, %v8015_v48, %v8020_v46  ;;  %v1509_v37 = vsel %vm1506_vm14, %v8020_v46, %v8037_v2  ;;  %v1507_v28 = vsel %vm1506_vm14, %v8040_v38, %v8076_v13  ;;  %v8748_v12 = vpop.permute.xlu0 %1970 }
 0x202   : > { %v1514_v14 = vsel %vm1506_vm14, %v8076_v13, %v11427_v39  ;;  %v1483_v48 = vadd.f32 %v1475_v0, %v1403_v47  ;;  %v1484_v6 = vadd.f32 %v1476_v44, %v1404_v27  ;;  %v1525_v46 = vrot.slane %v1513_v10, %v7191_v4 }
 0x203   : > { %v1545_v2 = vrot.slane %v1508_v19, %v7191_v4  ;;  %v1485_v8 = vadd.f32 %v1477_v51, %v1405_v63  ;;  %v1487_v9 = vadd.f32 %v1479_v1, %v1407_v33  ;;  %v1529_v61 = vrot.slane %v1512_v58, %v7191_v4  ;;  %v11428_v33 = vld [vmem:[#allocation8_spill] sm:$0xff] }
 0x204   : > { %v1533_v38 = vrot.slane %v1511_v15, %v7191_v4  ;;  %v1537_v20 = vrot.slane %v1510_v53, %v7191_v4  ;;  %v1541_v13 = vrot.slane %v1509_v37, %v7191_v4  ;;  %v1549_v47 = vrot.slane %v1507_v28, %v7191_v4  ;;  %v8764_v42 = vpop.permute.xlu1 %1972  ;;  %v11429_v28 = vld [vmem:[#allocation10_spill] sm:$0xff] }
 0x205   : > { %v1553_v27 = vrot.slane %v1514_v14, %v7191_v4  ;;  %v1593_v63 = vsel %vm1586_vm15, %v8104_v57, %v8111_v49  ;;  %v1554_v16 = vmul.f32 %v1525_v46, %v8091_v25  ;;  %v1590_v45 = vsel %vm1586_vm15, %v8158_v54, %v8176_v32  ;;  %v8776_v31 = vpop.permute.xlu0 %1974 }
 0x206   : > { %v1589_v23 = vsel %vm1586_vm15, %v8176_v32, %v8179_v41  ;;  %v1555_v29 = vmul.f32 %v1529_v61, %v8091_v25  ;;  %v1556_v5 = vmul.f32 %v1533_v38, %v8091_v25  ;;  %v1592_v11 = vsel %vm1586_vm15, %v8111_v49, %v11428_v33 }
 0x207   : > { %v1591_v0 = vsel %vm1586_vm15, %v11428_v33, %v8158_v54  ;;  %v1557_v44 = vmul.f32 %v1537_v20, %v8091_v25  ;;  %v1559_v32 = vmul.f32 %v1545_v2, %v8091_v25  ;;  %v1605_v51 = vrot.slane %v1593_v63, %v7191_v4 }
 0x208   : > { %v1488_v1 = vadd.f32 %v1480_v40, %v1408_v17  ;;  %v1486_v39 = vadd.f32 %v1478_v22, %v1406_v35  ;;  %v1558_v10 = vmul.f32 %v1541_v13, %v8091_v25  ;;  %v1617_v19 = vrot.slane %v1590_v45, %v7191_v4  ;;  %v8793_v53 = vpop.permute.xlu1 %1976  ;;  %v11435_v45 = vld [vmem:[#allocation16_spill] sm:$0xff] }
 0x209   : > { %v1621_v58 = vrot.slane %v1589_v23, %v7191_v4  ;;  %v1561_v49 = vmul.f32 %v1553_v27, %v8091_v25  ;;  %v1562_v15 = vadd.f32 %v1554_v16, %v1482_v36  ;;  %v1609_v54 = vrot.slane %v1592_v11, %v7191_v4  ;;  %v8799_v35 = vpop.permute.xlu0 %1978  ;;  %v11430_v36 = vld [vmem:[#allocation12_spill] sm:$0xff]  ;;  %v11436_v11 = vld [vmem:[#allocation17_spill] sm:$0xff] }
 0x20a   : > { %v1613_v37 = vrot.slane %v1591_v0, %v7191_v4  ;;  %v1634_v14 = vmul.f32 %v1605_v51, %v11429_v28  ;;  %v1560_v17 = vmul.f32 %v1549_v47, %v8091_v25  ;;  %v1563_v40 = vadd.f32 %v1555_v29, %v1483_v48  ;;  %v11431_v25 = vld [vmem:[#allocation14_spill] sm:$0xff]  ;;  %v11432_v47 = vld [vmem:[#allocation13_spill] sm:$0xff]  ;;  %v11439_v51 = vld [vmem:[#allocation19_spill] sm:$0xff] }
 0x20b   : > { %v1564_v22 = vadd.f32 %v1556_v5, %v1484_v6  ;;  %v1565_v46 = vadd.f32 %v1557_v44, %v1485_v8  ;;  %v8802_v2 = vadd.f32 %v1559_v32, %v1487_v9  ;;  %v1594_v61 = vsel %vm1586_vm15, %v11430_v36, %v8104_v57  ;;  %v11433_v6 = vld [vmem:[#allocation15_spill] sm:$0xff]  ;;  %v11437_v44 = vld [vmem:[#allocation25_spill] sm:$0xff]  ;;  %v11438_v32 = vld [vmem:[#allocation20_spill] sm:$0xff] }
 0x20c   : > { %v1635_v38 = vmul.f32 %v1609_v54, %v11429_v28  ;;  %v1636_v20 = vmul.f32 %v1613_v37, %v11429_v28  ;;  %v1566_v13 = vadd.f32 %v1558_v10, %v1486_v39  ;;  %v1673_v48 = vsel %vm1666_vm0, %v11432_v47, %v11431_v25  ;;  %v8820_v57 = vpop.permute.xlu1 %2159 }
 0x20d   : > { %v1672_v8 = vsel %vm1666_vm0, %v11431_v25, %v11433_v6  ;;  %v1637_v9 = vmul.f32 %v1617_v19, %v11429_v28  ;;  %v1638_v27 = vmul.f32 %v1621_v58, %v11429_v28  ;;  %11434 = vst [vmem:[#allocation32_spill] sm:$0xff] %v8820_v57  ;;  %v1569_v63 = vadd.f32 %v1561_v49, %v8719_v43  ;;  %v8829_v5 = vpop.permute.xlu0 %1984  ;;  %v11440_v58 = vld [vmem:[#allocation21_spill] sm:$0xff] }
 0x20e   : > { %v1642_v16 = vadd.f32 %v1634_v14, %v1562_v15  ;;  %v1671_v23 = vsel %vm1666_vm0, %v11433_v6, %v11435_v45  ;;  %v8827_v29 = vadd.f32 %v1560_v17, %v1488_v1  ;;  %v1633_v33 = vrot.slane %v1594_v61, %v7191_v4  ;;  %v8853_v15 = vld [vmem:[%s11063_s1] sm:$0xff]  ;;  %v11444_v6 = vld [vmem:[#allocation6_spill] sm:$0xff] }
 0x20f   : > { %v1670_v0 = vsel %vm1666_vm0, %v11435_v45, %v11436_v11  ;;  %v1674_v43 = vsel %vm1666_vm0, %v11437_v44, %v11432_v47  ;;  %v1753_v1 = vsel %vm1746_vm1, %v11439_v51, %v11438_v32  ;;  %v1685_v39 = vrot.slane %v1673_v48, %v7191_v4  ;;  %v11442_v47 = vld [vmem:[#allocation22_spill] sm:$0xff] }
 0x210   : > { %v1643_v10 = vadd.f32 %v1635_v38, %v1563_v40  ;;  %v1689_v19 = vrot.slane %v1672_v8, %v7191_v4  ;;  %v1752_v49 = vsel %vm1746_vm1, %v11438_v32, %v11440_v58  ;;  %v1644_v54 = vadd.f32 %v1636_v20, %v1564_v22  ;;  %v8858_v61 = vpop.permute.xlu1 %1740 }
 0x211   : > { %v1693_v37 = vrot.slane %v1671_v23, %v7191_v4  ;;  %v1645_v14 = vadd.f32 %v1637_v9, %v1565_v46  ;;  %v8856_v17 = vadd.f32 %v1638_v27, %v1566_v13  ;;  %v1697_v40 = vrot.slane %v1670_v0, %v7191_v4  ;;  %v8868_v22 = vpop.permute.xlu0 %1742  ;;  %v11447_v27 = vld [vmem:[#allocation9_spill] sm:$0xff]  ;;  %v11448_v0 = vld [vmem:[#allocation23_spill] sm:$0xff] }
 0x212   : > { %v1713_v38 = vrot.slane %v1674_v43, %v7191_v4  ;;  %v1765_v25 = vrot.slane %v1753_v1, %v7191_v4  ;;  %v1751_v48 = vsel %vm1746_vm1, %v11440_v58, %v11442_v47  ;;  %v1641_v46 = vmul.f32 %v1633_v33, %v11429_v28 }
 0x213   : > { %11441 = vst [vmem:[#allocation33_spill] sm:$0xff] %v8856_v17  ;;  %v1769_v20 = vrot.slane %v1752_v49, %v7191_v4  ;;  %v8874_v13 = vrot.slane %v8853_v15, %v7191_v4  ;;  %v11445_v8 = vsub.s32 1, %v11444_v6  ;;  %v1714_v45 = vmul.f32 %v1685_v39, %v11447_v27  ;;  %v11451_v49 = vld [vmem:[#allocation26_spill] sm:$0xff] }
 0x214   : > { %v1715_v23 = vmul.f32 %v1689_v19, %v11447_v27  ;;  %v1750_v33 = vsel %vm1746_vm1, %v11442_v47, %v11448_v0  ;;  %v11449_v43 = vsub.s32 2, %v11444_v6  ;;  %v1716_v1 = vmul.f32 %v1693_v37, %v11447_v27  ;;  %v8898_v19 = vpop.permute.xlu1 %2050 }
 0x215   : > { %11443 = vst [vmem:[#allocation34_spill] sm:$0xff] %v8874_v13  ;;  %v8879_v9 = vrot.slane %v8853_v15, %v11445_v8  ;;  %v1773_v58 = vrot.slane %v1751_v48, %v7191_v4  ;;  %v1754_v39 = vsel %vm1746_vm1, %v11451_v49, %v11439_v51  ;;  %11452 = vst [vmem:[#allocation43_spill] sm:$0xff] %v8898_v19  ;;  %v11453_v8 = vsub.s32 3, %v11444_v6  ;;  %v11456_v13 = vld [vmem:[#allocation27_spill] sm:$0xff]  ;;  %v11457_v48 = vld [vmem:[#allocation28_spill] sm:$0xff]  ;;  %v8912_v59 = vpop.permute.xlu0 %2052 }
 0x216   : > { %v8890_v32 = vrot.slane %v8853_v15, %v11449_v43  ;;  %v1721_v43 = vmul.f32 %v1713_v38, %v11447_v27  ;;  %v1833_v57 = vsel %vm1826_vm2, %v11457_v48, %v11456_v13  ;;  %11458 = vst [vmem:[#allocation38_spill] sm:$0xff] %v8912_v59  ;;  %v1649_v51 = vadd.f32 %v1641_v46, %v1569_v63 }
 0x217   : > { %11446 = vst [vmem:[#allocation35_spill] sm:$0xff] %v8879_v9  ;;  %v8903_v47 = vrot.slane %v8853_v15, %v11453_v8  ;;  %v1717_v9 = vmul.f32 %v1697_v40, %v11447_v27  ;;  %v1777_v49 = vrot.slane %v1750_v33, %v7191_v4  ;;  %v11459_v8 = vsub.s32 7, %v11444_v6 }
 0x218   : > { %11450 = vst [vmem:[#allocation36_spill] sm:$0xff] %v8890_v32  ;;  %v11455_v32 = vld [vmem:[#allocation11_spill] sm:$0xff]  ;;  %v1722_v38 = vadd.f32 %v1714_v45, %v1642_v16  ;;  %v1832_v17 = vsel %vm1826_vm2, %v11456_v13, %v11460_v56  ;;  %v1724_v59 = vadd.f32 %v1716_v1, %v1644_v54  ;;  %v1845_v46 = vrot.slane %v1833_v57, %v7191_v4  ;;  %v8932_v33 = vpop.permute.xlu1 %2054 }
 0x219   : > { %11454 = vst [vmem:[#allocation37_spill] sm:$0xff] %v8903_v47  ;;  %v1794_v37 = vmul.f32 %v1765_v25, %v11455_v32  ;;  %v1795_v19 = vmul.f32 %v1769_v20, %v11455_v32  ;;  %v8919_v40 = vrot.slane %v8853_v15, %v11459_v8  ;;  %v1723_v47 = vadd.f32 %v1715_v23, %v1643_v10  ;;  %v8939_v54 = vpop.permute.xlu0 %2056 }
 0x21a   : > { %v1793_v25 = vrot.slane %v1754_v39, %v7191_v4  ;;  %v1796_v63 = vmul.f32 %v1773_v58, %v11455_v32  ;;  %v1831_v20 = vsel %vm1826_vm2, %v11460_v56, %v8549_v26  ;;  %v1725_v16 = vadd.f32 %v1717_v9, %v1645_v14 }
 0x21b   : > { %v1729_v10 = vadd.f32 %v1721_v43, %v1649_v51  ;;  %v1802_v45 = vadd.f32 %v1794_v37, %v1722_v38  ;;  %v1830_v13 = vsel %vm1826_vm2, %v8549_v26, %v8563_v34  ;;  %v1803_v57 = vadd.f32 %v1795_v19, %v1723_v47 }
 0x21c   : > { %v1797_v23 = vmul.f32 %v1777_v49, %v11455_v32  ;;  %v1849_v1 = vrot.slane %v1832_v17, %v7191_v4  ;;  %v1834_v56 = vsel %vm1826_vm2, %v8582_v62, %v11457_v48  ;;  %v1801_v14 = vmul.f32 %v1793_v25, %v11455_v32  ;;  %v11461_v49 = vld [vmem:[#allocation18_spill] sm:$0xff]  ;;  %v8963_v43 = vpop.permute.xlu1 %2058 }
 0x21d   : > { %v1853_v9 = vrot.slane %v1831_v20, %v7191_v4  ;;  %v1587_v26 = vsel %vm1586_vm15, %v8585_v52, %v11430_v36  ;;  %v1588_v58 = vsel %vm1586_vm15, %v8179_v41, %v8585_v52  ;;  %v1804_v17 = vadd.f32 %v1796_v63, %v1724_v59  ;;  %v8978_v59 = vpop.permute.xlu0 %2239 }
 0x21e   : > { %v1874_v39 = vmul.f32 %v1845_v46, %v11461_v49  ;;  %v1857_v19 = vrot.slane %v1830_v13, %v7191_v4  ;;  %v1913_v47 = vsel %vm1906_vm3, %v8616_v7, %v8625_v21  ;;  %v1873_v37 = vrot.slane %v1834_v56, %v7191_v4 }
 0x21f   : > { %v1912_v36 = vsel %vm1906_vm3, %v8625_v21, %v8646_v60  ;;  %v1911_v41 = vsel %vm1906_vm3, %v8646_v60, %v8650_v24  ;;  %v1910_v52 = vsel %vm1906_vm3, %v8650_v24, %v8677_v50  ;;  %v1875_v48 = vmul.f32 %v1849_v1, %v11461_v49 }
 0x220   : > { %v1625_v51 = vrot.slane %v1588_v58, %v7191_v4  ;;  %v1629_v8 = vrot.slane %v1587_v26, %v7191_v4  ;;  %v1914_v21 = vsel %vm1906_vm3, %v8700_v30, %v8616_v7  ;;  %v1805_v38 = vadd.f32 %v1797_v23, %v1725_v16  ;;  %v8996_v1 = vpop.permute.xlu1 %2064  ;;  %v11462_v58 = vld [vmem:[#allocation24_spill] sm:$0xff] }
 0x221   : > { %v1809_v60 = vadd.f32 %v1801_v14, %v1729_v10  ;;  %v1876_v25 = vmul.f32 %v1853_v9, %v11461_v49  ;;  %v1925_v63 = vrot.slane %v1913_v47, %v7191_v4  ;;  %v1929_v24 = vrot.slane %v1912_v36, %v7191_v4  ;;  %v9002_v56 = vpop.permute.xlu0 %1820 }
 0x222   : > { %v1933_v46 = vrot.slane %v1911_v41, %v7191_v4  ;;  %v1937_v20 = vrot.slane %v1910_v52, %v7191_v4  ;;  %v1669_v13 = vsel %vm1666_vm0, %v11436_v11, %v8705_v55  ;;  %v1882_v7 = vadd.f32 %v1874_v39, %v1802_v45 }
 0x223   : > { %v1877_v16 = vmul.f32 %v1857_v19, %v11461_v49  ;;  %v1881_v10 = vmul.f32 %v1873_v37, %v11461_v49  ;;  %v1953_v23 = vrot.slane %v1914_v21, %v7191_v4  ;;  %v1883_v14 = vadd.f32 %v1875_v48, %v1803_v57 }
 0x224   : > { %v1639_v9 = vmul.f32 %v1625_v51, %v11429_v28  ;;  %v1640_v26 = vmul.f32 %v1629_v8, %v11429_v28  ;;  %v1668_v11 = vsel %vm1666_vm0, %v8705_v55, %v8737_v18  ;;  %v1884_v45 = vadd.f32 %v1876_v25, %v1804_v17  ;;  %v9023_v17 = vpop.permute.xlu1 %1822 }
 0x225   : > { %v1954_v39 = vmul.f32 %v1925_v63, %v11462_v58  ;;  %v1701_v19 = vrot.slane %v1669_v13, %v7191_v4  ;;  %v1667_v47 = vsel %vm1666_vm0, %v8737_v18, %v11437_v44  ;;  %v1955_v57 = vmul.f32 %v1929_v24, %v11462_v58  ;;  %v9027_v18 = vpop.permute.xlu0 %2130 }
 0x226   : > { %v1956_v37 = vmul.f32 %v1933_v46, %v11462_v58  ;;  %v1957_v28 = vmul.f32 %v1937_v20, %v11462_v58  ;;  %v1993_v55 = vsel %vm1986_vm4, %v8748_v12, %v8764_v42  ;;  %v1885_v36 = vadd.f32 %v1877_v16, %v1805_v38 }
 0x227   : > { %v1889_v41 = vadd.f32 %v1881_v10, %v1809_v60  ;;  %v1961_v52 = vmul.f32 %v1953_v23, %v11462_v58  ;;  %v1705_v48 = vrot.slane %v1668_v11, %v7191_v4  ;;  %vm2146_vm9 = vcmp.lt.s32.totalorder %v7768_v3, 87  ;;  %v11464_v11 = vld [vmem:[#allocation30_spill] sm:$0xff] }
 0x228   : > { %v1647_v44 = vadd.f32 %v1639_v9, %v8802_v2  ;;  %v1648_v51 = vadd.f32 %v1640_v26, %v8827_v29  ;;  %v1709_v8 = vrot.slane %v1667_v47, %v7191_v4  ;;  %v1992_v21 = vsel %vm1986_vm4, %v8764_v42, %v8776_v31  ;;  %v2133_v20 = vpop.permute.xlu1 %2132  ;;  %v11463_v9 = vld [vmem:[#allocation33_spill] sm:$0xff]  ;;  %v11466_v47 = vld [vmem:[#allocation38_spill] sm:$0xff] }
 0x229   : > { %v1962_v38 = vadd.f32 %v1954_v39, %v1882_v7  ;;  %v1718_v60 = vmul.f32 %v1701_v19, %v11447_v27  ;;  %v2005_v25 = vrot.slane %v1993_v55, %v7191_v4  ;;  %v1991_v63 = vsel %vm1986_vm4, %v8776_v31, %v8793_v53  ;;  %v2135_v31 = vpop.permute.xlu0 %2134  ;;  %v11465_v39 = vld [vmem:[#allocation26_spill] sm:$0xff] }
 0x22a   : > { %v1963_v2 = vadd.f32 %v1955_v57, %v1883_v14  ;;  %v1964_v24 = vadd.f32 %v1956_v37, %v1884_v45  ;;  %v1965_v29 = vadd.f32 %v1957_v28, %v1885_v36  ;;  %v1990_v46 = vsel %vm1986_vm4, %v8793_v53, %v8799_v35 }
 0x22b   : > { %v1969_v42 = vadd.f32 %v1961_v52, %v1889_v41  ;;  %v1719_v13 = vmul.f32 %v1705_v48, %v11447_v27  ;;  %v2009_v7 = vrot.slane %v1992_v21, %v7191_v4  ;;  %v1994_v16 = vsel %vm1986_vm4, %v8829_v5, %v8748_v12 }
 0x22c   : > { %v1720_v10 = vmul.f32 %v1709_v8, %v11447_v27  ;;  %v2013_v23 = vrot.slane %v1991_v63, %v7191_v4  ;;  %v1749_v53 = vsel %vm1746_vm1, %v11448_v0, %v8858_v61  ;;  %v1748_v14 = vsel %vm1746_vm1, %v8858_v61, %v8868_v22  ;;  %v11467_v0 = vld [vmem:[#allocation43_spill] sm:$0xff]  ;;  %v2137_v28 = vpop.permute.xlu1 %2136 }
 0x22d   : > { %v1726_v26 = vadd.f32 %v1718_v60, %v11463_v9  ;;  %v2034_v45 = vmul.f32 %v2005_v25, %v11464_v11  ;;  %v2017_v12 = vrot.slane %v1990_v46, %v7191_v4  ;;  %v1747_v27 = vsel %vm1746_vm1, %v8868_v22, %v11465_v39  ;;  %v9090_v52 = vpop.permute.xlu0 %2138 }
 0x22e   : > { %v2033_v19 = vrot.slane %v1994_v16, %v7191_v4  ;;  %v2073_v57 = vsel %vm2066_vm5, %v11467_v0, %v11466_v47  ;;  %v2072_v61 = vsel %vm2066_vm5, %v11466_v47, %v8932_v33  ;;  %v2071_v37 = vsel %vm2066_vm5, %v8932_v33, %v8939_v54 }
 0x22f   : > { %v2035_v22 = vmul.f32 %v2009_v7, %v11464_v11  ;;  %v1781_v55 = vrot.slane %v1749_v53, %v7191_v4  ;;  %v1785_v36 = vrot.slane %v1748_v14, %v7191_v4  ;;  %v2070_v41 = vsel %vm2066_vm5, %v8939_v54, %v8963_v43 }
 0x230   : > { %v1727_v48 = vadd.f32 %v1719_v13, %v1647_v44  ;;  %v1728_v8 = vadd.f32 %v1720_v10, %v1648_v51  ;;  %v2036_v21 = vmul.f32 %v2013_v23, %v11464_v11  ;;  %v1789_v33 = vrot.slane %v1747_v27, %v7191_v4  ;;  %v9108_v7 = vpop.permute.xlu1 %2144 }
 0x231   : > { %vm2226_vm10 = vcmp.lt.s32.totalorder %v7768_v3, 86  ;;  %v2085_v60 = vrot.slane %v2073_v57, %v7191_v4  ;;  %v2089_v25 = vrot.slane %v2072_v61, %v7191_v4  ;;  %v2093_v63 = vrot.slane %v2071_v37, %v7191_v4  ;;  %v9112_v14 = vpop.permute.xlu0 %1900 }
 0x232   : > { %v2074_v54 = vsel %vm2066_vm5, %v8996_v1, %v11467_v0  ;;  %v2037_v44 = vmul.f32 %v2017_v12, %v11464_v11  ;;  %v2041_v51 = vmul.f32 %v2033_v19, %v11464_v11  ;;  %v2097_v46 = vrot.slane %v2070_v41, %v7191_v4 }
 0x233   : > { %v2153_v13 = vsel %vm2146_vm9, %v9027_v18, %v2133_v20  ;;  %v2042_v16 = vadd.f32 %v2034_v45, %v1962_v38  ;;  %v2043_v10 = vadd.f32 %v2035_v22, %v1963_v2  ;;  %v1798_v23 = vmul.f32 %v1781_v55, %v11455_v32  ;;  %v11468_v38 = vld [vmem:[#allocation31_spill] sm:$0xff] }
 0x234   : > { %v1799_v53 = vmul.f32 %v1785_v36, %v11455_v32  ;;  %v1800_v9 = vmul.f32 %v1789_v33, %v11455_v32  ;;  %v2113_v12 = vrot.slane %v2074_v54, %v7191_v4  ;;  %v1829_v39 = vsel %vm1826_vm2, %v8563_v34, %v9002_v56  ;;  %v9127_v37 = vpop.permute.xlu1 %1902 }
 0x235   : > { %v2152_v27 = vsel %vm2146_vm9, %v2133_v20, %v2135_v31  ;;  %v2114_v2 = vmul.f32 %v2085_v60, %v11468_v38  ;;  %v2115_v45 = vmul.f32 %v2089_v25, %v11468_v38  ;;  %v2116_v19 = vmul.f32 %v2093_v63, %v11468_v38  ;;  %v2211_v36 = vpop.permute.xlu0 %2210  ;;  %v11469_v25 = vld [vmem:[#allocation32_spill] sm:$0xff] }
 0x236   : > { %v2165_v47 = vrot.slane %v2153_v13, %v7191_v4  ;;  %v2044_v0 = vadd.f32 %v2036_v21, %v1964_v24  ;;  %v2045_v32 = vadd.f32 %v2037_v44, %v1965_v29  ;;  %v2049_v57 = vadd.f32 %v2041_v51, %v1969_v42 }
 0x237   : > { %v2117_v61 = vmul.f32 %v2097_v46, %v11468_v38  ;;  %v1861_v34 = vrot.slane %v1829_v39, %v7191_v4  ;;  %v2169_v22 = vrot.slane %v2152_v27, %v7191_v4  ;;  %v2151_v20 = vsel %vm2146_vm9, %v2135_v31, %v2137_v28 }
 0x238   : > { %v2150_v55 = vsel %vm2146_vm9, %v2137_v28, %v9090_v52  ;;  %v1806_v41 = vadd.f32 %v1798_v23, %v1726_v26  ;;  %v9136_v24 = vadd.f32 %v1799_v53, %v1727_v48  ;;  %v9138_v29 = vadd.f32 %v1800_v9, %v1728_v8  ;;  %v2213_v48 = vpop.permute.xlu1 %2212 }
 0x239   : > { %v2121_v42 = vmul.f32 %v2113_v12, %v11468_v38  ;;  %v2122_v21 = vadd.f32 %v2114_v2, %v2042_v16  ;;  %v2123_v33 = vadd.f32 %v2115_v45, %v2043_v10  ;;  %v2124_v60 = vadd.f32 %v2116_v19, %v2044_v0  ;;  %v2215_v13 = vpop.permute.xlu0 %2214 }
 0x23a   : > { %v2194_v63 = vmul.f32 %v2165_v47, %v11469_v25  ;;  %v2125_v54 = vadd.f32 %v2117_v61, %v2045_v32  ;;  %v1828_v31 = vsel %vm1826_vm2, %v9002_v56, %v9023_v17  ;;  %v2173_v28 = vrot.slane %v2151_v20, %v7191_v4 }
 0x23b   : > { %v2177_v26 = vrot.slane %v2150_v55, %v7191_v4  ;;  %v1878_v8 = vmul.f32 %v1861_v34, %v11461_v49  ;;  %v2195_v44 = vmul.f32 %v2169_v22, %v11469_v25  ;;  %v2154_v51 = vsel %vm2146_vm9, %v9108_v7, %v9027_v18 }
 0x23c   : > { %v2233_v46 = vsel %vm2226_vm10, %v2211_v36, %v2213_v48  ;;  %v2129_v16 = vadd.f32 %v2121_v42, %v2049_v57  ;;  %v1827_v56 = vsel %vm1826_vm2, %v9023_v17, %v8582_v62  ;;  %v2232_v23 = vsel %vm2226_vm10, %v2213_v48, %v2215_v13  ;;  %v2217_v2 = vpop.permute.xlu1 %2216 }
 0x23d   : > { %v2245_v10 = vrot.slane %v2233_v46, %v7191_v4  ;;  %v1865_v53 = vrot.slane %v1828_v31, %v7191_v4  ;;  %v2202_v9 = vadd.f32 %v2194_v63, %v2122_v21  ;;  %v1909_v18 = vsel %vm1906_vm3, %v8677_v50, %v9112_v14  ;;  %v9177_v50 = vpop.permute.xlu0 %2218 }
 0x23e   : > { %v2249_v12 = vrot.slane %v2232_v23, %v7191_v4  ;;  %v2196_v39 = vmul.f32 %v2173_v28, %v11469_v25  ;;  %v2197_v27 = vmul.f32 %v2177_v26, %v11469_v25  ;;  %v2193_v62 = vrot.slane %v2154_v51, %v7191_v4 }
 0x23f   : > { %v2274_v17 = vmul.f32 %v2245_v10, %v8978_v59  ;;  %v1869_v45 = vrot.slane %v1827_v56, %v7191_v4  ;;  %v2203_v19 = vadd.f32 %v2195_v44, %v2123_v33  ;;  %v2231_v0 = vsel %vm2226_vm10, %v2215_v13, %v2217_v2 }
 0x240   : > { %v2275_v47 = vmul.f32 %v2249_v12, %v8978_v59  ;;  %v1941_v32 = vrot.slane %v1909_v18, %v7191_v4  ;;  %v2253_v61 = vrot.slane %v2231_v0, %v7191_v4  ;;  %v2230_v34 = vsel %vm2226_vm10, %v2217_v2, %v9177_v50  ;;  %v9188_v28 = vpop.permute.xlu1 %2293 }
 0x241   : > { %v2282_v57 = vadd.f32 %v2274_v17, %v2202_v9  ;;  %v1886_v22 = vadd.f32 %v1878_v8, %v1806_v41  ;;  %v1879_v20 = vmul.f32 %v1865_v53, %v11461_v49  ;;  %v2257_v42 = vrot.slane %v2230_v34, %v7191_v4  ;;  %v9197_v44 = vpop.permute.xlu0 %2224 }
 0x242   : > { %v2283_v55 = vadd.f32 %v2275_v47, %v2203_v19  ;;  %v2204_v21 = vadd.f32 %v2196_v39, %v2124_v60  ;;  %v2205_v33 = vadd.f32 %v2197_v27, %v2125_v54  ;;  %v2201_v63 = vmul.f32 %v2193_v62, %v11469_v25  ;;  %v11470_v39 = vld [vmem:[#allocation34_spill] sm:$0xff]  ;;  %v11471_v27 = vld [vmem:[#allocation35_spill] sm:$0xff] }
 0x243   : > { %v2276_v31 = vmul.f32 %v2253_v61, %v8978_v59  ;;  %v1908_v26 = vsel %vm1906_vm3, %v9112_v14, %v9127_v37  ;;  %v2277_v41 = vmul.f32 %v2257_v42, %v8978_v59  ;;  %v2296_v48 = vadd.f32 %v9188_v28, %v2282_v57 }
 0x244   : > { %v2297_v8 = vadd.f32 %v9188_v28, %v2283_v55  ;;  %v1880_v60 = vmul.f32 %v1869_v45, %v11461_v49  ;;  %v1958_v54 = vmul.f32 %v1941_v32, %v11462_v58  ;;  %v2234_v46 = vsel %vm2226_vm10, %v9197_v44, %v2211_v36  ;;  %v1981_v18 = vpop.permute.xlu1 %1980 }
 0x245   : > { %v2284_v51 = vadd.f32 %v2276_v31, %v2204_v21  ;;  %v2285_v13 = vadd.f32 %v2277_v41, %v2205_v33  ;;  %v2304_v56 = vmax.f32 %v2296_v48, 0.0  ;;  %v2273_v10 = vrot.slane %v2234_v46, %v7191_v4  ;;  %v1983_v17 = vpop.permute.xlu0 %1982  ;;  %v11473_v21 = vld [vmem:[#allocation37_spill] sm:$0xff] }
 0x246   : > { %v2305_v14 = vmax.f32 %v2297_v8, 0.0  ;;  %v2209_v23 = vadd.f32 %v2201_v63, %v2129_v16  ;;  %v1907_v53 = vsel %vm1906_vm3, %v9127_v37, %v8700_v30  ;;  %v1945_v49 = vrot.slane %v1908_v26, %v7191_v4 }
 0x247   : > { %v2298_v9 = vadd.f32 %v9188_v28, %v2284_v51  ;;  %v2299_v12 = vadd.f32 %v9188_v28, %v2285_v13  ;;  %v9213_v36 = vmul.f32 %v11470_v39, %v2304_v56  ;;  %v2281_v16 = vmul.f32 %v2273_v10, %v8978_v59 }
 0x248   : > { %v9216_v62 = vmul.f32 %v11471_v27, %v2305_v14  ;;  %v1989_v30 = vsel %vm1986_vm4, %v8799_v35, %v1981_v18  ;;  %v1987_v37 = vsel %vm1986_vm4, %v1983_v17, %v8829_v5  ;;  %v1988_v45 = vsel %vm1986_vm4, %v1981_v18, %v1983_v17  ;;  %v11472_v5 = vld [vmem:[#allocation36_spill] sm:$0xff]  ;;  %v2061_v55 = vpop.permute.xlu1 %2060 }
 0x249   : > { %v2306_v2 = vmax.f32 %v2298_v9, 0.0  ;;  %v1949_v19 = vrot.slane %v1907_v53, %v7191_v4  ;;  %v2307_v47 = vmax.f32 %v2299_v12, 0.0  ;;  %v2289_v0 = vadd.f32 %v2281_v16, %v2209_v23  ;;  %2387 = vrot.lane.b32.xlu1 %v9213_v36, %s7069_s13  ;;  %v2063_v26 = vpop.permute.xlu0 %2062 }
 0x24a   : > { %v2021_v32 = vrot.slane %v1989_v30, %v7191_v4  ;;  %2389 = vrot.lane.b32.xlu0 %v9216_v62, %s7069_s13  ;;  %v1887_v35 = vadd.f32 %v1879_v20, %v9136_v24  ;;  %v1888_v57 = vadd.f32 %v1880_v60, %v9138_v29  ;;  %v2025_v34 = vrot.slane %v1988_v45, %v7191_v4 }
 0x24b   : > { %v9236_v61 = vmul.f32 %v11472_v5, %v2306_v2  ;;  %v1966_v42 = vadd.f32 %v1958_v54, %v1886_v22  ;;  %v9240_v33 = vmul.f32 %v11473_v21, %v2307_v47  ;;  %v2303_v63 = vadd.f32 %v9188_v28, %v2289_v0 }
 0x24c   : > { %v2029_v31 = vrot.slane %v1987_v37, %v7191_v4  ;;  %v1959_v41 = vmul.f32 %v1945_v49, %v11462_v58  ;;  %v2069_v24 = vsel %vm2066_vm5, %v8963_v43, %v2061_v55  ;;  %v2067_v29 = vsel %vm2066_vm5, %v2063_v26, %v8996_v1  ;;  %v2141_v51 = vpop.permute.xlu1 %2140 }
 0x24d   : > { %v2068_v22 = vsel %vm2066_vm5, %v2061_v55, %v2063_v26  ;;  %v1960_v20 = vmul.f32 %v1949_v19, %v11462_v58  ;;  %v2311_v48 = vmax.f32 %v2303_v63, 0.0  ;;  %v2038_v8 = vmul.f32 %v2021_v32, %v11464_v11  ;;  %2391 = vrot.lane.b32.xlu1 %v9236_v61, %s7069_s13  ;;  %v2143_v56 = vpop.permute.xlu0 %2142 }
 0x24e   : > { %v2101_v60 = vrot.slane %v2069_v24, %v7191_v4  ;;  %2393 = vrot.lane.b32.xlu0 %v9240_v33, %s7069_s13  ;;  %v2039_v43 = vmul.f32 %v2025_v34, %v11464_v11  ;;  %v2105_v1 = vrot.slane %v2068_v22, %v7191_v4  ;;  %v2109_v54 = vrot.slane %v2067_v29, %v7191_v4 }
 0x24f   : > { %v9264_v58 = vmul.f32 %v8919_v40, %v2311_v48  ;;  %v2040_v46 = vmul.f32 %v2029_v31, %v11464_v11  ;;  %v2149_v13 = vsel %vm2146_vm9, %v9090_v52, %v2141_v51  ;;  %v7086_v14 = vmov 0.0  }
 0x250   : > { %2485 = vmatprep.mubr.f32.mxu0 %v7086_v14  ;;  %2562 = vmatprep.mubr.f32.mxu1 %v7086_v14  ;;  %v1967_v10 = vadd.f32 %v1959_v41, %v1887_v35  ;;  %v2118_v23 = vmul.f32 %v2101_v60, %v11468_v38  ;;  %v2181_v53 = vrot.slane %v2149_v13, %v7191_v4  ;;  %v2221_v30 = vpop.permute.xlu1 %2220  ;;  %v11474_v22 = vsub.s32 4, %v11444_v6 }
 0x251   : > { %v2147_v49 = vsel %vm2146_vm9, %v2143_v56, %v9108_v7  ;;  %v1968_v11 = vadd.f32 %v1960_v20, %v1888_v57  ;;  %v2120_v9 = vmul.f32 %v2109_v54, %v11468_v38  ;;  %v2148_v52 = vsel %vm2146_vm9, %v2141_v51, %v2143_v56  ;;  %2401 = vrot.lane.b32.xlu1 %v9264_v58, %s7069_s13  ;;  %v2223_v47 = vpop.permute.xlu0 %2222 }
 0x252   : > { %v2189_v18 = vrot.slane %v2147_v49, %v7191_v4  ;;  %v2046_v12 = vadd.f32 %v2038_v8, %v1966_v42  ;;  %v2119_v16 = vmul.f32 %v2105_v1, %v11468_v38  ;;  %v2198_v17 = vmul.f32 %v2181_v53, %v11469_v25 }
 0x253   : > { %v2185_v2 = vrot.slane %v2148_v52, %v7191_v4  ;;  %v2047_v7 = vadd.f32 %v2039_v43, %v1967_v10  ;;  %v2048_v37 = vadd.f32 %v2040_v46, %v1968_v11  ;;  %v2229_v19 = vsel %vm2226_vm10, %v9177_v50, %v2221_v30 }
 0x254   : > { %v2200_v45 = vmul.f32 %v2189_v18, %v11469_v25  ;;  %v2126_v0 = vadd.f32 %v2118_v23, %v2046_v12  ;;  %v2261_v35 = vrot.slane %v2229_v19, %v7191_v4  ;;  %v2227_v38 = vsel %vm2226_vm10, %v2223_v47, %v9197_v44  ;;  %v6651_v12 = vld [vmem:[%s11066_s4 + $0x10] sm:$0xff] }
 0x255   : > { %v2199_v32 = vmul.f32 %v2185_v2, %v11469_v25  ;;  %v2128_v57 = vadd.f32 %v2120_v9, %v2048_v37  ;;  %v2228_v34 = vsel %vm2226_vm10, %v2221_v30, %v2223_v47  ;;  %v2269_v55 = vrot.slane %v2227_v38, %v7191_v4  ;;  %v6652_v2 = vld [vmem:[%s11066_s4 + $0x18] sm:$0xff]  ;;  %v5519_v47 = vld [vmem:[%s11067_s5 + $0x8] sm:$0xff] }
 0x256   : > { %v2127_v42 = vadd.f32 %v2119_v16, %v2047_v7  ;;  %v2206_v63 = vadd.f32 %v2198_v17, %v2126_v0  ;;  %v2278_v50 = vmul.f32 %v2261_v35, %v8978_v59  ;;  %v2265_v31 = vrot.slane %v2228_v34, %v7191_v4  ;;  %v5518_v7 = vld [vmem:[%s11067_s5] sm:$0xff]  ;;  %v5627_v34 = vld [vmem:[%s11068_s6 + $0x8] sm:$0xff] }
 0x257   : > { %v2208_v26 = vadd.f32 %v2200_v45, %v2128_v57  ;;  %v2280_v25 = vmul.f32 %v2269_v55, %v8978_v59  ;;  %v9305_v20 = vrot.slane %v8853_v15, %v11474_v22  ;;  %v11475_v1 = vsub.s32 5, %v11444_v6 }
 0x258   : > { %v2207_v41 = vadd.f32 %v2199_v32, %v2127_v42  ;;  %v2286_v24 = vadd.f32 %v2278_v50, %v2206_v63  ;;  %v2279_v29 = vmul.f32 %v2265_v31, %v8978_v59  ;;  %v11476_v46 = vsub.s32 6, %v11444_v6  ;;  %v5626_v32 = vld [vmem:[%s11068_s6] sm:$0xff]  ;;  %v6739_v42 = vld [vmem:[%s11068_s6 + $0x10] sm:$0xff]  ;;  %v6740_v31 = vld [vmem:[%s11068_s6 + $0x18] sm:$0xff] }
 0x259   : > { %v2288_v44 = vadd.f32 %v2280_v25, %v2208_v26  ;;  %v9312_v54 = vrot.slane %v8853_v15, %v11475_v1  ;;  %vm2414_vm13 = vcmask 64512  }
 0x25a   : > { %v2300_v48 = vadd.f32 %v9188_v28, %v2286_v24  ;;  %v2287_v8 = vadd.f32 %v2279_v29, %v2207_v41  ;;  %v9321_v13 = vrot.slane %v8853_v15, %v11476_v46  ;;  %v2385_v41 = vld [vmem:[%s11066_s4] sm:$0xff] }
 0x25b   : > { %v2302_v60 = vadd.f32 %v9188_v28, %v2288_v44 }
 0x25c   : > { %v2308_v43 = vmax.f32 %v2300_v48, 0.0  ;;  %v2301_v51 = vadd.f32 %v9188_v28, %v2287_v8  ;;  %v2386_v48 = vld [vmem:[%s11066_s4 + $0x8] sm:$0xff] }
 0x25d   : > { %v2310_v10 = vmax.f32 %v2302_v60, 0.0 }
 0x25e   : > { %v9316_v59 = vmul.f32 %v9305_v20, %v2308_v43  ;;  %v2309_v56 = vmax.f32 %v2301_v51, 0.0 }
 0x25f   : > { %v9329_v53 = vmul.f32 %v9321_v13, %v2310_v10 }
 0x260   : > { %v9324_v23 = vmul.f32 %v9312_v54, %v2309_v56  ;;  %2395 = vrot.lane.b32.xlu0 %v9316_v59, %s7069_s13 }
 0x262   : > { %2397 = vrot.lane.b32.xlu1 %v9324_v23, %s7069_s13 }
 0x264   : > { %2399 = vrot.lane.b32.xlu0 %v9329_v53, %s7069_s13 }
 0x266   : > { %2361 = vrot.lane.b32.xlu1 %v9213_v36, %s7068_s27 }
 0x268   : > { %2363 = vrot.lane.b32.xlu0 %v9216_v62, %s7068_s27 }
 0x26a   : > { %2365 = vrot.lane.b32.xlu1 %v9236_v61, %s7068_s27 }
 0x26c   : > { %2367 = vrot.lane.b32.xlu0 %v9240_v33, %s7068_s27 }
 0x26e   : > { %2375 = vrot.lane.b32.xlu1 %v9264_v58, %s7068_s27 }
 0x270   : > { %2369 = vrot.lane.b32.xlu0 %v9316_v59, %s7068_s27 }
 0x272   : > { %2371 = vrot.lane.b32.xlu1 %v9324_v23, %s7068_s27 }
 0x274   : > { %2373 = vrot.lane.b32.xlu0 %v9329_v53, %s7068_s27 }
 0x276   : > { %3043 = vrot.lane.b32.xlu1 %v9213_v36, %s7070_s19 }
 0x278   : > { %3045 = vrot.lane.b32.xlu0 %v9216_v62, %s7070_s19 }
 0x27a   : > { %3047 = vrot.lane.b32.xlu1 %v9236_v61, %s7070_s19 }
 0x27c   : > { %3049 = vrot.lane.b32.xlu0 %v9240_v33, %s7070_s19 }
 0x27e   : > { %3057 = vrot.lane.b32.xlu1 %v9264_v58, %s7070_s19 }
 0x280   : > { %3051 = vrot.lane.b32.xlu0 %v9316_v59, %s7070_s19 }
 0x282   : > { %3053 = vrot.lane.b32.xlu1 %v9324_v23, %s7070_s19 }
 0x284   : > { %3055 = vrot.lane.b32.xlu0 %v9329_v53, %s7070_s19 }
 0x286   : > { %3400 = vrot.lane.b32.xlu1 %v9213_v36, %s7073_s11 }
 0x288   : > { %3402 = vrot.lane.b32.xlu0 %v9216_v62, %s7073_s11 }
 0x28a   : > { %3404 = vrot.lane.b32.xlu1 %v9236_v61, %s7073_s11 }
 0x28c   : > { %3406 = vrot.lane.b32.xlu0 %v9240_v33, %s7073_s11 }
 0x28e   : > { %3414 = vrot.lane.b32.xlu1 %v9264_v58, %s7073_s11 }
 0x290   : > { %3408 = vrot.lane.b32.xlu0 %v9316_v59, %s7073_s11 }
 0x292   : > { %3410 = vrot.lane.b32.xlu1 %v9324_v23, %s7073_s11 }
 0x294   : > { %3412 = vrot.lane.b32.xlu0 %v9329_v53, %s7073_s11 }
 0x296   : > { %4092 = vrot.lane.b32.xlu1 %v9216_v62, %s7074_s22 }
 0x298   : > { %4094 = vrot.lane.b32.xlu0 %v9236_v61, %s7074_s22 }
 0x29a   : > { %4096 = vrot.lane.b32.xlu1 %v9240_v33, %s7074_s22 }
 0x29c   : > { %4098 = vrot.lane.b32.xlu0 %v9316_v59, %s7074_s22 }
 0x29e   : > { %4090 = vrot.lane.b32.xlu1 %v9213_v36, %s7074_s22 }
 0x2a0   : > { %4100 = vrot.lane.b32.xlu0 %v9324_v23, %s7074_s22 }
 0x2a2   : > { %4102 = vrot.lane.b32.xlu1 %v9329_v53, %s7074_s22 }
 0x2a4   : > { %4104 = vrot.lane.b32.xlu0 %v9264_v58, %s7074_s22 }
 0x2a6   : > { %4449 = vrot.lane.b32.xlu1 %v9216_v62, %s7077_s21 }
 0x2a8   : > { %4451 = vrot.lane.b32.xlu0 %v9236_v61, %s7077_s21 }
 0x2aa   : > { %4453 = vrot.lane.b32.xlu1 %v9240_v33, %s7077_s21 }
 0x2ac   : > { %4455 = vrot.lane.b32.xlu0 %v9316_v59, %s7077_s21 }
 0x2ae   : > { %4447 = vrot.lane.b32.xlu1 %v9213_v36, %s7077_s21 }
 0x2b0   : > { %4457 = vrot.lane.b32.xlu0 %v9324_v23, %s7077_s21 }
 0x2b2   : > { %4459 = vrot.lane.b32.xlu1 %v9329_v53, %s7077_s21 }
 0x2b4   : > { %4461 = vrot.lane.b32.xlu0 %v9264_v58, %s7077_s21 }
 0x2b6   : > { %4806 = vrot.lane.b32.xlu1 %v9216_v62, %s7078_s18 }
 0x2b8   : > { %4808 = vrot.lane.b32.xlu0 %v9236_v61, %s7078_s18 }
 0x2ba   : > { %4810 = vrot.lane.b32.xlu1 %v9240_v33, %s7078_s18 }
 0x2bb   : > { %v2388_v15 = vpop.permute.xlu1 %2387 }
 0x2bc   : > { %v2390_v28 = vpop.permute.xlu0 %2389  ;;  %4812 = vrot.lane.b32.xlu0 %v9316_v59, %s7078_s18 }
 0x2bd   : > { %v2409_v49 = vsel %vm923_vm7, %v2388_v15, %v2390_v28 }
 0x2be   : > { %2421 = vmatprep.subr.mxu0 %v2409_v49  ;;  %4804 = vrot.lane.b32.xlu1 %v9213_v36, %s7078_s18 }
 0x2bf   : > { %v2392_v11 = vpop.permute.xlu1 %2391 }
 0x2c0   : > { %v2394_v9 = vpop.permute.xlu0 %2393  ;;  %4814 = vrot.lane.b32.xlu0 %v9324_v23, %s7078_s18  ;;  %v2408_v18 = vsel %vm923_vm7, %v2390_v28, %v2392_v11 }
 0x2c1   : > { %v2407_v52 = vsel %vm923_vm7, %v2392_v11, %v2394_v9 }
 0x2c2   : > { %2498 = vmatprep.subr.mxu1 %v2407_v52  ;;  %4816 = vrot.lane.b32.xlu1 %v9329_v53, %s7078_s18  ;;  %v6669_v52 = vld [vmem:[%s11066_s4 + $0x20] sm:$0xff] }
 0x2c3   : > { %2499 = vmatpush1.msra.mxu1 %v2408_v18  ;;  %v2402_v16 = vpop.permute.xlu1 %2401 }
 0x2c4   : > { %6655 = vmatmul.mubr.msk.f32.vlgmr.msra.gmra.mrb[0].mxu1 %vm2414_vm13, %v6651_v12  ;;  %4818 = vrot.lane.b32.xlu0 %v9264_v58, %s7078_s18  ;;  %v2410_v17 = vsel %vm923_vm7, %v2402_v16, %v2388_v15 }
 0x2c5   : > { %2568 = vmatprep.mubr.f32.mxu1 %v7086_v14  ;;  %2422 = vmatpush1.msra.mxu0 %v2410_v17 }
 0x2c6   : > { %5163 = vrot.lane.b32.xlu1 %v9216_v62, %s7079_s24  ;;  %6653 = vmatmul.mubr.msk.f32.vlgmr.msra.gmra.mrb[0].mxu0 %vm2414_vm13, %v6651_v12 }
 0x2c7   : > { %2491 = vmatprep.mubr.f32.mxu0 %v7086_v14 }
 0x2c8   : > { %6656 = vmatmul.mubr.msk.f32.gmra.mrb[2].mxu1 %vm2414_vm13, %v6652_v2  ;;  %5165 = vrot.lane.b32.xlu0 %v9236_v61, %s7079_s24 }
 0x2c9   : > { %2716 = vmatprep.mubr.f32.mxu1 %v7086_v14 }
 0x2ca   : > { %5167 = vrot.lane.b32.xlu1 %v9240_v33, %s7079_s24  ;;  %6654 = vmatmul.mubr.msk.f32.gmra.mrb[2].mxu0 %vm2414_vm13, %v6652_v2 }
 0x2cb   : > { %2639 = vmatprep.mubr.f32.mxu0 %v7086_v14 }
 0x2cc   : > { %5169 = vrot.lane.b32.xlu0 %v9316_v59, %s7079_s24 }
 0x2ce   : > { %5161 = vrot.lane.b32.xlu1 %v9213_v36, %s7079_s24 }
 0x2d0   : > { %5171 = vrot.lane.b32.xlu0 %v9324_v23, %s7079_s24 }
 0x2d2   : > { %5173 = vrot.lane.b32.xlu1 %v9329_v53, %s7079_s24  ;;  %v2396_v30 = vpop.permute.xlu0 %2395 }
 0x2d3   : > { %v2406_v45 = vsel %vm923_vm7, %v2394_v9, %v2396_v30 }
 0x2d4   : > { %v2398_v37 = vpop.permute.xlu1 %2397  ;;  %5175 = vrot.lane.b32.xlu0 %v9264_v58, %s7079_s24 }
 0x2d5   : > { %v2405_v19 = vsel %vm923_vm7, %v2396_v30, %v2398_v37 }
 0x2d6   : > { %5522 = vperm.xlu1 %6964, %v5518_v7   ;;  %2575 = vmatprep.subr.mxu0 %v2405_v19  ;;  %v2400_v0 = vpop.permute.xlu0 %2399 }
 0x2d7   : > { %2576 = vmatpush1.msra.mxu0 %v2406_v45  ;;  %v2403_v35 = vsel %vm923_vm7, %v2400_v0, %v2402_v16  ;;  %v2404_v38 = vsel %vm923_vm7, %v2398_v37, %v2400_v0 }
 0x2d8   : > { %v2362_v57 = vpop.permute.xlu1 %2361  ;;  %5527 = vperm.xlu0 %6963, %v5519_v47   ;;  %2652 = vmatprep.subr.mxu1 %v2403_v35 }
 0x2d9   : > { %6657 = vmatmul.mubr.msk.f32.vlgmr.msra.gmra.mrb[4].mxu0 %vm2414_vm13, %v6651_v12  ;;  %2653 = vmatpush1.msra.mxu1 %v2404_v38 }
 0x2da   : > { %5630 = vperm.xlu1 %6964, %v5626_v32   ;;  %6659 = vmatmul.mubr.msk.f32.vlgmr.msra.gmra.mrb[4].mxu1 %vm2414_vm13, %v6651_v12  ;;  %v2364_v55 = vpop.permute.xlu0 %2363 }
 0x2db   : > { %2645 = vmatprep.mubr.f32.mxu0 %v7086_v14  ;;  %v2383_v63 = vsel %vm843_vm6, %v2362_v57, %v2364_v55  ;;  %2722 = vmatprep.mubr.f32.mxu1 %v7086_v14 }
 0x2dc   : > { %v2366_v50 = vpop.permute.xlu1 %2365  ;;  %5635 = vperm.xlu0 %6963, %v5627_v34   ;;  %2735 = vmatprep.subr.mxu0 %v2383_v63 }
 0x2dd   : > { %6658 = vmatmul.mubr.msk.f32.gmra.mrb[6].mxu0 %vm2414_vm13, %v6652_v2  ;;  %v2382_v29 = vsel %vm843_vm6, %v2364_v55, %v2366_v50  ;;  %v6679_v55 = vld [vmem:[%s11066_s4 + $0x30] sm:$0xff] }
 0x2de   : > { %5723 = vperm.xlu1 %6964, %v6739_v42   ;;  %6660 = vmatmul.mubr.msk.f32.gmra.mrb[6].mxu1 %vm2414_vm13, %v6652_v2  ;;  %v2368_v26 = vpop.permute.xlu0 %2367  ;;  %v6670_v2 = vld [vmem:[%s11066_s4 + $0x28] sm:$0xff] }
 0x2df   : > { %2799 = vmatprep.mubr.f32.mxu0 %v7086_v14  ;;  %v2381_v25 = vsel %vm843_vm6, %v2366_v50, %v2368_v26  ;;  %2876 = vmatprep.mubr.f32.mxu1 %v7086_v14 }
 0x2e0   : > { %v2376_v24 = vpop.permute.xlu1 %2375  ;;  %5728 = vperm.xlu0 %6963, %v6740_v31   ;;  %2812 = vmatprep.subr.mxu1 %v2381_v25 }
 0x2e1   : > { %v2384_v44 = vsel %vm843_vm6, %v2376_v24, %v2362_v57  ;;  %2813 = vmatpush1.msra.mxu1 %v2382_v29 }
 0x2e2   : > { %2736 = vmatpush1.msra.mxu0 %v2384_v44  ;;  %6663 = vmatmul.mubr.msk.f32.vlgmr.msra.gmra.mrb[0].mxu1 %vm2414_vm13, %v2385_v41  ;;  %v2370_v22 = vpop.permute.xlu0 %2369 }
 0x2e3   : > { %6661 = vmatmul.mubr.msk.f32.vlgmr.msra.gmra.mrb[0].mxu0 %vm2414_vm13, %v2385_v41  ;;  %2882 = vmatprep.mubr.f32.mxu1 %v7086_v14  ;;  %v2380_v43 = vsel %vm843_vm6, %v2368_v26, %v2370_v22  ;;  %v6680_v26 = vld [vmem:[%s11066_s4 + $0x38] sm:$0xff] }
 0x2e4   : > { %v2372_v8 = vpop.permute.xlu1 %2371  ;;  %2805 = vmatprep.mubr.f32.mxu0 %v7086_v14 }
 0x2e5   : > { %v2379_v60 = vsel %vm843_vm6, %v2370_v22, %v2372_v8 }
 0x2e6   : > { %2889 = vmatprep.subr.mxu0 %v2379_v60  ;;  %6664 = vmatmul.mubr.msk.f32.gmra.mrb[2].mxu1 %vm2414_vm13, %v2386_v48  ;;  %v2374_v1 = vpop.permute.xlu0 %2373 }
 0x2e7   : > { %6662 = vmatmul.mubr.msk.f32.gmra.mrb[2].mxu0 %vm2414_vm13, %v2386_v48  ;;  %v2377_v51 = vsel %vm843_vm6, %v2374_v1, %v2376_v24  ;;  %v2378_v46 = vsel %vm843_vm6, %v2372_v8, %v2374_v1  ;;  %3030 = vmatprep.mubr.f32.mxu1 %v7086_v14 }
 0x2e8   : > { %2890 = vmatpush1.msra.mxu0 %v2380_v43  ;;  %v3044_v56 = vpop.permute.xlu1 %3043  ;;  %2953 = vmatprep.mubr.f32.mxu0 %v7086_v14 }
 0x2e9   : > { %2966 = vmatprep.subr.mxu1 %v2377_v51 }
 0x2ea   : > { %2967 = vmatpush1.msra.mxu1 %v2378_v46  ;;  %v3046_v10 = vpop.permute.xlu0 %3045 }
 0x2eb   : > { %6665 = vmatmul.mubr.msk.f32.vlgmr.msra.gmra.mrb[4].mxu0 %vm2414_vm13, %v2385_v41  ;;  %6667 = vmatmul.mubr.msk.f32.vlgmr.msra.gmra.mrb[4].mxu1 %vm2414_vm13, %v2385_v41  ;;  %v3065_v15 = vsel %vm1003_vm8, %v3044_v56, %v3046_v10 }
 0x2ec   : > { %v3048_v28 = vpop.permute.xlu1 %3047  ;;  %2959 = vmatprep.mubr.f32.mxu0 %v7086_v14  ;;  %3076 = vmatprep.subr.mxu0 %v3065_v15 }
 0x2ed   : > { %3036 = vmatprep.mubr.f32.mxu1 %v7086_v14  ;;  %v3064_v18 = vsel %vm1003_vm8, %v3046_v10, %v3048_v28 }
 0x2ee   : > { %v3050_v49 = vpop.permute.xlu0 %3049 }
 0x2ef   : > { %6666 = vmatmul.mubr.msk.f32.gmra.mrb[6].mxu0 %vm2414_vm13, %v2386_v48  ;;  %6668 = vmatmul.mubr.msk.f32.gmra.mrb[6].mxu1 %vm2414_vm13, %v2386_v48  ;;  %v3063_v11 = vsel %vm1003_vm8, %v3048_v28, %v3050_v49 }
 0x2f0   : > { %v3058_v9 = vpop.permute.xlu1 %3057  ;;  %3140 = vmatprep.mubr.f32.mxu0 %v7086_v14  ;;  %3153 = vmatprep.subr.mxu1 %v3063_v11  ;;  %v6699_v11 = vld [vmem:[%s11066_s4 + $0x50] sm:$0xff] }
 0x2f1   : > { %v3066_v12 = vsel %vm1003_vm8, %v3058_v9, %v3044_v56  ;;  %3154 = vmatpush1.msra.mxu1 %v3064_v18  ;;  %3217 = vmatprep.mubr.f32.mxu1 %v7086_v14 }
 0x2f2   : > { %3077 = vmatpush1.msra.mxu0 %v3066_v12  ;;  %v3052_v16 = vpop.permute.xlu0 %3051 }
 0x2f3   : > { %6671 = vmatmul.mubr.msk.f32.vlgmr.msra.gmra.mrb[0].mxu0 %vm2414_vm13, %v6669_v52  ;;  %6673 = vmatmul.mubr.msk.f32.vlgmr.msra.gmra.mrb[0].mxu1 %vm2414_vm13, %v6669_v52  ;;  %v3062_v7 = vsel %vm1003_vm8, %v3050_v49, %v3052_v16 }
 0x2f4   : > { %v3054_v17 = vpop.permute.xlu1 %3053  ;;  %3146 = vmatprep.mubr.f32.mxu0 %v7086_v14  ;;  %3223 = vmatprep.mubr.f32.mxu1 %v7086_v14 }
 0x2f5   : > { %v3061_v30 = vsel %vm1003_vm8, %v3052_v16, %v3054_v17 }
 0x2f6   : > { %3230 = vmatprep.subr.mxu0 %v3061_v30  ;;  %v3056_v37 = vpop.permute.xlu0 %3055 }
 0x2f7   : > { %6672 = vmatmul.mubr.msk.f32.gmra.mrb[2].mxu0 %vm2414_vm13, %v6670_v2  ;;  %6674 = vmatmul.mubr.msk.f32.gmra.mrb[2].mxu1 %vm2414_vm13, %v6670_v2  ;;  %v3059_v45 = vsel %vm1003_vm8, %v3056_v37, %v3058_v9  ;;  %v3060_v19 = vsel %vm1003_vm8, %v3054_v17, %v3056_v37  ;;  %v6700_v17 = vld [vmem:[%s11066_s4 + $0x58] sm:$0xff] }
 0x2f8   : > { %3231 = vmatpush1.msra.mxu0 %v3062_v7  ;;  %v3401_v47 = vpop.permute.xlu1 %3400  ;;  %3294 = vmatprep.mubr.f32.mxu0 %v7086_v14 }
 0x2f9   : > { %3307 = vmatprep.subr.mxu1 %v3059_v45  ;;  %3371 = vmatprep.mubr.f32.mxu1 %v7086_v14 }
 0x2fa   : > { %3308 = vmatpush1.msra.mxu1 %v3060_v19  ;;  %v3403_v0 = vpop.permute.xlu0 %3402 }
 0x2fb   : > { %6675 = vmatmul.mubr.msk.f32.vlgmr.msra.gmra.mrb[4].mxu0 %vm2414_vm13, %v6669_v52  ;;  %6677 = vmatmul.mubr.msk.f32.vlgmr.msra.gmra.mrb[4].mxu1 %vm2414_vm13, %v6669_v52  ;;  %v3422_v32 = vsel %vm1243_vm11, %v3401_v47, %v3403_v0 }
 0x2fc   : > { %v3405_v35 = vpop.permute.xlu1 %3404  ;;  %3300 = vmatprep.mubr.f32.mxu0 %v7086_v14  ;;  %3433 = vmatprep.subr.mxu0 %v3422_v32 }
 0x2fd   : > { %3377 = vmatprep.mubr.f32.mxu1 %v7086_v14  ;;  %v3421_v42 = vsel %vm1243_vm11, %v3403_v0, %v3405_v35 }
 0x2fe   : > { %v3407_v38 = vpop.permute.xlu0 %3406 }
 0x2ff   : > { %6676 = vmatmul.mubr.msk.f32.gmra.mrb[6].mxu0 %vm2414_vm13, %v6670_v2  ;;  %6678 = vmatmul.mubr.msk.f32.gmra.mrb[6].mxu1 %vm2414_vm13, %v6670_v2  ;;  %v3420_v57 = vsel %vm1243_vm11, %v3405_v35, %v3407_v38 }
 0x300   : > { %v3415_v34 = vpop.permute.xlu1 %3414  ;;  %3497 = vmatprep.mubr.f32.mxu0 %v7086_v14  ;;  %3510 = vmatprep.subr.mxu1 %v3420_v57  ;;  %v6709_v57 = vld [vmem:[%s11066_s4 + $0x60] sm:$0xff] }
 0x301   : > { %v3423_v63 = vsel %vm1243_vm11, %v3415_v34, %v3401_v47  ;;  %3511 = vmatpush1.msra.mxu1 %v3421_v42  ;;  %3574 = vmatprep.mubr.f32.mxu1 %v7086_v14 }
 0x302   : > { %3434 = vmatpush1.msra.mxu0 %v3423_v63  ;;  %v3409_v50 = vpop.permute.xlu0 %3408 }
 0x303   : > { %6681 = vmatmul.mubr.msk.f32.vlgmr.msra.gmra.mrb[0].mxu0 %vm2414_vm13, %v6679_v55  ;;  %6683 = vmatmul.mubr.msk.f32.vlgmr.msra.gmra.mrb[0].mxu1 %vm2414_vm13, %v6679_v55  ;;  %v3419_v41 = vsel %vm1243_vm11, %v3407_v38, %v3409_v50 }
 0x304   : > { %v3411_v31 = vpop.permute.xlu1 %3410  ;;  %3503 = vmatprep.mubr.f32.mxu0 %v7086_v14  ;;  %3580 = vmatprep.mubr.f32.mxu1 %v7086_v14 }
 0x305   : > { %v3418_v25 = vsel %vm1243_vm11, %v3409_v50, %v3411_v31 }
 0x306   : > { %3587 = vmatprep.subr.mxu0 %v3418_v25  ;;  %v3413_v24 = vpop.permute.xlu0 %3412 }
 0x307   : > { %6682 = vmatmul.mubr.msk.f32.gmra.mrb[2].mxu0 %vm2414_vm13, %v6680_v26  ;;  %6684 = vmatmul.mubr.msk.f32.gmra.mrb[2].mxu1 %vm2414_vm13, %v6680_v26  ;;  %v3416_v29 = vsel %vm1243_vm11, %v3413_v24, %v3415_v34  ;;  %v3417_v44 = vsel %vm1243_vm11, %v3411_v31, %v3413_v24  ;;  %v6710_v31 = vld [vmem:[%s11066_s4 + $0x68] sm:$0xff] }
 0x308   : > { %3588 = vmatpush1.msra.mxu0 %v3419_v41  ;;  %v4093_v22 = vpop.permute.xlu1 %4092  ;;  %3651 = vmatprep.mubr.f32.mxu0 %v7086_v14 }
 0x309   : > { %3766 = vmatprep.subr.mxu0 %v9216_v62  ;;  %3664 = vmatprep.subr.mxu1 %v3416_v29 }
 0x30a   : > { %3665 = vmatpush1.msra.mxu1 %v3417_v44  ;;  %3728 = vmatprep.mubr.f32.mxu1 %v7086_v14  ;;  %v4095_v48 = vpop.permute.xlu0 %4094 }
 0x30b   : > { %6685 = vmatmul.mubr.msk.f32.vlgmr.msra.gmra.mrb[4].mxu0 %vm2414_vm13, %v6679_v55  ;;  %6687 = vmatmul.mubr.msk.f32.vlgmr.msra.gmra.mrb[4].mxu1 %vm2414_vm13, %v6679_v55 }
 0x30c   : > { %3767 = vmatpush1.msra.mxu0 %v9213_v36  ;;  %v4097_v8 = vpop.permute.xlu1 %4096  ;;  %3843 = vmatprep.subr.mxu1 %v9240_v33  ;;  %v6689_v36 = vld [vmem:[%s11066_s4 + $0x40] sm:$0xff] }
 0x30d   : > { %3920 = vmatprep.subr.mxu0 %v9324_v23  ;;  %3844 = vmatpush1.msra.mxu1 %v9236_v61  ;;  %v6690_v23 = vld [vmem:[%s11066_s4 + $0x48] sm:$0xff]  ;;  %v4110_v56 = vsel %vm1346_vm12, %v4095_v48, %v4097_v8 }
 0x30e   : > { %3657 = vmatprep.mubr.f32.mxu0 %v7086_v14  ;;  %3997 = vmatprep.subr.mxu1 %v9264_v58  ;;  %v4099_v62 = vpop.permute.xlu0 %4098  ;;  %v4111_v58 = vsel %vm1346_vm12, %v4093_v22, %v4095_v48 }
 0x30f   : > { %6686 = vmatmul.mubr.msk.f32.gmra.mrb[6].mxu0 %vm2414_vm13, %v6680_v26  ;;  %3734 = vmatprep.mubr.f32.mxu1 %v7086_v14  ;;  %v4109_v43 = vsel %vm1346_vm12, %v4097_v8, %v4099_v62 }
 0x310   : > { %v4091_v60 = vpop.permute.xlu1 %4090  ;;  %6688 = vmatmul.mubr.msk.f32.gmra.mrb[6].mxu1 %vm2414_vm13, %v6680_v26  ;;  %3830 = vmatprep.mubr.f32.mxu0 %v7086_v14 }
 0x311   : > { %3907 = vmatprep.mubr.f32.mxu1 %v7086_v14  ;;  %v4112_v51 = vsel %vm1346_vm12, %v4091_v60, %v4093_v22 }
 0x312   : > { %v4101_v61 = vpop.permute.xlu0 %4100 }
 0x313   : > { %6691 = vmatmul.mubr.msk.f32.vlgmr.msra.gmra.mrb[0].mxu0 %vm2414_vm13, %v6689_v36  ;;  %v4108_v52 = vsel %vm1346_vm12, %v4099_v62, %v4101_v61 }
 0x314   : > { %3921 = vmatpush1.msra.mxu0 %v9316_v59  ;;  %v4103_v33 = vpop.permute.xlu1 %4102  ;;  %6693 = vmatmul.mubr.msk.f32.vlgmr.msra.gmra.mrb[0].mxu1 %vm2414_vm13, %v6689_v36 }
 0x315   : > { %3998 = vmatpush1.msra.mxu1 %v9329_v53  ;;  %4123 = vmatprep.subr.mxu0 %v4111_v58  ;;  %v4107_v10 = vsel %vm1346_vm12, %v4101_v61, %v4103_v33 }
 0x316   : > { %4200 = vmatprep.subr.mxu1 %v4109_v43  ;;  %3836 = vmatprep.mubr.f32.mxu0 %v7086_v14  ;;  %v4105_v59 = vpop.permute.xlu0 %4104  ;;  %v6720_v43 = vld [vmem:[%s11066_s4 + $0x78] sm:$0xff] }
 0x317   : > { %6692 = vmatmul.mubr.msk.f32.gmra.mrb[2].mxu0 %vm2414_vm13, %v6690_v23  ;;  %3913 = vmatprep.mubr.f32.mxu1 %v7086_v14  ;;  %v4113_v15 = vsel %vm1346_vm12, %v4105_v59, %v4091_v60  ;;  %v4106_v12 = vsel %vm1346_vm12, %v4103_v33, %v4105_v59  ;;  %v6719_v60 = vld [vmem:[%s11066_s4 + $0x70] sm:$0xff] }
 0x318   : > { %v4450_v1 = vpop.permute.xlu1 %4449  ;;  %6694 = vmatmul.mubr.msk.f32.gmra.mrb[2].mxu1 %vm2414_vm13, %v6690_v23  ;;  %3984 = vmatprep.mubr.f32.mxu0 %v7086_v14 }
 0x319   : > { %4061 = vmatprep.mubr.f32.mxu1 %v7086_v14 }
 0x31a   : > { %v4452_v53 = vpop.permute.xlu0 %4451 }
 0x31b   : > { %6695 = vmatmul.mubr.msk.f32.vlgmr.msra.gmra.mrb[4].mxu0 %vm2414_vm13, %v6689_v36  ;;  %v4468_v16 = vsel %vm1586_vm15, %v4450_v1, %v4452_v53 }
 0x31c   : > { %4124 = vmatpush1.msra.mxu0 %v4112_v51  ;;  %v4454_v46 = vpop.permute.xlu1 %4453  ;;  %6697 = vmatmul.mubr.msk.f32.vlgmr.msra.gmra.mrb[4].mxu1 %vm2414_vm13, %v6689_v36 }
 0x31d   : > { %4201 = vmatpush1.msra.mxu1 %v4110_v56  ;;  %4277 = vmatprep.subr.mxu0 %v4107_v10  ;;  %v4467_v47 = vsel %vm1586_vm15, %v4452_v53, %v4454_v46 }
 0x31e   : > { %4354 = vmatprep.subr.mxu1 %v4113_v15  ;;  %3990 = vmatprep.mubr.f32.mxu0 %v7086_v14  ;;  %v4456_v28 = vpop.permute.xlu0 %4455  ;;  %v6729_v15 = vld [vmem:[%s11066_s4 + $0x80] sm:$0xff] }
 0x31f   : > { %6696 = vmatmul.mubr.msk.f32.gmra.mrb[6].mxu0 %vm2414_vm13, %v6690_v23  ;;  %4067 = vmatprep.mubr.f32.mxu1 %v7086_v14  ;;  %v4466_v2 = vsel %vm1586_vm15, %v4454_v46, %v4456_v28 }
 0x320   : > { %v4448_v49 = vpop.permute.xlu1 %4447  ;;  %6698 = vmatmul.mubr.msk.f32.gmra.mrb[6].mxu1 %vm2414_vm13, %v6690_v23  ;;  %4187 = vmatprep.mubr.f32.mxu0 %v7086_v14 }
 0x321   : > { %4264 = vmatprep.mubr.f32.mxu1 %v7086_v14  ;;  %v4469_v45 = vsel %vm1586_vm15, %v4448_v49, %v4450_v1 }
 0x322   : > { %v4458_v9 = vpop.permute.xlu0 %4457 }
 0x323   : > { %6701 = vmatmul.mubr.msk.f32.vlgmr.msra.gmra.mrb[0].mxu0 %vm2414_vm13, %v6699_v11  ;;  %v4465_v55 = vsel %vm1586_vm15, %v4456_v28, %v4458_v9 }
 0x324   : > { %4278 = vmatpush1.msra.mxu0 %v4108_v52  ;;  %v4460_v18 = vpop.permute.xlu1 %4459  ;;  %6703 = vmatmul.mubr.msk.f32.vlgmr.msra.gmra.mrb[0].mxu1 %vm2414_vm13, %v6699_v11 }
 0x325   : > { %4355 = vmatpush1.msra.mxu1 %v4106_v12  ;;  %4480 = vmatprep.subr.mxu0 %v4468_v16  ;;  %v4464_v0 = vsel %vm1586_vm15, %v4458_v9, %v4460_v18 }
 0x326   : > { %4557 = vmatprep.subr.mxu1 %v4466_v2  ;;  %4193 = vmatprep.mubr.f32.mxu0 %v7086_v14  ;;  %v4462_v30 = vpop.permute.xlu0 %4461 }
 0x327   : > { %6702 = vmatmul.mubr.msk.f32.gmra.mrb[2].mxu0 %vm2414_vm13, %v6700_v17  ;;  %4270 = vmatprep.mubr.f32.mxu1 %v7086_v14  ;;  %v4470_v32 = vsel %vm1586_vm15, %v4462_v30, %v4448_v49  ;;  %v4463_v63 = vsel %vm1586_vm15, %v4460_v18, %v4462_v30 }
 0x328   : > { %v4807_v7 = vpop.permute.xlu1 %4806  ;;  %6704 = vmatmul.mubr.msk.f32.gmra.mrb[2].mxu1 %vm2414_vm13, %v6700_v17  ;;  %4341 = vmatprep.mubr.f32.mxu0 %v7086_v14 }
 0x329   : > { %4418 = vmatprep.mubr.f32.mxu1 %v7086_v14 }
 0x32a   : > { %v4809_v37 = vpop.permute.xlu0 %4808 }
 0x32b   : > { %6705 = vmatmul.mubr.msk.f32.vlgmr.msra.gmra.mrb[4].mxu0 %vm2414_vm13, %v6699_v11  ;;  %v4825_v50 = vsel %vm1666_vm0, %v4807_v7, %v4809_v37 }
 0x32c   : > { %4481 = vmatpush1.msra.mxu0 %v4469_v45  ;;  %v4811_v19 = vpop.permute.xlu1 %4810  ;;  %6707 = vmatmul.mubr.msk.f32.vlgmr.msra.gmra.mrb[4].mxu1 %vm2414_vm13, %v6699_v11  ;;  %v6730_v11 = vld [vmem:[%s11066_s4 + $0x88] sm:$0xff] }
 0x32d   : > { %4558 = vmatpush1.msra.mxu1 %v4467_v47  ;;  %4634 = vmatprep.subr.mxu0 %v4464_v0  ;;  %v4824_v44 = vsel %vm1666_vm0, %v4809_v37, %v4811_v19 }
 0x32e   : > { %4711 = vmatprep.subr.mxu1 %v4470_v32  ;;  %4347 = vmatprep.mubr.f32.mxu0 %v7086_v14  ;;  %v4813_v35 = vpop.permute.xlu0 %4812 }
 0x32f   : > { %6706 = vmatmul.mubr.msk.f32.gmra.mrb[6].mxu0 %vm2414_vm13, %v6700_v17  ;;  %4424 = vmatprep.mubr.f32.mxu1 %v7086_v14  ;;  %v4823_v26 = vsel %vm1666_vm0, %v4811_v19, %v4813_v35 }
 0x330   : > { %v4805_v38 = vpop.permute.xlu1 %4804  ;;  %6708 = vmatmul.mubr.msk.f32.gmra.mrb[6].mxu1 %vm2414_vm13, %v6700_v17  ;;  %4544 = vmatprep.mubr.f32.mxu0 %v7086_v14 }
 0x331   : > { %4621 = vmatprep.mubr.f32.mxu1 %v7086_v14  ;;  %v4826_v29 = vsel %vm1666_vm0, %v4805_v38, %v4807_v7 }
 0x332   : > { %v4815_v34 = vpop.permute.xlu0 %4814 }
 0x333   : > { %6711 = vmatmul.mubr.msk.f32.vlgmr.msra.gmra.mrb[0].mxu0 %vm2414_vm13, %v6709_v57  ;;  %v4822_v61 = vsel %vm1666_vm0, %v4813_v35, %v4815_v34 }
 0x334   : > { %4635 = vmatpush1.msra.mxu0 %v4465_v55  ;;  %v4817_v42 = vpop.permute.xlu1 %4816  ;;  %6713 = vmatmul.mubr.msk.f32.vlgmr.msra.gmra.mrb[0].mxu1 %vm2414_vm13, %v6709_v57 }
 0x335   : > { %4712 = vmatpush1.msra.mxu1 %v4463_v63  ;;  %4837 = vmatprep.subr.mxu0 %v4825_v50  ;;  %v4821_v22 = vsel %vm1666_vm0, %v4815_v34, %v4817_v42 }
 0x336   : > { %4914 = vmatprep.subr.mxu1 %v4823_v26  ;;  %4550 = vmatprep.mubr.f32.mxu0 %v7086_v14  ;;  %v4819_v25 = vpop.permute.xlu0 %4818 }
 0x337   : > { %6712 = vmatmul.mubr.msk.f32.gmra.mrb[2].mxu0 %vm2414_vm13, %v6710_v31  ;;  %4627 = vmatprep.mubr.f32.mxu1 %v7086_v14  ;;  %v4827_v8 = vsel %vm1666_vm0, %v4819_v25, %v4805_v38  ;;  %v4820_v33 = vsel %vm1666_vm0, %v4817_v42, %v4819_v25 }
 0x338   : > { %v5164_v41 = vpop.permute.xlu1 %5163  ;;  %6714 = vmatmul.mubr.msk.f32.gmra.mrb[2].mxu1 %vm2414_vm13, %v6710_v31  ;;  %4698 = vmatprep.mubr.f32.mxu0 %v7086_v14 }
 0x339   : > { %4775 = vmatprep.mubr.f32.mxu1 %v7086_v14 }
 0x33a   : > { %v5166_v24 = vpop.permute.xlu0 %5165 }
 0x33b   : > { %6715 = vmatmul.mubr.msk.f32.vlgmr.msra.gmra.mrb[4].mxu0 %vm2414_vm13, %v6709_v57  ;;  %v5182_v58 = vsel %vm1746_vm1, %v5164_v41, %v5166_v24 }
 0x33c   : > { %4838 = vmatpush1.msra.mxu0 %v4826_v29  ;;  %6717 = vmatmul.mubr.msk.f32.vlgmr.msra.gmra.mrb[4].mxu1 %vm2414_vm13, %v6709_v57  ;;  %v5168_v48 = vpop.permute.xlu1 %5167 }
 0x33d   : > { %4915 = vmatpush1.msra.mxu1 %v4824_v44  ;;  %4991 = vmatprep.subr.mxu0 %v4821_v22  ;;  %v5181_v46 = vsel %vm1746_vm1, %v5166_v24, %v5168_v48 }
 0x33e   : > { %5068 = vmatprep.subr.mxu1 %v4827_v8  ;;  %4704 = vmatprep.mubr.f32.mxu0 %v7086_v14  ;;  %v5170_v62 = vpop.permute.xlu0 %5169 }
 0x33f   : > { %6716 = vmatmul.mubr.msk.f32.gmra.mrb[6].mxu0 %vm2414_vm13, %v6710_v31  ;;  %4781 = vmatprep.mubr.f32.mxu1 %v7086_v14  ;;  %v5180_v59 = vsel %vm1746_vm1, %v5168_v48, %v5170_v62 }
 0x340   : > { %6718 = vmatmul.mubr.msk.f32.gmra.mrb[6].mxu1 %vm2414_vm13, %v6710_v31  ;;  %4901 = vmatprep.mubr.f32.mxu0 %v7086_v14  ;;  %v5162_v36 = vpop.permute.xlu1 %5161 }
 0x341   : > { %4978 = vmatprep.mubr.f32.mxu1 %v7086_v14  ;;  %v5183_v51 = vsel %vm1746_vm1, %v5162_v36, %v5164_v41 }
 0x342   : > { %v5172_v23 = vpop.permute.xlu0 %5171 }
 0x343   : > { %6721 = vmatmul.mubr.msk.f32.vlgmr.msra.gmra.mrb[0].mxu0 %vm2414_vm13, %v6719_v60  ;;  %v5179_v28 = vsel %vm1746_vm1, %v5170_v62, %v5172_v23 }
 0x344   : > { %4992 = vmatpush1.msra.mxu0 %v4822_v61  ;;  %6723 = vmatmul.mubr.msk.f32.vlgmr.msra.gmra.mrb[0].mxu1 %vm2414_vm13, %v6719_v60  ;;  %v5174_v1 = vpop.permute.xlu1 %5173 }
 0x345   : > { %5069 = vmatpush1.msra.mxu1 %v4820_v33  ;;  %5194 = vmatprep.subr.mxu0 %v5182_v58  ;;  %v5178_v56 = vsel %vm1746_vm1, %v5172_v23, %v5174_v1 }
 0x346   : > { %5271 = vmatprep.subr.mxu1 %v5180_v59  ;;  %4907 = vmatprep.mubr.f32.mxu0 %v7086_v14  ;;  %v5176_v53 = vpop.permute.xlu0 %5175 }
 0x347   : > { %6722 = vmatmul.mubr.msk.f32.gmra.mrb[2].mxu0 %vm2414_vm13, %v6720_v43  ;;  %4984 = vmatprep.mubr.f32.mxu1 %v7086_v14  ;;  %v5184_v10 = vsel %vm1746_vm1, %v5176_v53, %v5162_v36  ;;  %v5177_v49 = vsel %vm1746_vm1, %v5174_v1, %v5176_v53 }
 0x348   : > { %6724 = vmatmul.mubr.msk.f32.gmra.mrb[2].mxu1 %vm2414_vm13, %v6720_v43  ;;  %5055 = vmatprep.mubr.f32.mxu0 %v7086_v14 }
 0x349   : > { %5132 = vmatprep.mubr.f32.mxu1 %v7086_v14 }
 0x34b   : > { %6725 = vmatmul.mubr.msk.f32.vlgmr.msra.gmra.mrb[4].mxu0 %vm2414_vm13, %v6719_v60 }
 0x34c   : > { %5195 = vmatpush1.msra.mxu0 %v5183_v51  ;;  %6727 = vmatmul.mubr.msk.f32.vlgmr.msra.gmra.mrb[4].mxu1 %vm2414_vm13, %v6719_v60 }
 0x34d   : > { %5272 = vmatpush1.msra.mxu1 %v5181_v46  ;;  %5348 = vmatprep.subr.mxu0 %v5178_v56 }
 0x34e   : > { %5425 = vmatprep.subr.mxu1 %v5184_v10  ;;  %5061 = vmatprep.mubr.f32.mxu0 %v7086_v14 }
 0x34f   : > { %6726 = vmatmul.mubr.msk.f32.gmra.mrb[6].mxu0 %vm2414_vm13, %v6720_v43  ;;  %5138 = vmatprep.mubr.f32.mxu1 %v7086_v14 }
 0x350   : > { %6728 = vmatmul.mubr.msk.f32.gmra.mrb[6].mxu1 %vm2414_vm13, %v6720_v43  ;;  %5258 = vmatprep.mubr.f32.mxu0 %v7086_v14 }
 0x351   : > { %5335 = vmatprep.mubr.f32.mxu1 %v7086_v14 }
 0x353   : > { %6731 = vmatmul.mubr.msk.f32.vlgmr.msra.gmra.mrb[0].mxu0 %vm2414_vm13, %v6729_v15 }
 0x354   : > { %5349 = vmatpush1.msra.mxu0 %v5179_v28  ;;  %6733 = vmatmul.mubr.msk.f32.vlgmr.msra.gmra.mrb[0].mxu1 %vm2414_vm13, %v6729_v15 }
 0x355   : > { %5426 = vmatpush1.msra.mxu1 %v5177_v49  ;;  %5264 = vmatprep.mubr.f32.mxu0 %v7086_v14  ;;  %v9797_v9 = vpop.permute.xlu1 %5522 }
 0x356   : > { %5341 = vmatprep.mubr.f32.mxu1 %v7086_v14 }
 0x357   : > { %6732 = vmatmul.mubr.msk.f32.gmra.mrb[2].mxu0 %vm2414_vm13, %v6730_v11  ;;  %v9801_v7 = vpop.permute.xlu0 %5527 }
 0x358   : > { %6734 = vmatmul.mubr.msk.f32.gmra.mrb[2].mxu1 %vm2414_vm13, %v6730_v11  ;;  %5412 = vmatprep.mubr.f32.mxu0 %v7086_v14 }
 0x359   : > { %5489 = vmatprep.mubr.f32.mxu1 %v7086_v14 }
 0x35b   : > { %6735 = vmatmul.mubr.msk.f32.vlgmr.msra.gmra.mrb[4].mxu0 %vm2414_vm13, %v6729_v15 }
 0x35c   : > { %6737 = vmatmul.mubr.msk.f32.vlgmr.msra.gmra.mrb[4].mxu1 %vm2414_vm13, %v6729_v15  ;;  %5418 = vmatprep.mubr.f32.mxu0 %v7086_v14 }
 0x35d   : > { %5495 = vmatprep.mubr.f32.mxu1 %v7086_v14 }
 0x35f   : > { %6736 = vmatmul.mubr.msk.f32.gmra.mrb[6].mxu0 %vm2414_vm13, %v6730_v11 }
 0x360   : > { %6738 = vmatmul.mubr.msk.f32.gmra.mrb[6].mxu1 %vm2414_vm13, %v6730_v11 }
 0x426   : > { %v5260_v52 = vpop.f32.mrb[0].mxu0 }
 0x427   : > { %v5530_v18 = vadd.f32 %v9797_v9, %v5260_v52  ;;  %v5262_v12 = vpop.f32.mrb[1].mxu0  ;;  %v5337_v16 = vpop.f32.mrb[0].mxu1 }
 0x428   : > { %v5532_v17 = vadd.f32 %v9797_v9, %v5337_v16  ;;  %v5339_v2 = vpop.f32.mrb[1].mxu1 }
 0x429   : > { %v5546_v30 = vmax.f32 %v5530_v18, 0.0  ;;  %v5533_v44 = vadd.f32 %v9797_v9, %v5339_v2 }
 0x42a   : > { %v5266_v37 = vpop.f32.mrb[2].mxu0  ;;  %v5548_v45 = vmax.f32 %v5532_v17, 0.0 }
 0x42b   : > { %v9804_v14 = vmul.f32 %v5546_v30, %v11470_v39  ;;  %v5538_v19 = vadd.f32 %v9801_v7, %v5266_v37  ;;  %v5268_v47 = vpop.f32.mrb[3].mxu0  ;;  %v5343_v0 = vpop.f32.mrb[2].mxu1  ;;  %v5549_v8 = vmax.f32 %v5533_v44, 0.0 }
 0x42c   : > { %v5540_v32 = vadd.f32 %v9801_v7, %v5343_v0  ;;  %v5345_v35 = vpop.f32.mrb[3].mxu1  ;;  %v9811_v34 = vmul.f32 %v5548_v45, %v11472_v5  ;;  %v5539_v22 = vadd.f32 %v9801_v7, %v5268_v47  ;;  %v9969_v30 = vpop.permute.xlu1 %5630 }
 0x42d   : > { %11477 = vst [vmem:[#allocation39_spill] sm:$0xff] %v9804_v14  ;;  %v5554_v38 = vmax.f32 %v5538_v19, 0.0  ;;  %5578 = vrot.lane.b32.xlu1 %v9804_v14, %s7068_s27  ;;  %v5541_v60 = vadd.f32 %v9801_v7, %v5345_v35  ;;  %v9851_v36 = vmul.f32 %v5549_v8, %v11473_v21 }
 0x42e   : > { %v5414_v57 = vpop.f32.mrb[4].mxu0  ;;  %11478 = vst [vmem:[#allocation40_spill] sm:$0xff] %v9811_v34  ;;  %v5556_v42 = vmax.f32 %v5540_v32, 0.0  ;;  %v5555_v62 = vmax.f32 %v5539_v22, 0.0 }
 0x42f   : > { %v9814_v55 = vmul.f32 %v5554_v38, %v11470_v39  ;;  %v5416_v63 = vpop.f32.mrb[5].mxu0  ;;  %v5491_v50 = vpop.f32.mrb[4].mxu1  ;;  %v5531_v39 = vadd.f32 %v9797_v9, %v5262_v12  ;;  %11481 = vst [vmem:[#allocation44_spill] sm:$0xff] %v9851_v36  ;;  %v5557_v33 = vmax.f32 %v5541_v60, 0.0 }
 0x430   : > { %v5493_v31 = vpop.f32.mrb[5].mxu1  ;;  %v9821_v25 = vmul.f32 %v5556_v42, %v11472_v5  ;;  %v9854_v61 = vmul.f32 %v5555_v62, %v11471_v27  ;;  %v5536_v23 = vadd.f32 %v9797_v9, %v5491_v50  ;;  %v5535_v28 = vadd.f32 %v9797_v9, %v5416_v63  ;;  %v9981_v37 = vpop.permute.xlu1 %5723  ;;  %v6743_v42 = vld [vmem:[%s11068_s6 + $0x30] sm:$0xff] }
 0x431   : > { %11479 = vst [vmem:[#allocation41_spill] sm:$0xff] %v9814_v55  ;;  %5586 = vrot.lane.b32.xlu1 %v9811_v34, %s7068_s27  ;;  %5580 = vrot.lane.b32.xlu0 %v9814_v55, %s7068_s27  ;;  %v5547_v5 = vmax.f32 %v5531_v39, 0.0  ;;  %v9861_v58 = vmul.f32 %v5557_v33, %v11473_v21  ;;  %v5537_v49 = vadd.f32 %v9797_v9, %v5493_v31  ;;  %v6745_v31 = vld [vmem:[%s11068_s6 + $0x40] sm:$0xff] }
 0x432   : > { %v5420_v26 = vpop.f32.mrb[6].mxu0  ;;  %11482 = vst [vmem:[#allocation46_spill] sm:$0xff] %v9854_v61  ;;  %v5552_v1 = vmax.f32 %v5536_v23, 0.0 }
 0x433   : > { %v5422_v41 = vpop.f32.mrb[7].mxu0  ;;  %v5497_v24 = vpop.f32.mrb[6].mxu1  ;;  %v9843_v48 = vmul.f32 %v5547_v5, %v11471_v27  ;;  %11483 = vst [vmem:[#allocation45_spill] sm:$0xff] %v9861_v58  ;;  %v5534_v27 = vadd.f32 %v9797_v9, %v5414_v57  ;;  %v5542_v43 = vadd.f32 %v9801_v7, %v5420_v26  ;;  %v5553_v52 = vmax.f32 %v5537_v49, 0.0  ;;  %v6744_v26 = vld [vmem:[%s11068_s6 + $0x38] sm:$0xff] }
 0x434   : > { %v5499_v29 = vpop.f32.mrb[7].mxu1  ;;  %v5544_v51 = vadd.f32 %v9801_v7, %v5497_v24  ;;  %v9891_v46 = vmul.f32 %v5552_v1, %v9321_v13 }
 0x435   : > { %5670 = vrot.lane.b32.xlu1 %v9804_v14, %s7069_s13  ;;  %5588 = vrot.lane.b32.xlu0 %v9821_v25, %s7068_s27  ;;  %11480 = vst [vmem:[#allocation42_spill] sm:$0xff] %v9843_v48  ;;  %v5550_v21 = vmax.f32 %v5534_v27, 0.0  ;;  %v5558_v53 = vmax.f32 %v5542_v43, 0.0  ;;  %v5545_v12 = vadd.f32 %v9801_v7, %v5499_v29  ;;  %v9927_v9 = vmul.f32 %v5553_v52, %v8919_v40  ;;  %v6746_v29 = vld [vmem:[%s11068_s6 + $0x48] sm:$0xff]  ;;  %v6748_v52 = vld [vmem:[%s11068_s6 + $0x58] sm:$0xff] }
 0x436   : > { %11485 = vst [vmem:[#allocation48_spill] sm:$0xff] %v9891_v46  ;;  %v5560_v10 = vmax.f32 %v5544_v51, 0.0 }
 0x437   : > { %v9883_v59 = vmul.f32 %v5550_v21, %v9305_v20  ;;  %v9894_v56 = vmul.f32 %v5558_v53, %v9305_v20  ;;  %v5551_v20 = vmax.f32 %v5535_v28, 0.0  ;;  %11489 = vst [vmem:[#allocation52_spill] sm:$0xff] %v9927_v9  ;;  %v5561_v17 = vmax.f32 %v5545_v12, 0.0  ;;  %v6747_v28 = vld [vmem:[%s11068_s6 + $0x50] sm:$0xff] }
 0x438   : > { %v9901_v15 = vmul.f32 %v5560_v10, %v9321_v13  ;;  %v5543_v13 = vadd.f32 %v9801_v7, %v5422_v41  ;;  %v9975_v7 = vpop.permute.xlu0 %5635 }
 0x439   : > { %5678 = vrot.lane.b32.xlu1 %v9811_v34, %s7069_s13  ;;  %5672 = vrot.lane.b32.xlu0 %v9814_v55, %s7069_s13  ;;  %11484 = vst [vmem:[#allocation47_spill] sm:$0xff] %v9883_v59  ;;  %11486 = vst [vmem:[#allocation49_spill] sm:$0xff] %v9894_v56  ;;  %v9919_v11 = vmul.f32 %v5551_v20, %v9312_v54  ;;  %v9937_v2 = vmul.f32 %v5561_v17, %v8919_v40  ;;  %v6741_v40 = vld [vmem:[%s11068_s6 + $0x20] sm:$0xff]  ;;  %v6751_v17 = vld [vmem:[%s11068_s6 + $0x70] sm:$0xff] }
 0x43a   : > { %11487 = vst [vmem:[#allocation50_spill] sm:$0xff] %v9901_v15  ;;  %v5559_v18 = vmax.f32 %v5543_v13, 0.0  ;;  %v6749_v13 = vld [vmem:[%s11068_s6 + $0x60] sm:$0xff] }
 0x43b   : > { %11488 = vst [vmem:[#allocation51_spill] sm:$0xff] %v9919_v11  ;;  %11491 = vst [vmem:[#allocation61_spill] sm:$0xff] %v9937_v2 }
 0x43c   : > { %v9930_v16 = vmul.f32 %v5559_v18, %v9312_v54  ;;  %v6742_v54 = vld [vmem:[%s11068_s6 + $0x28] sm:$0xff]  ;;  %v9987_v45 = vpop.permute.xlu0 %5728 }
 0x43d   : > { %5763 = vrot.lane.b32.xlu1 %v9804_v14, %s7070_s19  ;;  %5680 = vrot.lane.b32.xlu0 %v9821_v25, %s7069_s13 }
 0x43e   : > { %11490 = vst [vmem:[#allocation53_spill] sm:$0xff] %v9930_v16 }
 0x441   : > { %5771 = vrot.lane.b32.xlu1 %v9811_v34, %s7070_s19  ;;  %5765 = vrot.lane.b32.xlu0 %v9814_v55, %s7070_s19 }
 0x445   : > { %5582 = vrot.lane.b32.xlu1 %v9843_v48, %s7068_s27  ;;  %5773 = vrot.lane.b32.xlu0 %v9821_v25, %s7070_s19 }
 0x449   : > { %5590 = vrot.lane.b32.xlu1 %v9851_v36, %s7068_s27  ;;  %5584 = vrot.lane.b32.xlu0 %v9854_v61, %s7068_s27 }
 0x44d   : > { %5674 = vrot.lane.b32.xlu1 %v9843_v48, %s7069_s13  ;;  %5592 = vrot.lane.b32.xlu0 %v9861_v58, %s7068_s27 }
 0x451   : > { %5682 = vrot.lane.b32.xlu1 %v9851_v36, %s7069_s13  ;;  %5676 = vrot.lane.b32.xlu0 %v9854_v61, %s7069_s13 }
 0x455   : > { %5767 = vrot.lane.b32.xlu1 %v9843_v48, %s7070_s19  ;;  %5684 = vrot.lane.b32.xlu0 %v9861_v58, %s7069_s13 }
 0x459   : > { %5775 = vrot.lane.b32.xlu1 %v9851_v36, %s7070_s19  ;;  %5769 = vrot.lane.b32.xlu0 %v9854_v61, %s7070_s19 }
 0x45d   : > { %5594 = vrot.lane.b32.xlu1 %v9883_v59, %s7068_s27  ;;  %5777 = vrot.lane.b32.xlu0 %v9861_v58, %s7070_s19 }
 0x461   : > { %5602 = vrot.lane.b32.xlu1 %v9891_v46, %s7068_s27  ;;  %5596 = vrot.lane.b32.xlu0 %v9894_v56, %s7068_s27 }
 0x465   : > { %5686 = vrot.lane.b32.xlu1 %v9883_v59, %s7069_s13  ;;  %5604 = vrot.lane.b32.xlu0 %v9901_v15, %s7068_s27 }
 0x469   : > { %5694 = vrot.lane.b32.xlu1 %v9891_v46, %s7069_s13  ;;  %5688 = vrot.lane.b32.xlu0 %v9894_v56, %s7069_s13 }
 0x46d   : > { %5779 = vrot.lane.b32.xlu1 %v9883_v59, %s7070_s19  ;;  %5696 = vrot.lane.b32.xlu0 %v9901_v15, %s7069_s13 }
 0x471   : > { %5598 = vrot.lane.b32.xlu1 %v9919_v11, %s7068_s27  ;;  %5781 = vrot.lane.b32.xlu0 %v9894_v56, %s7070_s19 }
 0x475   : > { %5606 = vrot.lane.b32.xlu1 %v9927_v9, %s7068_s27  ;;  %5600 = vrot.lane.b32.xlu0 %v9930_v16, %s7068_s27 }
 0x479   : > { %5690 = vrot.lane.b32.xlu1 %v9919_v11, %s7069_s13  ;;  %5608 = vrot.lane.b32.xlu0 %v9937_v2, %s7068_s27 }
 0x47d   : > { %5698 = vrot.lane.b32.xlu1 %v9927_v9, %s7069_s13  ;;  %5692 = vrot.lane.b32.xlu0 %v9930_v16, %s7069_s13 }
 0x481   : > { %5783 = vrot.lane.b32.xlu1 %v9919_v11, %s7070_s19  ;;  %5700 = vrot.lane.b32.xlu0 %v9937_v2, %s7069_s13 }
 0x485   : > { %5787 = vrot.lane.b32.xlu1 %v9891_v46, %s7070_s19  ;;  %5785 = vrot.lane.b32.xlu0 %v9930_v16, %s7070_s19 }
 0x489   : > { %5791 = vrot.lane.b32.xlu1 %v9927_v9, %s7070_s19  ;;  %5789 = vrot.lane.b32.xlu0 %v9901_v15, %s7070_s19 }
 0x48d   : > { %5816 = vperm.xlu1 %6964, %v6741_v40   ;;  %5793 = vrot.lane.b32.xlu0 %v9937_v2, %s7070_s19  ;;  %v6750_v40 = vld [vmem:[%s11068_s6 + $0x68] sm:$0xff] }
 0x491   : > { %5856 = vrot.lane.b32.xlu1 %v9804_v14, %s7073_s11  ;;  %5821 = vperm.xlu0 %6963, %v6742_v54  }
 0x495   : > { %5860 = vrot.lane.b32.xlu1 %v9843_v48, %s7073_s11  ;;  %5858 = vrot.lane.b32.xlu0 %v9814_v55, %s7073_s11 }
 0x499   : > { %5864 = vrot.lane.b32.xlu1 %v9811_v34, %s7073_s11  ;;  %5862 = vrot.lane.b32.xlu0 %v9854_v61, %s7073_s11 }
 0x49d   : > { %5868 = vrot.lane.b32.xlu1 %v9851_v36, %s7073_s11  ;;  %5866 = vrot.lane.b32.xlu0 %v9821_v25, %s7073_s11 }
 0x49f   : > { %v9989_v19 = vpop.permute.xlu1 %5578 }
 0x4a1   : > { %5872 = vrot.lane.b32.xlu1 %v9883_v59, %s7073_s11  ;;  %5870 = vrot.lane.b32.xlu0 %v9861_v58, %s7073_s11 }
 0x4a3   : > { %v9995_v47 = vpop.permute.xlu1 %5586  ;;  %v9997_v0 = vpop.permute.xlu0 %5580 }
 0x4a5   : > { %5876 = vrot.lane.b32.xlu1 %v9919_v11, %s7073_s11  ;;  %5874 = vrot.lane.b32.xlu0 %v9894_v56, %s7073_s11 }
 0x4a7   : > { %v10003_v32 = vpop.permute.xlu1 %5670  ;;  %v10005_v35 = vpop.permute.xlu0 %5588 }
 0x4a9   : > { %5880 = vrot.lane.b32.xlu1 %v9891_v46, %s7073_s11  ;;  %5878 = vrot.lane.b32.xlu0 %v9930_v16, %s7073_s11 }
 0x4ab   : > { %v10011_v38 = vpop.permute.xlu1 %5678  ;;  %v10013_v57 = vpop.permute.xlu0 %5672 }
 0x4ad   : > { %5884 = vrot.lane.b32.xlu1 %v9927_v9, %s7073_s11  ;;  %5882 = vrot.lane.b32.xlu0 %v9901_v15, %s7073_s11 }
 0x4af   : > { %v10022_v63 = vpop.permute.xlu1 %5763  ;;  %v10024_v50 = vpop.permute.xlu0 %5680 }
 0x4b1   : > { %5909 = vperm.xlu1 %6964, %v6743_v42   ;;  %5886 = vrot.lane.b32.xlu0 %v9937_v2, %s7073_s11 }
 0x4b3   : > { %v10034_v41 = vpop.permute.xlu1 %5771  ;;  %v10036_v24 = vpop.permute.xlu0 %5765 }
 0x4b5   : > { %5954 = vperm.xlu1 %6964, %v6745_v31   ;;  %5914 = vperm.xlu0 %6963, %v6744_v26   ;;  %v6753_v31 = vld [vmem:[%s11068_s6 + $0x80] sm:$0xff]  ;;  %v6752_v26 = vld [vmem:[%s11068_s6 + $0x78] sm:$0xff] }
 0x4b7   : > { %v10041_v39 = vpop.permute.xlu1 %5582  ;;  %v10043_v5 = vpop.permute.xlu0 %5773 }
 0x4b9   : > { %5994 = vrot.lane.b32.xlu1 %v9804_v14, %s7074_s22  ;;  %5959 = vperm.xlu0 %6963, %v6746_v29  }
 0x4bb   : > { %v10047_v44 = vpop.permute.xlu1 %5590  ;;  %v10049_v22 = vpop.permute.xlu0 %5584 }
 0x4bd   : > { %5998 = vrot.lane.b32.xlu1 %v9843_v48, %s7074_s22  ;;  %5996 = vrot.lane.b32.xlu0 %v9814_v55, %s7074_s22 }
 0x4bf   : > { %v10055_v8 = vpop.permute.xlu1 %5674  ;;  %v10057_v62 = vpop.permute.xlu0 %5592 }
 0x4c1   : > { %6002 = vrot.lane.b32.xlu1 %v9811_v34, %s7074_s22  ;;  %6000 = vrot.lane.b32.xlu0 %v9854_v61, %s7074_s22 }
 0x4c3   : > { %v10063_v60 = vpop.permute.xlu1 %5682  ;;  %v10065_v33 = vpop.permute.xlu0 %5676 }
 0x4c5   : > { %6006 = vrot.lane.b32.xlu1 %v9851_v36, %s7074_s22  ;;  %6004 = vrot.lane.b32.xlu0 %v9821_v25, %s7074_s22 }
 0x4c7   : > { %v10071_v27 = vpop.permute.xlu1 %5767  ;;  %v10073_v21 = vpop.permute.xlu0 %5684 }
 0x4c9   : > { %6010 = vrot.lane.b32.xlu1 %v9883_v59, %s7074_s22  ;;  %6008 = vrot.lane.b32.xlu0 %v9861_v58, %s7074_s22 }
 0x4cb   : > { %v10079_v23 = vpop.permute.xlu1 %5775  ;;  %v10081_v43 = vpop.permute.xlu0 %5769 }
 0x4cd   : > { %6014 = vrot.lane.b32.xlu1 %v9919_v11, %s7074_s22  ;;  %6012 = vrot.lane.b32.xlu0 %v9894_v56, %s7074_s22 }
 0x4cf   : > { %v10087_v1 = vpop.permute.xlu1 %5594  ;;  %v10089_v53 = vpop.permute.xlu0 %5777 }
 0x4d1   : > { %6018 = vrot.lane.b32.xlu1 %v9891_v46, %s7074_s22  ;;  %6016 = vrot.lane.b32.xlu0 %v9930_v16, %s7074_s22 }
 0x4d3   : > { %v10095_v51 = vpop.permute.xlu1 %5602  ;;  %v10097_v10 = vpop.permute.xlu0 %5596 }
 0x4d5   : > { %6022 = vrot.lane.b32.xlu1 %v9927_v9, %s7074_s22  ;;  %6020 = vrot.lane.b32.xlu0 %v9901_v15, %s7074_s22 }
 0x4d7   : > { %v10106_v20 = vpop.permute.xlu1 %5686  ;;  %v10108_v49 = vpop.permute.xlu0 %5604 }
 0x4d9   : > { %6047 = vperm.xlu1 %6964, %v6747_v28   ;;  %6024 = vrot.lane.b32.xlu0 %v9937_v2, %s7074_s22 }
 0x4db   : > { %v10118_v18 = vpop.permute.xlu1 %5694  ;;  %v10120_v12 = vpop.permute.xlu0 %5688 }
 0x4dc   : > { %11492 = vst [vmem:[#allocation60_spill] sm:$0xff] %v10118_v18 }
 0x4dd   : > { %6140 = vperm.xlu1 %6964, %v6749_v13   ;;  %6052 = vperm.xlu0 %6963, %v6748_v52   ;;  %v6754_v52 = vld [vmem:[%s11068_s6 + $0x88] sm:$0xff] }
 0x4df   : > { %v10128_v54 = vpop.permute.xlu1 %5779  ;;  %v10130_v42 = vpop.permute.xlu0 %5696 }
 0x4e0   : > { %11493 = vst [vmem:[#allocation54_spill] sm:$0xff] %v10130_v42 }
 0x4e1   : > { %6233 = vperm.xlu1 %6964, %v6751_v17   ;;  %6145 = vperm.xlu0 %6963, %v6750_v40  }
 0x4e3   : > { %v10138_v29 = vpop.permute.xlu0 %5781  ;;  %v10140_v28 = vpop.permute.xlu1 %5598 }
 0x4e5   : > { %6326 = vperm.xlu1 %6964, %v6753_v31   ;;  %6238 = vperm.xlu0 %6963, %v6752_v26  }
 0x4e7   : > { %v10142_v13 = vpop.permute.xlu0 %5600  ;;  %v10149_v17 = vpop.permute.xlu1 %5606 }
 0x4e9   : > { %6087 = vrot.lane.b32.xlu1 %v9804_v14, %s7077_s21  ;;  %6331 = vperm.xlu0 %6963, %v6754_v52  }
 0x4eb   : > { %v10151_v40 = vpop.permute.xlu0 %5608  ;;  %v10159_v26 = vpop.permute.xlu1 %5690 }
 0x4ec   : > { %11494 = vst [vmem:[#allocation55_spill] sm:$0xff] %v10151_v40  ;;  %11496 = vst [vmem:[#allocation57_spill] sm:$0xff] %v10159_v26  ;;  %v5620_v26 = vsel %vm843_vm6, %v10041_v39, %v9995_v47 }
 0x4ed   : > { %6091 = vrot.lane.b32.xlu1 %v9843_v48, %s7077_s21  ;;  %6089 = vrot.lane.b32.xlu0 %v9814_v55, %s7077_s21 }
 0x4ef   : > { %v10157_v31 = vpop.permute.xlu0 %5692  ;;  %v10169_v52 = vpop.permute.xlu1 %5698 }
 0x4f0   : > { %11495 = vst [vmem:[#allocation56_spill] sm:$0xff] %v10157_v31  ;;  %11498 = vst [vmem:[#allocation59_spill] sm:$0xff] %v10169_v52 }
 0x4f1   : > { %6095 = vrot.lane.b32.xlu1 %v9811_v34, %s7077_s21  ;;  %6093 = vrot.lane.b32.xlu0 %v9854_v61, %s7077_s21 }
 0x4f3   : > { %v10165_v6 = vpop.permute.xlu0 %5700  ;;  %v10179_v31 = vpop.permute.xlu1 %5783 }
 0x4f4   : > { %11497 = vst [vmem:[#allocation58_spill] sm:$0xff] %v10165_v6  ;;  %11499 = vst [vmem:[#allocation70_spill] sm:$0xff] %v10179_v31 }
 0x4f5   : > { %6099 = vrot.lane.b32.xlu1 %v9851_v36, %s7077_s21  ;;  %6097 = vrot.lane.b32.xlu0 %v9821_v25, %s7077_s21 }
 0x4f7   : > { %v10173_v4 = vpop.permute.xlu0 %5785  ;;  %v10189_v52 = vpop.permute.xlu1 %5787 }
 0x4f8   : > { %11500 = vst [vmem:[#allocation69_spill] sm:$0xff] %v10189_v52 }
 0x4f9   : > { %6103 = vrot.lane.b32.xlu1 %v9883_v59, %s7077_s21  ;;  %6101 = vrot.lane.b32.xlu0 %v9861_v58, %s7077_s21 }
 0x4fb   : > { %v5790_v40 = vpop.permute.xlu0 %5789  ;;  %v5792_v31 = vpop.permute.xlu1 %5791 }
 0x4fd   : > { %6107 = vrot.lane.b32.xlu1 %v9919_v11, %s7077_s21  ;;  %6105 = vrot.lane.b32.xlu0 %v9894_v56, %s7077_s21 }
 0x4ff   : > { %v5794_v6 = vpop.permute.xlu0 %5793 }
 0x500   : > { %v5796_v42 = vsel %vm1003_vm8, %v5790_v40, %v5794_v6 }
 0x501   : > { %6111 = vrot.lane.b32.xlu1 %v9891_v46, %s7077_s21  ;;  %6109 = vrot.lane.b32.xlu0 %v9930_v16, %s7077_s21  ;;  %v5622_v46 = vsel %vm843_vm6, %v9989_v19, %v10041_v39  ;;  %v5809_v16 = vsel %vm1003_vm8, %v5792_v31, %v10022_v63  ;;  %v5810_v39 = vsel %vm1003_vm8, %v5794_v6, %v10036_v24 }
 0x502   : > { %v5639_v18 = vmul.f32 %v9969_v30, %v5622_v46  ;;  %v5712_v46 = vsel %vm923_vm7, %v10055_v8, %v10011_v38 }
 0x505   : > { %6115 = vrot.lane.b32.xlu1 %v9927_v9, %s7077_s21  ;;  %6113 = vrot.lane.b32.xlu0 %v9901_v15, %s7077_s21  ;;  %v5795_v15 = vsel %vm1003_vm8, %v10189_v52, %v5792_v31  ;;  %v5618_v31 = vsel %vm843_vm6, %v9995_v47, %v10047_v44  ;;  %v5710_v47 = vsel %vm923_vm7, %v10011_v38, %v10063_v60 }
 0x506   : > { %v5798_v38 = vsel %vm1003_vm8, %v10173_v4, %v5790_v40 }
 0x509   : > { %6180 = vrot.lane.b32.xlu1 %v9804_v14, %s7078_s18  ;;  %6117 = vrot.lane.b32.xlu0 %v9937_v2, %s7077_s21  ;;  %s296_s21 = sand.u32 1, %s7051_s30  }
 0x50a   : > { %s6548_s13 = scalar_lea.sflag [#allocation4], %s296_s21 }
 0x50c   : > { %v10208_v9 = vpop.permute.xlu1 %5816 }
 0x50d   : > { %6184 = vrot.lane.b32.xlu1 %v9843_v48, %s7078_s18  ;;  %v10216_v2 = vmul.f32 %v10208_v9, %v5809_v16  ;;  %6182 = vrot.lane.b32.xlu0 %v9814_v55, %s7078_s18  ;;  %v10221_v14 = vmul.f32 %v10208_v9, %v5795_v15  ;;  %v5714_v16 = vsel %vm923_vm7, %v10003_v32, %v10055_v8 }
 0x50e   : > { %v5621_v15 = vsel %vm843_vm6, %v10049_v22, %v10005_v35  ;;  %v5713_v48 = vsel %vm923_vm7, %v10065_v33, %v10024_v50  ;;  %v5715_v8 = vsel %vm923_vm7, %v10013_v57, %v10065_v33  ;;  %v5732_v52 = vmul.f32 %v9981_v37, %v5714_v16 }
 0x50f   : > { %11501 = vst [vmem:[#allocation63_spill] sm:$0xff] %v10216_v2  ;;  %11502 = vst [vmem:[#allocation62_spill] sm:$0xff] %v10221_v14  ;;  %v5623_v2 = vsel %vm843_vm6, %v9997_v0, %v10049_v22  ;;  %v5734_v22 = vmul.f32 %v9981_v37, %v5710_v47  ;;  %v5711_v16 = vsel %vm923_vm7, %v10024_v50, %v10073_v21 }
 0x510   : > { %v10251_v14 = vpop.permute.xlu1 %5856  ;;  %v10253_v55 = vpop.permute.xlu0 %5821  ;;  %v5708_v47 = vsel %vm923_vm7, %v10063_v60, %v10106_v20  ;;  %v5709_v50 = vsel %vm923_vm7, %v10073_v21, %v10120_v12  ;;  %v5742_v60 = vmul.f32 %v9987_v45, %v5711_v16 }
 0x511   : > { %6188 = vrot.lane.b32.xlu1 %v9811_v34, %s7078_s18  ;;  %v10269_v6 = vmul.f32 %v10253_v55, %v5810_v39  ;;  %6186 = vrot.lane.b32.xlu0 %v9854_v61, %s7078_s18  ;;  %v10279_v33 = vmul.f32 %v10253_v55, %v5798_v38  ;;  %v10282_v40 = vmul.f32 %v10253_v55, %v5796_v42 }
 0x512   : > { %v5733_v34 = vmul.f32 %v9981_v37, %v5712_v46  ;;  %v5619_v39 = vsel %vm843_vm6, %v10005_v35, %v10057_v62  ;;  %v5640_v38 = vmul.f32 %v9969_v30, %v5620_v26  ;;  %v5641_v61 = vmul.f32 %v9969_v30, %v5618_v31 }
 0x513   : > { %11503 = vst [vmem:[#allocation64_spill] sm:$0xff] %v10279_v33  ;;  %11504 = vst [vmem:[#allocation65_spill] sm:$0xff] %v10282_v40  ;;  %v5740_v42 = vmul.f32 %v9987_v45, %v5715_v8  ;;  %v5741_v46 = vmul.f32 %v9987_v45, %v5713_v48  ;;  %v5647_v35 = vmul.f32 %v9975_v7, %v5623_v2 }
 0x514   : > { %v5861_v40 = vpop.permute.xlu1 %5860  ;;  %v10298_v33 = vpop.permute.xlu0 %5858  ;;  %v5648_v48 = vmul.f32 %v9975_v7, %v5621_v15  ;;  %v10317_v2 = vadd.f32 %v5732_v52, %v5639_v18  ;;  %v5649_v31 = vmul.f32 %v9975_v7, %v5619_v39  ;;  %v10323_v21 = vadd.f32 %v5733_v34, %v5640_v38 }
 0x515   : > { %v10312_v26 = vsel %vm1243_vm11, %v10251_v14, %v5861_v40  ;;  %6192 = vrot.lane.b32.xlu1 %v9851_v36, %s7078_s18  ;;  %6190 = vrot.lane.b32.xlu0 %v9821_v25, %s7078_s18  ;;  %v10325_v8 = vadd.f32 %v5734_v22, %v5641_v61  ;;  %v5616_v36 = vsel %vm843_vm6, %v10047_v44, %v10087_v1 }
 0x516   : > { %v5617_v18 = vsel %vm843_vm6, %v10057_v62, %v10097_v10  ;;  %v10335_v52 = vadd.f32 %v5740_v42, %v5647_v35  ;;  %v10337_v15 = vadd.f32 %v5741_v46, %v5648_v48  ;;  %v5735_v39 = vmul.f32 %v9981_v37, %v5708_v47 }
 0x517   : > { %v5743_v34 = vmul.f32 %v9987_v45, %v5709_v50  ;;  %v10345_v44 = vsel %vm1003_vm8, %v10071_v27, %v10034_v41  ;;  %v10351_v62 = vsel %vm1003_vm8, %v10022_v63, %v10071_v27  ;;  %v10364_v42 = vadd.f32 %v5742_v60, %v5649_v31 }
 0x518   : > { %v5865_v61 = vpop.permute.xlu1 %5864  ;;  %v5863_v22 = vpop.permute.xlu0 %5862  ;;  %v10370_v63 = vsel %vm1003_vm8, %v10034_v41, %v10079_v23  ;;  %v5642_v27 = vmul.f32 %v9969_v30, %v5616_v36  ;;  %v10380_v46 = vsel %vm1003_vm8, %v10081_v43, %v10043_v5  ;;  %v10386_v35 = vsel %vm1003_vm8, %v10036_v24, %v10081_v43 }
 0x519   : > { %v10355_v16 = vsel %vm1243_vm11, %v5861_v40, %v5865_v61  ;;  %v10360_v38 = vsel %vm1243_vm11, %v10298_v33, %v5863_v22  ;;  %6196 = vrot.lane.b32.xlu1 %v9883_v59, %s7078_s18  ;;  %v5650_v40 = vmul.f32 %v9975_v7, %v5617_v18  ;;  %6194 = vrot.lane.b32.xlu0 %v9861_v58, %s7078_s18  ;;  %v11515_v58 = vld [vmem:[#allocation55_spill] sm:$0xff] }
 0x51a   : > { %11505 = vst [vmem:[#allocation68_spill] sm:$0xff] %v10360_v38  ;;  %v5612_v36 = vsel %vm843_vm6, %v10140_v28, %v10095_v51  ;;  %v5614_v41 = vsel %vm843_vm6, %v10087_v1, %v10140_v28  ;;  %v10400_v47 = vsel %vm1003_vm8, %v10043_v5, %v10089_v53  ;;  %v10402_v50 = vadd.f32 %v5735_v39, %v5642_v27 }
 0x51b   : > { %v10404_v24 = vadd.f32 %v5743_v34, %v5650_v40  ;;  %v10410_v43 = vsel %vm1003_vm8, %v10079_v23, %v10128_v54  ;;  %v10416_v1 = vsel %vm1003_vm8, %v10089_v53, %v10138_v29  ;;  %v5624_v5 = vsel %vm843_vm6, %v10149_v17, %v9989_v19  ;;  %v11507_v34 = vld [vmem:[#allocation60_spill] sm:$0xff] }
 0x51c   : > { %v5869_v48 = vpop.permute.xlu1 %5868  ;;  %v5867_v31 = vpop.permute.xlu0 %5866  ;;  %v5643_v60 = vmul.f32 %v9969_v30, %v5614_v41  ;;  %v5644_v53 = vmul.f32 %v9969_v30, %v5612_v36  ;;  %v5610_v19 = vsel %vm843_vm6, %v10095_v51, %v10149_v17  ;;  %v5613_v18 = vsel %vm843_vm6, %v10142_v13, %v10108_v49  ;;  %v11509_v17 = vld [vmem:[#allocation59_spill] sm:$0xff]  ;;  %v11511_v36 = vld [vmem:[#allocation56_spill] sm:$0xff] }
 0x51d   : > { %v10424_v28 = vsel %vm1243_vm11, %v5865_v61, %v5869_v48  ;;  %v10428_v23 = vsel %vm1243_vm11, %v5863_v22, %v5867_v31  ;;  %6200 = vrot.lane.b32.xlu1 %v9919_v11, %s7078_s18  ;;  %6198 = vrot.lane.b32.xlu0 %v9894_v56, %s7078_s18  ;;  %v5615_v39 = vsel %vm843_vm6, %v10097_v10, %v10142_v13  ;;  %v11508_v61 = vld [vmem:[#allocation57_spill] sm:$0xff]  ;;  %v11510_v13 = vld [vmem:[#allocation54_spill] sm:$0xff] }
 0x51e   : > { %11506 = vst [vmem:[#allocation67_spill] sm:$0xff] %v10428_v23  ;;  %v5704_v22 = vsel %vm923_vm7, %v11508_v61, %v11507_v34  ;;  %v5706_v51 = vsel %vm923_vm7, %v10106_v20, %v11508_v61  ;;  %v5716_v27 = vsel %vm923_vm7, %v11509_v17, %v10003_v32  ;;  %v5638_v40 = vmul.f32 %v9969_v30, %v5624_v5  ;;  %v11512_v32 = vld [vmem:[#allocation58_spill] sm:$0xff] }
 0x51f   : > { %v5702_v10 = vsel %vm923_vm7, %v11507_v34, %v11509_v17  ;;  %v5705_v41 = vsel %vm923_vm7, %v11511_v36, %v11510_v13  ;;  %v5707_v20 = vsel %vm923_vm7, %v10120_v12, %v11511_v36  ;;  %v5703_v5 = vsel %vm923_vm7, %v11510_v13, %v11512_v32  ;;  %v11514_v12 = vld [vmem:[#allocation48_spill] sm:$0xff] }
 0x520   : > { %v5873_v61 = vpop.permute.xlu1 %5872  ;;  %v5871_v56 = vpop.permute.xlu0 %5870  ;;  %v5717_v34 = vsel %vm923_vm7, %v11512_v32, %v10013_v57  ;;  %v5736_v36 = vmul.f32 %v9981_v37, %v5706_v51  ;;  %v5737_v13 = vmul.f32 %v9981_v37, %v5704_v22  ;;  %v5625_v57 = vsel %vm843_vm6, %v11515_v58, %v9997_v0 }
 0x521   : > { %v10483_v17 = vsel %vm1243_vm11, %v5869_v48, %v5873_v61  ;;  %v10487_v11 = vsel %vm1243_vm11, %v5867_v31, %v5871_v56  ;;  %6204 = vrot.lane.b32.xlu1 %v11514_v12, %s7078_s18  ;;  %v5731_v32 = vmul.f32 %v9981_v37, %v5716_v27  ;;  %v11516_v48 = vld [vmem:[#allocation53_spill] sm:$0xff]  ;;  %v5611_v31 = vsel %vm843_vm6, %v10108_v49, %v11515_v58 }
 0x522   : > { %11513 = vst [vmem:[#allocation66_spill] sm:$0xff] %v10487_v11  ;;  %6202 = vrot.lane.b32.xlu0 %v11516_v48, %s7078_s18  ;;  %v5738_v12 = vmul.f32 %v9981_v37, %v5702_v10  ;;  %v5744_v51 = vmul.f32 %v9987_v45, %v5707_v20  ;;  %v5745_v22 = vmul.f32 %v9987_v45, %v5705_v41 }
 0x523   : > { %v5645_v11 = vmul.f32 %v9969_v30, %v5610_v19  ;;  %v5651_v0 = vmul.f32 %v9975_v7, %v5615_v39  ;;  %v5739_v27 = vmul.f32 %v9987_v45, %v5717_v34  ;;  %v5746_v59 = vmul.f32 %v9987_v45, %v5703_v5  ;;  %v11518_v30 = vld [vmem:[#allocation52_spill] sm:$0xff] }
 0x524   : > { %v5877_v48 = vpop.permute.xlu1 %5876  ;;  %v5875_v23 = vpop.permute.xlu0 %5874  ;;  %v5652_v38 = vmul.f32 %v9975_v7, %v5613_v18  ;;  %v5646_v58 = vmul.f32 %v9975_v7, %v5625_v57  ;;  %v5752_v19 = vadd.f32 %v5736_v36, %v5643_v60  ;;  %v5753_v39 = vadd.f32 %v5737_v13, %v5644_v53  ;;  %v11519_v18 = vld [vmem:[#allocation50_spill] sm:$0xff]  ;;  %v11521_v53 = vld [vmem:[#allocation69_spill] sm:$0xff]  ;;  %v11524_v13 = vld [vmem:[#allocation63_spill] sm:$0xff] }
 0x525   : > { %v10515_v37 = vsel %vm1243_vm11, %v5873_v61, %v5877_v48  ;;  %v10519_v49 = vsel %vm1243_vm11, %v5871_v56, %v5875_v23  ;;  %6208 = vrot.lane.b32.xlu1 %v11518_v30, %s7078_s18  ;;  %v5653_v45 = vmul.f32 %v9975_v7, %v5611_v31  ;;  %v5747_v10 = vadd.f32 %v5731_v32, %v5638_v40  ;;  %v11520_v61 = vld [vmem:[#allocation70_spill] sm:$0xff]  ;;  %v11523_v40 = vld [vmem:[#allocation61_spill] sm:$0xff] }
 0x526   : > { %11517 = vst [vmem:[#allocation71_spill] sm:$0xff] %v10519_v49  ;;  %6206 = vrot.lane.b32.xlu0 %v11519_v18, %s7078_s18  ;;  %v5754_v41 = vadd.f32 %v5738_v12, %v5645_v11  ;;  %v5760_v20 = vadd.f32 %v5744_v51, %v5651_v0  ;;  %v5761_v5 = vadd.f32 %v5745_v22, %v5652_v38 }
 0x527   : > { %v5799_v56 = vsel %vm1003_vm8, %v10128_v54, %v11520_v61  ;;  %v5755_v34 = vadd.f32 %v5739_v27, %v5646_v58  ;;  %v5762_v57 = vadd.f32 %v5746_v59, %v5653_v45  ;;  %v5825_v60 = vmul.f32 %v10208_v9, %v10351_v62  ;;  %v11522_v59 = vld [vmem:[#allocation39_spill] sm:$0xff]  ;;  %v11527_v58 = vld [vmem:[#allocation62_spill] sm:$0xff] }
 0x528   : > { %v5881_v49 = vpop.permute.xlu1 %5880  ;;  %v5879_v30 = vpop.permute.xlu0 %5878  ;;  %v5826_v7 = vmul.f32 %v10208_v9, %v10345_v44  ;;  %v5797_v11 = vsel %vm1003_vm8, %v11520_v61, %v11521_v53  ;;  %v5827_v62 = vmul.f32 %v10208_v9, %v10370_v63  ;;  %v5800_v44 = vsel %vm1003_vm8, %v10138_v29, %v10173_v4 }
 0x529   : > { %v5890_v38 = vsel %vm1243_vm11, %v5877_v48, %v5881_v49  ;;  %v10542_v54 = vsel %vm1243_vm11, %v5875_v23, %v5879_v30  ;;  %6273 = vrot.lane.b32.xlu1 %v11522_v59, %s7079_s24  ;;  %v5828_v12 = vmul.f32 %v10208_v9, %v10410_v43  ;;  %v5829_v23 = vmul.f32 %v10208_v9, %v5799_v56 }
 0x52a   : > { %6210 = vrot.lane.b32.xlu0 %v11523_v40, %s7078_s18  ;;  %v5830_v36 = vmul.f32 %v10208_v9, %v5797_v11  ;;  %v5840_v32 = vadd.f32 %v11524_v13, %v5747_v10  ;;  %v5833_v63 = vmul.f32 %v10253_v55, %v10386_v35  ;;  %v5834_v48 = vmul.f32 %v10253_v55, %v10380_v46  ;;  %s6625_s18 = sshll.u32 %s296_s21, 3 }
 0x52b   : > { %v5835_v4 = vmul.f32 %v10253_v55, %v10400_v47  ;;  %v5841_v51 = vadd.f32 %v5825_v60, %v10317_v2  ;;  %v5842_v43 = vadd.f32 %v5826_v7, %v10323_v21  ;;  %v5836_v9 = vmul.f32 %v10253_v55, %v10416_v1  ;;  %v11525_v2 = vld [vmem:[#allocation42_spill] sm:$0xff]  ;;  %v11526_v1 = vld [vmem:[#allocation41_spill] sm:$0xff]  ;;  %s298_s14 = scalar_lea.vmem [#allocation3], %s6625_s18 }
 0x52c   : > { %v5885_v29 = vpop.permute.xlu1 %5884  ;;  %v5883_v31 = vpop.permute.xlu0 %5882  ;;  %v5837_v22 = vmul.f32 %v10253_v55, %v5800_v44  ;;  %v5843_v21 = vadd.f32 %v5827_v62, %v10325_v8  ;;  %v5844_v55 = vadd.f32 %v5828_v12, %v10402_v50  ;;  %v5845_v0 = vadd.f32 %v5829_v23, %v5752_v19  ;;  %v11528_v50 = vld [vmem:[#allocation64_spill] sm:$0xff]  ;;  %s6562_s26 = sshll.u32 %s298_s14, 4  ;;  %s11022_s26 = int_to_ptr.vmem [resolvable:$true] %s6562_s26 }
 0x52d   : > { %v5888_v35 = vsel %vm1243_vm11, %v5881_v49, %v5885_v29  ;;  %v5902_v46 = vsel %vm1243_vm11, %v5885_v29, %v10251_v14  ;;  %v10577_v47 = vsel %vm1243_vm11, %v5879_v30, %v5883_v31  ;;  %6277 = vrot.lane.b32.xlu1 %v11525_v2, %s7079_s24  ;;  %v10585_v27 = vadd.f32 %v5830_v36, %v5753_v39  ;;  %v11529_v39 = vld [vmem:[#allocation65_spill] sm:$0xff]  ;;  %s6997_s11 = scalar_lea.vmem %s11022_s26, 128 }
 0x52e   : > { %6275 = vrot.lane.b32.xlu0 %v11526_v1, %s7079_s24  ;;  %v10588_v49 = vadd.f32 %v11527_v58, %v5754_v41  ;;  %v5848_v14 = vadd.f32 %v10269_v6, %v5755_v34  ;;  %v5849_v30 = vadd.f32 %v5833_v63, %v10335_v52  ;;  %v5850_v45 = vadd.f32 %v5834_v48, %v10337_v15  ;;  %v11530_v15 = vld [vmem:[#allocation40_spill] sm:$0xff]  ;;  %p6998_p11 = scmp.ne.s32.totalorder %s11022_s26, %s6997_s11 }
 0x52f   : > { %v5851_v10 = vadd.f32 %v5835_v4, %v10364_v42  ;;  %v5852_v56 = vadd.f32 %v5836_v9, %v10404_v24  ;;  %v10595_v60 = vadd.f32 %v5837_v22, %v5760_v20  ;;  %v10598_v19 = vadd.f32 %v11528_v50, %v5761_v5  ;;  %v11531_v20 = vld [vmem:[#allocation46_spill] sm:$0xff]  ;;  %v11532_v63 = vld [vmem:[#allocation44_spill] sm:$0xff]  ;;  %v11534_v4 = vld [vmem:[#allocation67_spill] sm:$0xff] }
 0x530   : > { %v5910_v8 = vpop.permute.xlu1 %5909  ;;  %v5887_v61 = vpop.permute.xlu0 %5886  ;;  %v10601_v41 = vadd.f32 %v11529_v39, %v5762_v57  ;;  %v11537_v39 = vld [vmem:[#allocation45_spill] sm:$0xff]  ;;  %p6999_p12 = pnand %p6998_p11, %p7175_p5 }
 0x531   : > { %v10605_v6 = vsel %vm1243_vm11, %v5883_v31, %v5887_v61  ;;  %v5903_v52 = vsel %vm1243_vm11, %v5887_v61, %v10298_v33  ;;  %6281 = vrot.lane.b32.xlu1 %v11530_v15, %s7079_s24  ;;  %v5917_v42 = vmul.f32 %v5910_v8, %v5902_v46  ;;  %v5918_v24 = vmul.f32 %v5910_v8, %v10312_v26  ;;  %v11535_v31 = vld [vmem:[#allocation47_spill] sm:$0xff]  ;;  %v11536_v61 = vld [vmem:[#allocation66_spill] sm:$0xff] }
 0x532   : > { %6279 = vrot.lane.b32.xlu0 %v11531_v20, %s7079_s24  ;;  %v5919_v5 = vmul.f32 %v5910_v8, %v10355_v16  ;;  %v5920_v34 = vmul.f32 %v5910_v8, %v10424_v28  ;;  %v5921_v57 = vmul.f32 %v5910_v8, %v10483_v17  ;;  %v5922_v7 = vmul.f32 %v5910_v8, %v10515_v37  ;;  %p7000_p13 = pneg %p6999_p12 }
 0x533   : > { %v5933_v53 = vadd.f32 %v5917_v42, %v5840_v32  ;;  %v5934_v11 = vadd.f32 %v5918_v24, %v5841_v51  ;;  %v5923_v33 = vmul.f32 %v5910_v8, %v5890_v38  ;;  %v5924_v62 = vmul.f32 %v5910_v8, %v5888_v35  ;;  %v11533_v38 = vld [vmem:[#allocation68_spill] sm:$0xff]  ;;  %v11540_v24 = vld [vmem:[#allocation49_spill] sm:$0xff] }
 0x534   : > { %v5955_v44 = vpop.permute.xlu1 %5954  ;;  %v5915_v12 = vpop.permute.xlu0 %5914  ;;  %v5935_v23 = vadd.f32 %v5919_v5, %v5842_v43  ;;  %v5936_v36 = vadd.f32 %v5920_v34, %v5843_v21  ;;  %v5937_v26 = vadd.f32 %v5921_v57, %v5844_v55  ;;  %v5938_v13 = vadd.f32 %v5922_v7, %v5845_v0 }
 0x535   : > { %6285 = vrot.lane.b32.xlu1 %v11532_v63, %s7079_s24  ;;  %v5962_v16 = vmul.f32 %v5955_v44, %v11522_v59  ;;  %v5963_v28 = vmul.f32 %v5955_v44, %v11525_v2  ;;  %v5925_v17 = vmul.f32 %v5915_v12, %v5903_v52  ;;  %v5964_v37 = vmul.f32 %v5955_v44, %v11530_v15  ;;  %v11538_v52 = vld [vmem:[#allocation51_spill] sm:$0xff] }
 0x536   : > { %6283 = vrot.lane.b32.xlu0 %v9821_v25, %s7079_s24  ;;  %v5926_v32 = vmul.f32 %v5915_v12, %v11533_v38  ;;  %v5965_v48 = vmul.f32 %v5955_v44, %v11532_v63  ;;  %v5927_v29 = vmul.f32 %v5915_v12, %v11534_v4  ;;  %v5966_v51 = vmul.f32 %v5955_v44, %v11535_v31  ;;  %v11539_v15 = vld [vmem:[#allocation71_spill] sm:$0xff] }
 0x537   : > { %v10630_v43 = vadd.f32 %v5962_v16, %v5933_v53  ;;  %v10632_v9 = vadd.f32 %v5963_v28, %v5934_v11  ;;  %v5941_v59 = vadd.f32 %v5925_v17, %v5848_v14  ;;  %v10634_v22 = vadd.f32 %v5964_v37, %v5935_v23  ;;  %v11541_v16 = vld [vmem:[#allocation48_spill] sm:$0xff] }
 0x538   : > { %v10636_v35 = vpop.permute.xlu1 %5994  ;;  %v5960_v46 = vpop.permute.xlu0 %5959  ;;  %v5942_v2 = vadd.f32 %v5926_v32, %v5849_v30  ;;  %v10638_v21 = vadd.f32 %v5965_v48, %v5936_v36  ;;  %v5943_v55 = vadd.f32 %v5927_v29, %v5850_v45  ;;  %v10640_v0 = vadd.f32 %v5966_v51, %v5937_v26  ;;  %v11542_v28 = vld [vmem:[#allocation52_spill] sm:$0xff] }
 0x539   : > { %6289 = vrot.lane.b32.xlu1 %v11535_v31, %s7079_s24  ;;  %v5970_v58 = vmul.f32 %v5960_v46, %v11526_v1  ;;  %v5971_v8 = vmul.f32 %v5960_v46, %v11531_v20  ;;  %v5972_v14 = vmul.f32 %v5960_v46, %v9821_v25  ;;  %v5928_v50 = vmul.f32 %v5915_v12, %v11536_v61 }
 0x53a   : > { %6287 = vrot.lane.b32.xlu0 %v11537_v39, %s7079_s24  ;;  %v5973_v30 = vmul.f32 %v5960_v46, %v11537_v39  ;;  %v5967_v45 = vmul.f32 %v5955_v44, %v11538_v52  ;;  %v5929_v42 = vmul.f32 %v5915_v12, %v11539_v15  ;;  %v5974_v5 = vmul.f32 %v5960_v46, %v11540_v24 }
 0x53b   : > { %v10654_v34 = vadd.f32 %v5970_v58, %v5941_v59  ;;  %v10656_v1 = vadd.f32 %v5971_v8, %v5942_v2  ;;  %v10658_v20 = vadd.f32 %v5972_v14, %v5943_v55  ;;  %v5944_v25 = vadd.f32 %v5928_v50, %v5851_v10 }
 0x53c   : > { %v5999_v57 = vpop.permute.xlu1 %5998  ;;  %v5997_v7 = vpop.permute.xlu0 %5996  ;;  %v10660_v53 = vadd.f32 %v5967_v45, %v5938_v13  ;;  %v5945_v11 = vadd.f32 %v5929_v42, %v5852_v56  ;;  %v5939_v23 = vadd.f32 %v5923_v33, %v10585_v27  ;;  %v5940_v36 = vadd.f32 %v5924_v62, %v10588_v49  ;;  %v11543_v49 = vld [vmem:[#allocation53_spill] sm:$0xff] }
 0x53d   : > { %v6038_v26 = vsel %vm1346_vm12, %v10636_v35, %v5999_v57  ;;  %6293 = vrot.lane.b32.xlu1 %v11538_v52, %s7079_s24  ;;  %v10669_v63 = vadd.f32 %v5973_v30, %v5944_v25  ;;  %v5968_v10 = vmul.f32 %v5955_v44, %v11541_v16  ;;  %v5969_v17 = vmul.f32 %v5955_v44, %v11542_v28 }
 0x53e   : > { %6291 = vrot.lane.b32.xlu0 %v11540_v24, %s7079_s24  ;;  %v10675_v56 = vadd.f32 %v5974_v5, %v5945_v11  ;;  %v5930_v27 = vmul.f32 %v5915_v12, %v10542_v54  ;;  %v5975_v33 = vmul.f32 %v5960_v46, %v11543_v49  ;;  %v5931_v62 = vmul.f32 %v5915_v12, %v10577_v47 }
 0x53f   : > { %v10680_v13 = vadd.f32 %v5968_v10, %v5939_v23  ;;  %v10682_v37 = vadd.f32 %v5969_v17, %v5940_v36  ;;  %v5932_v38 = vmul.f32 %v5915_v12, %v10605_v6  ;;  %v5976_v32 = vmul.f32 %v5960_v46, %v11519_v18 }
 0x540   : > { %v6003_v44 = vpop.permute.xlu1 %6002  ;;  %v6001_v48 = vpop.permute.xlu0 %6000  ;;  %v5946_v4 = vadd.f32 %v5930_v27, %v10595_v60  ;;  %v5947_v29 = vadd.f32 %v5931_v62, %v10598_v19  ;;  %v5977_v54 = vmul.f32 %v5960_v46, %v11523_v40 }
 0x541   : > { %v6036_v31 = vsel %vm1346_vm12, %v5999_v57, %v6003_v44  ;;  %v6039_v47 = vsel %vm1346_vm12, %v5997_v7, %v6001_v48  ;;  %6297 = vrot.lane.b32.xlu1 %v11541_v16, %s7079_s24  ;;  %v5948_v6 = vadd.f32 %v5932_v38, %v10601_v41  ;;  %v6422_v41 = vld [vmem:[#allocation2] sm:$0x1] }
 0x542   : > { %6295 = vrot.lane.b32.xlu0 %v11543_v49, %s7079_s24  ;;  %v10698_v12 = vadd.f32 %v5975_v33, %v5946_v4  ;;  %v10700_v60 = vadd.f32 %v5976_v32, %v5947_v29 }
 0x543   : > { %v10702_v19 = vadd.f32 %v5977_v54, %v5948_v6 }
 0x544   : > { %v6007_v51 = vpop.permute.xlu1 %6006  ;;  %v6005_v59 = vpop.permute.xlu0 %6004 }
 0x545   : > { %v6034_v46 = vsel %vm1346_vm12, %v6003_v44, %v6007_v51  ;;  %v6037_v2 = vsel %vm1346_vm12, %v6001_v48, %v6005_v59  ;;  %6301 = vrot.lane.b32.xlu1 %v11542_v28, %s7079_s24 }
 0x546   : > { %6299 = vrot.lane.b32.xlu0 %v11519_v18, %s7079_s24 }
 0x548   : > { %v6011_v55 = vpop.permute.xlu1 %6010  ;;  %v6009_v58 = vpop.permute.xlu0 %6008 }
 0x549   : > { %v6032_v8 = vsel %vm1346_vm12, %v6007_v51, %v6011_v55  ;;  %v6035_v14 = vsel %vm1346_vm12, %v6005_v59, %v6009_v58  ;;  %6425 = vperm.xlu1 %6964, %v6422_v41  }
 0x54a   : > { %6303 = vrot.lane.b32.xlu0 %v11523_v40, %s7079_s24  ;;  %s6768_s24 = sshll.u32 %s7158_s7, 7  ;;  %s7088_s7 = smov [#allocation3]  }
 0x54b   : > { %s11020_s22 = scalar_lea.hbm %s11070_s8, %s6768_s24  ;;  %s7001_s28 = sshll.u32 %s7088_s7, 4  ;;  %s7002_s28 = int_to_ptr.vmem [resolvable:$false] %s7001_s28 }
 0x54c   : > { %v6015_v61 = vpop.permute.xlu1 %6014  ;;  %v6013_v50 = vpop.permute.xlu0 %6012  ;;  %s7003_s19 = scalar_lea.vmem %s7002_s28, 256  ;;  %p7004_p0 = scmp.lt.s32.totalorder %s11022_s26, %s7002_s28 }
 0x54d   : > { %v6030_v39 = vsel %vm1346_vm12, %v6011_v55, %v6015_v61  ;;  %v6033_v18 = vsel %vm1346_vm12, %v6009_v58, %v6013_v50  ;;  %p7005_p1 = scmp.lt.s32.totalorder %s7003_s19, %s6997_s11 }
 0x54f   : > { %p7006_p2 = por %p7005_p1, %p7004_p0 }
 0x550   : > { %v6019_v30 = vpop.permute.xlu1 %6018  ;;  %v6017_v52 = vpop.permute.xlu0 %6016 }
 0x551   : > { %v6028_v45 = vsel %vm1346_vm12, %v6015_v61, %v6019_v30  ;;  %v6031_v15 = vsel %vm1346_vm12, %v6013_v50, %v6017_v52  ;;  %p7007_p3 = pnand %p7006_p2, %p7000_p13 }
 0x554   : > { %v6023_v42 = vpop.permute.xlu1 %6022  ;;  %v6021_v24 = vpop.permute.xlu0 %6020 }
 0x555   : > { %v6026_v40 = vsel %vm1346_vm12, %v6019_v30, %v6023_v42  ;;  %v6040_v5 = vsel %vm1346_vm12, %v6023_v42, %v10636_v35  ;;  %v6029_v25 = vsel %vm1346_vm12, %v6017_v52, %v6021_v24 }
 0x558   : > { %v6048_v57 = vpop.permute.xlu1 %6047  ;;  %v6025_v11 = vpop.permute.xlu0 %6024 }
 0x559   : > { %v6027_v23 = vsel %vm1346_vm12, %v6021_v24, %v6025_v11  ;;  %v6041_v36 = vsel %vm1346_vm12, %v6025_v11, %v5997_v7  ;;  %v6055_v16 = vmul.f32 %v6048_v57, %v6038_v26  ;;  %v6056_v10 = vmul.f32 %v6048_v57, %v6036_v31 }
 0x55a   : > { %v6057_v28 = vmul.f32 %v6048_v57, %v6034_v46  ;;  %v6058_v17 = vmul.f32 %v6048_v57, %v6032_v8  ;;  %v6059_v27 = vmul.f32 %v6048_v57, %v6030_v39  ;;  %v6060_v49 = vmul.f32 %v6048_v57, %v6028_v45 }
 0x55b   : > { %v6071_v33 = vadd.f32 %v6055_v16, %v10630_v43  ;;  %v6072_v35 = vadd.f32 %v6056_v10, %v10632_v9  ;;  %v6061_v62 = vmul.f32 %v6048_v57, %v6026_v40  ;;  %v6062_v38 = vmul.f32 %v6048_v57, %v6040_v5 }
 0x55c   : > { %v10739_v32 = vpop.permute.xlu1 %6140  ;;  %v6053_v44 = vpop.permute.xlu0 %6052  ;;  %v6073_v48 = vadd.f32 %v6057_v28, %v10634_v22  ;;  %v6074_v4 = vadd.f32 %v6058_v17, %v10638_v21  ;;  %v6075_v7 = vadd.f32 %v6059_v27, %v10640_v0  ;;  %v10745_v26 = vadd.f32 %v6060_v49, %v10660_v53 }
 0x55d   : > { %v6063_v29 = vmul.f32 %v6053_v44, %v6039_v47  ;;  %v6064_v54 = vmul.f32 %v6053_v44, %v6037_v2  ;;  %v6065_v31 = vmul.f32 %v6053_v44, %v6035_v14  ;;  %v6066_v43 = vmul.f32 %v6053_v44, %v6033_v18 }
 0x55e   : > { %v6067_v6 = vmul.f32 %v6053_v44, %v6031_v15  ;;  %v10748_v9 = vadd.f32 %v6061_v62, %v10680_v13  ;;  %v10751_v51 = vadd.f32 %v6062_v38, %v10682_v37  ;;  %v6068_v59 = vmul.f32 %v6053_v44, %v6029_v25 }
 0x55f   : > { %v6079_v22 = vadd.f32 %v6063_v29, %v10654_v34  ;;  %v6080_v21 = vadd.f32 %v6064_v54, %v10656_v1  ;;  %v6081_v0 = vadd.f32 %v6065_v31, %v10658_v20  ;;  %v6082_v53 = vadd.f32 %v6066_v43, %v10669_v63 }
 0x560   : > { %v10757_v47 = vpop.permute.xlu1 %6233  ;;  %v10759_v46 = vpop.permute.xlu0 %6145  ;;  %v6083_v2 = vadd.f32 %v6067_v6, %v10675_v56  ;;  %v10763_v13 = vadd.f32 %v6068_v59, %v10698_v12  ;;  %v6069_v37 = vmul.f32 %v6053_v44, %v6027_v23  ;;  %v6070_v41 = vmul.f32 %v6053_v44, %v6041_v36 }
 0x562   : > { %v10766_v55 = vadd.f32 %v6069_v37, %v10700_v60  ;;  %v10769_v34 = vadd.f32 %v6070_v41, %v10702_v19 }
 0x564   : > { %v10771_v1 = vpop.permute.xlu1 %6326  ;;  %v10773_v20 = vpop.permute.xlu0 %6238 }
 0x568   : > { %v6088_v63 = vpop.permute.xlu1 %6087  ;;  %v10775_v58 = vpop.permute.xlu0 %6331 }
 0x56c   : > { %v6092_v8 = vpop.permute.xlu1 %6091  ;;  %v6090_v12 = vpop.permute.xlu0 %6089 }
 0x56d   : > { %v6131_v56 = vsel %vm1586_vm15, %v6088_v63, %v6092_v8 }
 0x56e   : > { %v6148_v14 = vmul.f32 %v10739_v32, %v6131_v56 }
 0x570   : > { %v10780_v61 = vadd.f32 %v6148_v14, %v6071_v33  ;;  %v6096_v60 = vpop.permute.xlu1 %6095  ;;  %v6094_v50 = vpop.permute.xlu0 %6093 }
 0x571   : > { %v6129_v19 = vsel %vm1586_vm15, %v6092_v8, %v6096_v60  ;;  %v6132_v18 = vsel %vm1586_vm15, %v6090_v12, %v6094_v50 }
 0x572   : > { %v6149_v39 = vmul.f32 %v10739_v32, %v6129_v19  ;;  %v6156_v30 = vmul.f32 %v10759_v46, %v6132_v18 }
 0x574   : > { %v10788_v52 = vadd.f32 %v6149_v39, %v6072_v35  ;;  %v6100_v45 = vpop.permute.xlu1 %6099  ;;  %v10790_v15 = vadd.f32 %v6156_v30, %v6079_v22  ;;  %v6098_v24 = vpop.permute.xlu0 %6097 }
 0x575   : > { %v6127_v42 = vsel %vm1586_vm15, %v6096_v60, %v6100_v45  ;;  %v6130_v5 = vsel %vm1586_vm15, %v6094_v50, %v6098_v24 }
 0x576   : > { %v6150_v40 = vmul.f32 %v10739_v32, %v6127_v42  ;;  %v6157_v25 = vmul.f32 %v10759_v46, %v6130_v5 }
 0x578   : > { %v10798_v57 = vadd.f32 %v6150_v40, %v6073_v48  ;;  %v6104_v11 = vpop.permute.xlu1 %6103  ;;  %v10800_v23 = vadd.f32 %v6157_v25, %v6080_v21  ;;  %v6102_v16 = vpop.permute.xlu0 %6101 }
 0x579   : > { %v6125_v36 = vsel %vm1586_vm15, %v6100_v45, %v6104_v11  ;;  %v6128_v28 = vsel %vm1586_vm15, %v6098_v24, %v6102_v16 }
 0x57a   : > { %v6151_v10 = vmul.f32 %v10739_v32, %v6125_v36  ;;  %v6158_v17 = vmul.f32 %v10759_v46, %v6128_v28 }
 0x57c   : > { %v10808_v27 = vadd.f32 %v6151_v10, %v6074_v4  ;;  %v6108_v49 = vpop.permute.xlu1 %6107  ;;  %v10810_v33 = vadd.f32 %v6158_v17, %v6081_v0  ;;  %v6106_v62 = vpop.permute.xlu0 %6105 }
 0x57d   : > { %v6123_v35 = vsel %vm1586_vm15, %v6104_v11, %v6108_v49  ;;  %v6126_v44 = vsel %vm1586_vm15, %v6102_v16, %v6106_v62 }
 0x57e   : > { %v6152_v38 = vmul.f32 %v10739_v32, %v6123_v35  ;;  %v6159_v48 = vmul.f32 %v10759_v46, %v6126_v44 }
 0x580   : > { %v10818_v29 = vadd.f32 %v6152_v38, %v6075_v7  ;;  %v6112_v54 = vpop.permute.xlu1 %6111  ;;  %v10820_v31 = vadd.f32 %v6159_v48, %v6082_v53  ;;  %v6110_v43 = vpop.permute.xlu0 %6109 }
 0x581   : > { %v6121_v4 = vsel %vm1586_vm15, %v6108_v49, %v6112_v54  ;;  %v6124_v59 = vsel %vm1586_vm15, %v6106_v62, %v6110_v43 }
 0x582   : > { %v6153_v6 = vmul.f32 %v10739_v32, %v6121_v4  ;;  %v6160_v22 = vmul.f32 %v10759_v46, %v6124_v59 }
 0x584   : > { %v10829_v21 = vadd.f32 %v6153_v6, %v10745_v26  ;;  %v6116_v0 = vpop.permute.xlu1 %6115  ;;  %v10831_v7 = vadd.f32 %v6160_v22, %v6083_v2  ;;  %v6114_v41 = vpop.permute.xlu0 %6113 }
 0x585   : > { %v6119_v53 = vsel %vm1586_vm15, %v6112_v54, %v6116_v0  ;;  %v6133_v37 = vsel %vm1586_vm15, %v6116_v0, %v6088_v63  ;;  %v6122_v14 = vsel %vm1586_vm15, %v6110_v43, %v6114_v41 }
 0x586   : > { %v6154_v8 = vmul.f32 %v10739_v32, %v6119_v53  ;;  %v6155_v56 = vmul.f32 %v10739_v32, %v6133_v37  ;;  %v6161_v26 = vmul.f32 %v10759_v46, %v6122_v14 }
 0x588   : > { %v10843_v60 = vadd.f32 %v6154_v8, %v10748_v9  ;;  %v10846_v2 = vadd.f32 %v6155_v56, %v10751_v51  ;;  %v10848_v19 = vpop.permute.xlu1 %6180  ;;  %v10851_v63 = vadd.f32 %v6161_v26, %v10763_v13  ;;  %v6118_v50 = vpop.permute.xlu0 %6117 }
 0x589   : > { %v6120_v32 = vsel %vm1586_vm15, %v6114_v41, %v6118_v50  ;;  %v6134_v39 = vsel %vm1586_vm15, %v6118_v50, %v6090_v12 }
 0x58a   : > { %v6162_v18 = vmul.f32 %v10759_v46, %v6120_v32  ;;  %v6163_v9 = vmul.f32 %v10759_v46, %v6134_v39 }
 0x58c   : > { %v6185_v30 = vpop.permute.xlu1 %6184  ;;  %v10860_v51 = vadd.f32 %v6162_v18, %v10766_v55  ;;  %v10863_v45 = vadd.f32 %v6163_v9, %v10769_v34  ;;  %v10865_v13 = vpop.permute.xlu0 %6182 }
 0x58d   : > { %v6224_v17 = vsel %vm1666_vm0, %v10848_v19, %v6185_v30 }
 0x58e   : > { %v6241_v38 = vmul.f32 %v10757_v47, %v6224_v17 }
 0x590   : > { %v6189_v42 = vpop.permute.xlu1 %6188  ;;  %v6187_v24 = vpop.permute.xlu0 %6186  ;;  %v6257_v8 = vadd.f32 %v6241_v38, %v10780_v61 }
 0x591   : > { %v6222_v49 = vsel %vm1666_vm0, %v6185_v30, %v6189_v42  ;;  %v6225_v35 = vsel %vm1666_vm0, %v10865_v13, %v6187_v24 }
 0x592   : > { %v6242_v44 = vmul.f32 %v10757_v47, %v6222_v49  ;;  %v6249_v6 = vmul.f32 %v10773_v20, %v6225_v35 }
 0x594   : > { %v6193_v40 = vpop.permute.xlu1 %6192  ;;  %v6191_v5 = vpop.permute.xlu0 %6190  ;;  %v6258_v56 = vadd.f32 %v6242_v44, %v10788_v52  ;;  %v6265_v61 = vadd.f32 %v6249_v6, %v10790_v15 }
 0x595   : > { %v6220_v48 = vsel %vm1666_vm0, %v6189_v42, %v6193_v40  ;;  %v6223_v54 = vsel %vm1666_vm0, %v6187_v24, %v6191_v5 }
 0x596   : > { %v6243_v0 = vmul.f32 %v10757_v47, %v6220_v48  ;;  %v6250_v53 = vmul.f32 %v10773_v20, %v6223_v54 }
 0x598   : > { %v6197_v25 = vpop.permute.xlu1 %6196  ;;  %v6195_v11 = vpop.permute.xlu0 %6194  ;;  %v6259_v24 = vadd.f32 %v6243_v0, %v10798_v57 }
 0x599   : > { %v6218_v59 = vsel %vm1666_vm0, %v6193_v40, %v6197_v25  ;;  %v6221_v22 = vsel %vm1666_vm0, %v6191_v5, %v6195_v11  ;;  %v6266_v40 = vadd.f32 %v6250_v53, %v10800_v23 }
 0x59a   : > { %v6244_v32 = vmul.f32 %v10757_v47, %v6218_v59  ;;  %v6251_v39 = vmul.f32 %v10773_v20, %v6221_v22 }
 0x59c   : > { %v6201_v12 = vpop.permute.xlu1 %6200  ;;  %v6199_v36 = vpop.permute.xlu0 %6198  ;;  %v6267_v57 = vadd.f32 %v6251_v39, %v10810_v33 }
 0x59d   : > { %v6216_v37 = vsel %vm1666_vm0, %v6197_v25, %v6201_v12  ;;  %v6219_v14 = vsel %vm1666_vm0, %v6195_v11, %v6199_v36 }
 0x59e   : > { %v6245_v52 = vmul.f32 %v10757_v47, %v6216_v37  ;;  %v6252_v5 = vmul.f32 %v10773_v20, %v6219_v14 }
 0x5a0   : > { %v6205_v16 = vpop.permute.xlu1 %6204  ;;  %v10867_v10 = vpop.permute.xlu0 %6202 }
 0x5a1   : > { %v6214_v30 = vsel %vm1666_vm0, %v6201_v12, %v6205_v16  ;;  %v6217_v25 = vsel %vm1666_vm0, %v6199_v36, %v10867_v10  ;;  %v6261_v36 = vadd.f32 %v6245_v52, %v10818_v29 }
 0x5a2   : > { %v6246_v23 = vmul.f32 %v10757_v47, %v6214_v30  ;;  %v6253_v6 = vmul.f32 %v10773_v20, %v6217_v25 }
 0x5a4   : > { %v6209_v46 = vpop.permute.xlu1 %6208  ;;  %v10869_v28 = vpop.permute.xlu0 %6206  ;;  %v6262_v37 = vadd.f32 %v6246_v23, %v10829_v21  ;;  %v6269_v52 = vadd.f32 %v6253_v6, %v10831_v7 }
 0x5a5   : > { %v6212_v44 = vsel %vm1666_vm0, %v6205_v16, %v6209_v46 }
 0x5a8   : > { %v10871_v55 = vpop.permute.xlu1 %6273  ;;  %v10873_v34 = vpop.permute.xlu0 %6210 }
 0x5ac   : > { %v6278_v62 = vpop.permute.xlu1 %6277  ;;  %v10889_v4 = vpop.permute.xlu0 %6275 }
 0x5ad   : > { %v6317_v43 = vsel %vm1746_vm1, %v10871_v55, %v6278_v62 }
 0x5ae   : > { %v6334_v26 = vmul.f32 %v10771_v1, %v6317_v43  ;;  %v6268_v43 = vadd.f32 %v6252_v5, %v10820_v31  ;;  %v6247_v31 = vmul.f32 %v10757_v47, %v6212_v44 }
 0x5b0   : > { %v6282_v41 = vpop.permute.xlu1 %6281  ;;  %v6280_v50 = vpop.permute.xlu0 %6279  ;;  %v6350_v17 = vadd.f32 %v6334_v26, %v6257_v8  ;;  %v6227_v26 = vsel %vm1666_vm0, %v10873_v34, %v10865_v13  ;;  %v6263_v5 = vadd.f32 %v6247_v31, %v10843_v60 }
 0x5b1   : > { %v6315_v18 = vsel %vm1746_vm1, %v6278_v62, %v6282_v41  ;;  %v6318_v9 = vsel %vm1746_vm1, %v10889_v4, %v6280_v50  ;;  %v6260_v62 = vadd.f32 %v6244_v32, %v10808_v27  ;;  %v6226_v27 = vsel %vm1666_vm0, %v6209_v46, %v10848_v19 }
 0x5b2   : > { %v6342_v42 = vmul.f32 %v10775_v58, %v6318_v9  ;;  %v6335_v15 = vmul.f32 %v10771_v1, %v6315_v18  ;;  %v6213_v46 = vsel %vm1666_vm0, %v10869_v28, %v10873_v34  ;;  %v6248_v21 = vmul.f32 %v10757_v47, %v6226_v27 }
 0x5b3   : > { %v6255_v30 = vmul.f32 %v10773_v20, %v6213_v46 }
 0x5b4   : > { %v6286_v11 = vpop.permute.xlu1 %6285  ;;  %v6358_v49 = vadd.f32 %v6342_v42, %v6265_v61  ;;  %v6284_v35 = vpop.permute.xlu0 %6283  ;;  %v6351_v22 = vadd.f32 %v6335_v15, %v6258_v56  ;;  %v6264_v25 = vadd.f32 %v6248_v21, %v10846_v2 }
 0x5b5   : > { %v6313_v12 = vsel %vm1746_vm1, %v6282_v41, %v6286_v11  ;;  %v6316_v38 = vsel %vm1746_vm1, %v6280_v50, %v6284_v35  ;;  %v6215_v41 = vsel %vm1666_vm0, %v10867_v10, %v10869_v28  ;;  %v6271_v2 = vadd.f32 %v6255_v30, %v10860_v51 }
 0x5b6   : > { %v6366_v48 = vadd.f32 %v6358_v49, %v6350_v17  ;;  %v6343_v54 = vmul.f32 %v10775_v58, %v6316_v38  ;;  %v6336_v33 = vmul.f32 %v10771_v1, %v6313_v12  ;;  %v6254_v47 = vmul.f32 %v10773_v20, %v6215_v41 }
 0x5b8   : > { %v6290_v59 = vpop.permute.xlu1 %6289  ;;  %v6367_v0 = vrot.slane %v6366_v48, 4  ;;  %v6359_v29 = vadd.f32 %v6343_v54, %v6266_v40  ;;  %v6288_v53 = vpop.permute.xlu0 %6287  ;;  %v6352_v10 = vadd.f32 %v6336_v33, %v6259_v24  ;;  %v6270_v23 = vadd.f32 %v6254_v47, %v10851_v63 }
 0x5b9   : > { %v6311_v16 = vsel %vm1746_vm1, %v6286_v11, %v6290_v59  ;;  %v6314_v19 = vsel %vm1746_vm1, %v6284_v35, %v6288_v53  ;;  %v6256_v11 = vmul.f32 %v10773_v20, %v6227_v26 }
 0x5ba   : > { %v6368_v8 = vadd.f32 %v6367_v0, %v6366_v48  ;;  %v6373_v56 = vadd.f32 %v6359_v29, %v6351_v22  ;;  %v6344_v14 = vmul.f32 %v10775_v58, %v6314_v19  ;;  %v6337_v50 = vmul.f32 %v10771_v1, %v6311_v16 }
 0x5bb   : > { %v6272_v6 = vadd.f32 %v6256_v11, %v10863_v45 }
 0x5bc   : > { %v6294_v32 = vpop.permute.xlu1 %6293  ;;  %v6369_v39 = vrot.slane %v6368_v8, 2  ;;  %v6374_v18 = vrot.slane %v6373_v56, 4  ;;  %v6360_v9 = vadd.f32 %v6344_v14, %v6267_v57  ;;  %v6292_v61 = vpop.permute.xlu0 %6291  ;;  %v6353_v49 = vadd.f32 %v6337_v50, %v6260_v62 }
 0x5bd   : > { %v6309_v28 = vsel %vm1746_vm1, %v6290_v59, %v6294_v32  ;;  %v6312_v13 = vsel %vm1746_vm1, %v6288_v53, %v6292_v61 }
 0x5be   : > { %v6370_v34 = vadd.f32 %v6369_v39, %v6368_v8  ;;  %v6375_v42 = vadd.f32 %v6374_v18, %v6373_v56  ;;  %v6380_v24 = vadd.f32 %v6360_v9, %v6352_v10  ;;  %v6345_v40 = vmul.f32 %v10775_v58, %v6312_v13  ;;  %v11544_v18 = vld [vmem:[#allocation7_spill] sm:$0xff] }
 0x5bf   : > { %v6338_v7 = vmul.f32 %v10771_v1, %v6309_v28 }
 0x5c0   : > { %v6298_v17 = vpop.permute.xlu1 %6297  ;;  %v6376_v15 = vrot.slane %v6375_v42, 2  ;;  %v6381_v12 = vrot.slane %v6380_v24, 4  ;;  %v6361_v35 = vadd.f32 %v6345_v40, %v6268_v43  ;;  %v6296_v57 = vpop.permute.xlu0 %6295  ;;  %v6371_v38 = vrot.slane %v6370_v34, 1 }
 0x5c1   : > { %v6307_v44 = vsel %vm1746_vm1, %v6294_v32, %v6298_v17  ;;  %v6310_v60 = vsel %vm1746_vm1, %v6292_v61, %v6296_v57  ;;  %v6354_v62 = vadd.f32 %v6338_v7, %v6261_v36 }
 0x5c2   : > { %v6377_v20 = vadd.f32 %v6376_v15, %v6375_v42  ;;  %v6382_v48 = vadd.f32 %v6381_v12, %v6380_v24  ;;  %v6387_v54 = vadd.f32 %v6361_v35, %v6353_v49  ;;  %v6339_v43 = vmul.f32 %v10771_v1, %v6307_v44 }
 0x5c3   : > { %v6346_v27 = vmul.f32 %v10775_v58, %v6310_v60  ;;  %v6372_v16 = vadd.f32 %v6371_v38, %v6370_v34 }
 0x5c4   : > { %v6302_v63 = vpop.permute.xlu1 %6301  ;;  %v6378_v33 = vrot.slane %v6377_v20, 1  ;;  %v6383_v59 = vrot.slane %v6382_v48, 2  ;;  %v6388_v22 = vrot.slane %v6387_v54, 4  ;;  %v6300_v29 = vpop.permute.xlu0 %6299  ;;  %v6355_v41 = vadd.f32 %v6339_v43, %v6262_v37 }
 0x5c5   : > { %v6305_v0 = vsel %vm1746_vm1, %v6298_v17, %v6302_v63  ;;  %v6362_v51 = vadd.f32 %v6346_v27, %v6269_v52  ;;  %v6319_v53 = vsel %vm1746_vm1, %v6302_v63, %v10871_v55  ;;  %v6308_v14 = vsel %vm1746_vm1, %v6296_v57, %v6300_v29 }
 0x5c6   : > { %v6340_v45 = vmul.f32 %v10771_v1, %v6305_v0  ;;  %v6384_v36 = vadd.f32 %v6383_v59, %v6382_v48  ;;  %v6389_v31 = vadd.f32 %v6388_v22, %v6387_v54  ;;  %v6341_v19 = vmul.f32 %v10771_v1, %v6319_v53 }
 0x5c7   : > { %v6379_v46 = vadd.f32 %v6378_v33, %v6377_v20  ;;  %v6394_v8 = vadd.f32 %v6362_v51, %v6354_v62  ;;  %v6347_v32 = vmul.f32 %v10775_v58, %v6308_v14 }
 0x5c8   : > { %v6356_v56 = vadd.f32 %v6340_v45, %v6263_v5  ;;  %v6426_v21 = vpop.permute.xlu1 %6425  ;;  %v6385_v26 = vrot.slane %v6384_v36, 1  ;;  %v6390_v10 = vrot.slane %v6389_v31, 2  ;;  %v6357_v50 = vadd.f32 %v6341_v19, %v6264_v25  ;;  %v6304_v55 = vpop.permute.xlu0 %6303 }
 0x5c9   : > { %v6395_v39 = vrot.slane %v6394_v8, 4  ;;  %v10997_v9 = vrot.slane %v6426_v21, %v11544_v18  ;;  %v6306_v1 = vsel %vm1746_vm1, %v6300_v29, %v6304_v55  ;;  %v6320_v37 = vsel %vm1746_vm1, %v6304_v55, %v10889_v4 }
 0x5ca   : > { %v6386_v28 = vadd.f32 %v6385_v26, %v6384_v36  ;;  %v6391_v61 = vadd.f32 %v6390_v10, %v6389_v31  ;;  %v6363_v52 = vadd.f32 %v6347_v32, %v6270_v23  ;;  %v6348_v47 = vmul.f32 %v10775_v58, %v6306_v1 }
 0x5cb   : > { %v6396_v30 = vadd.f32 %v6395_v39, %v6394_v8  ;;  %v6349_v13 = vmul.f32 %v10775_v58, %v6320_v37  ;;  %v6432_v34 = vadd.f32 %v10997_v9, %v6372_v16  ;;  %v6433_v42 = vadd.f32 %v10997_v9, %v6379_v46 }
 0x5cc   : > { %v6392_v24 = vrot.slane %v6391_v61, 1  ;;  %v6401_v40 = vadd.f32 %v6363_v52, %v6355_v41  ;;  %v6364_v5 = vadd.f32 %v6348_v47, %v6271_v2  ;;  %v6434_v25 = vadd.f32 %v10997_v9, %v6386_v28 }
 0x5cd   : > { %v6397_v11 = vrot.slane %v6396_v30, 2  ;;  %v6365_v3 = vadd.f32 %v6349_v13, %v6272_v6  ;;  %v6755_v4 = vmul.f32 -1.442695, %v6432_v34  ;;  %v6756_v7 = vmul.f32 -1.442695, %v6433_v42 }
 0x5ce   : > { %v6393_v17 = vadd.f32 %v6392_v24, %v6391_v61  ;;  %v6402_v15 = vrot.slane %v6401_v40, 4  ;;  %v6408_v49 = vadd.f32 %v6364_v5, %v6356_v56  ;;  %v6757_v12 = vmul.f32 -1.442695, %v6434_v25 }
 0x5cf   : > { %v6398_v35 = vadd.f32 %v6397_v11, %v6396_v30  ;;  %v6415_v57 = vadd.f32 %v6365_v3, %v6357_v50  ;;  %6965 = vpow2.f32 %v6755_v4  ;;  %v7087_v18 = vmov 1966171168  }
 0x5d0   : > { %v6403_v58 = vadd.f32 %v6402_v15, %v6401_v40  ;;  %v6409_v23 = vrot.slane %v6408_v49, 4  ;;  %v6435_v38 = vadd.f32 %v10997_v9, %v6393_v17  ;;  %6967 = vpow2.f32 %v6756_v7  ;;  %v11545_v40 = vld [vmem:[#allocation6_spill] sm:$0xff] }
 0x5d1   : > { %v6399_v44 = vrot.slane %v6398_v35, 1  ;;  %v6416_v60 = vrot.slane %v6415_v57, 4  ;;  %6969 = vpow2.f32 %v6757_v12  ;;  %v6501_v1 = vunpack.c.l.s4 %v7087_v18 }
 0x5d2   : > { %v6404_v2 = vrot.slane %v6403_v58, 2  ;;  %v6410_v20 = vadd.f32 %v6409_v23, %v6408_v49  ;;  %v6758_v48 = vmul.f32 -1.442695, %v6435_v38 }
 0x5d3   : > { %v6400_v54 = vadd.f32 %v6399_v44, %v6398_v35  ;;  %v6417_v6 = vadd.f32 %v6416_v60, %v6415_v57  ;;  %v6502_v52 = vunpack.c.0.s8 %v6501_v1 }
 0x5d4   : > { %v6405_v62 = vadd.f32 %v6404_v2, %v6403_v58  ;;  %v6411_v43 = vrot.slane %v6410_v20, 2  ;;  %6971 = vpow2.f32 %v6758_v48 }
 0x5d5   : > { %v6418_v27 = vrot.slane %v6417_v6, 2  ;;  %v6436_v63 = vadd.f32 %v10997_v9, %v6400_v54  ;;  %v6505_v5 = vsub.s32 %v6502_v52, %v11545_v40 }
 0x5d6   : > { %v6406_v33 = vrot.slane %v6405_v62, 1  ;;  %v6412_v59 = vadd.f32 %v6411_v43, %v6410_v20 }
 0x5d7   : > { %v6419_v22 = vadd.f32 %v6418_v27, %v6417_v6  ;;  %v6759_v0 = vmul.f32 -1.442695, %v6436_v63 }
 0x5d8   : > { %v6407_v29 = vadd.f32 %v6406_v33, %v6405_v62  ;;  %v6413_v16 = vrot.slane %v6412_v59, 1 }
 0x5d9   : > { %v6966_v51 = vpop.eup %6965  ;;  %v6420_v53 = vrot.slane %v6419_v22, 1  ;;  %6973 = vpow2.f32 %v6759_v0 }
 0x5da   : > { %v6968_v45 = vpop.eup %6967  ;;  %v6414_v36 = vadd.f32 %v6413_v16, %v6412_v59  ;;  %v6437_v31 = vadd.f32 %v10997_v9, %v6407_v29  ;;  %v6464_v41 = vadd.f32 1.0, %v6966_v51 }
 0x5db   : > { %v6970_v19 = vpop.eup %6969  ;;  %v6421_v46 = vadd.f32 %v6420_v53, %v6419_v22  ;;  %v6465_v8 = vadd.f32 1.0, %v6968_v45 }
 0x5dc   : > { %v6438_v56 = vadd.f32 %v10997_v9, %v6414_v36  ;;  %v6760_v14 = vmul.f32 -1.442695, %v6437_v31  ;;  %v6466_v21 = vadd.f32 1.0, %v6970_v19  ;;  %6975 = vrcp.f32 %v6464_v41 }
 0x5dd   : > { %v6439_v26 = vadd.f32 %v10997_v9, %v6421_v46  ;;  %6977 = vrcp.f32 %v6465_v8 }
 0x5de   : > { %v6972_v10 = vpop.eup %6971  ;;  %v6761_v50 = vmul.f32 -1.442695, %v6438_v56  ;;  %6979 = vpow2.f32 %v6760_v14 }
 0x5df   : > { %v6762_v32 = vmul.f32 -1.442695, %v6439_v26  ;;  %v6467_v55 = vadd.f32 1.0, %v6972_v10  ;;  %6981 = vrcp.f32 %v6466_v21 }
 0x5e0   : > { %6983 = vpow2.f32 %v6761_v50 }
 0x5e1   : > { %6985 = vpow2.f32 %v6762_v32 }
 0x5e2   : > { %6987 = vrcp.f32 %v6467_v55 }
 0x5e3   : > { %v6974_v39 = vpop.eup %6973 }
 0x5e4   : > { %v6468_v28 = vadd.f32 1.0, %v6974_v39 }
 0x5e6   : > { %v6976_v37 = vpop.eup %6975  ;;  %6989 = vrcp.f32 %v6468_v28 }
 0x5e7   : > { %v6978_v61 = vpop.eup %6977 }
 0x5e8   : > { %v6980_v47 = vpop.eup %6979  ;;  %v6496_v30 = vcombine.low %v6976_v37, %v6978_v61 }
 0x5e9   : > { %v6982_v9 = vpop.eup %6981  ;;  %v6469_v13 = vadd.f32 1.0, %v6980_v47 }
 0x5ea   : > { %v6984_v34 = vpop.eup %6983  ;;  %v6506_v4 = vrot.slane %v6496_v30, %v6505_v5 }
 0x5eb   : > { %v6986_v42 = vpop.eup %6985  ;;  %v6470_v24 = vadd.f32 1.0, %v6984_v34  ;;  %6991 = vrcp.f32 %v6469_v13 }
 0x5ec   : > { %v6988_v25 = vpop.eup %6987  ;;  %v6471_v11 = vadd.f32 1.0, %v6986_v42 }
 0x5ed   : > { %6993 = vrcp.f32 %v6470_v24  ;;  %v6497_v3 = vcombine.low %v6982_v9, %v6988_v25 }
 0x5ee   : > { %6995 = vrcp.f32 %v6471_v11 }
 0x5ef   : > { %v6513_v7 = vrot.slane %v6497_v3, %v6505_v5 }
 0x5f0   : > { %v6990_v15 = vpop.eup %6989 }
 0x5f1   : > { %v6528_v17 = vcombine.low %v6506_v4, %v6513_v7 }
 0x5f3   : > { %v6536_v60 = vrot.slane %v6528_v17, %v6505_v5 }
 0x5f5   : > { %v6992_v49 = vpop.eup %6991 }
 0x5f6   : > { %v6498_v12 = vcombine.low %v6990_v15, %v6992_v49 }
 0x5f7   : > { %v6994_v35 = vpop.eup %6993 }
 0x5f8   : > { %v6996_v57 = vpop.eup %6995  ;;  %v6520_v23 = vrot.slane %v6498_v12, %v6505_v5 }
 0x5f9   : > { %v6499_v58 = vcombine.low %v6994_v35, %v6996_v57 }
 0x5fb   : > { %v6527_v38 = vrot.slane %v6499_v58, %v6505_v5 }
 0x5fd   : > { %v6529_v44 = vcombine.low %v6520_v23, %v6527_v38 }
 0x5ff   : > { %v6543_v2 = vrot.slane %v6529_v44, %v6505_v5 }
 0x601   : > { %v6544_v20 = vcombine.low %v6536_v60, %v6543_v2 }
 0x603   : > { %6546 = vst [vmem:[%s298_s14] sm:$0xff] %v6544_v20 }
 0x604   : > { %7010 = shalt.err (!%p7007_p3)
}
 0x605   : > { %s7011_s23 = scalar_lea.hbm %s11020_s22, 128  ;;  %s7015_s18 = scalar_lea.hbm %s11070_s8, 256 }
 0x606   : > { %p7012_p4 = scmp.ne.s32.totalorder %s11020_s22, %s7011_s23  ;;  %p7016_p9 = scmp.lt.u32.totalorder %s11020_s22, %s11070_s8 }
 0x607   : > { %p7017_p10 = scmp.lt.u32.totalorder %s7015_s18, %s7011_s23  ;;  %p7019_p12 = scmp.lt.u32.totalorder %s7011_s23, %s11020_s22 }
 0x608   : > { %p7013_p7 = pnand %p7012_p4, %p7175_p5 }
 0x609   : > { %p7018_p11 = por %p7017_p10, %p7016_p9 }
 0x60a   : > { %p7014_p8 = pneg %p7013_p7 }
 0x60b   : > { %p7020_p13 = por %p7019_p12, %p7018_p11 }
 0x60d   : > { %p7021_p0 = pnand %p7020_p13, %p7014_p8 }
 0x60f   : > { %7024 = shalt.err (!%p7021_p0)
}
 0x610   : > { %6897 = dma.vmem_to_hbm [thread:$0]  (%p7175_p5), %s11022_s26, 128, %s11020_s22, %s6548_s13  }
 0x611 PF: > { %p6903_p1 = scmp.ge.s32.totalorder %s7059_s10, 2  ;;  %s6574_s27 = sand.u32 1, %s7047_s29  }
 0x612   : > { %s6575_s20 = scalar_lea.sflag [#allocation4], %s6574_s27 }
 0x613   : > { %p6900_p2 = pnand %p6903_p1, %p7179_p6 }
 0x615   : > { %7042 = dma.done.wait (!%p6900_p2), %s6575_s20, 128  }
 0x616   : > { %7044 = vsyncadd (!%p6900_p2), %s6575_s20, 4294967168  ;;  %p20_p3 = scmp.ge.s32.totalorder %s7162_s12, 4   ;;  %s11546_s29 = smov %s7051_s30 }
 0x617   : > { %s11547_s30 = smov %s7055_s9  ;;  %s11548_s9 = smov %s7173_s15 }
 0x618   : > { %s11549_s10 = smov %s7162_s12  ;;  %22 = sbr.rel (!%p20_p3) target bundleno = 6 (0x6), region = 127 }
 0x61f   :  { %6580 = vsyncpa [#allocation4], 1 }
 0x620   :  { %6582 = vsyncpa [#allocation4 + $0x1], 1 }

</bundles_post_ra>
